<compile_context>
chip_gen: v5e
topology: v5e:2x2
jax: 0.10.0
libtpu: 0.0.40
codegen_flags: <defaults>
</compile_context>

<pallas_src>
import jax
import jax.numpy as jnp
from jax import lax
from jax.experimental import pallas as pl
from jax.experimental.pallas import tpu as pltpu

B = 8            # batch
IN = 32          # "inputs" of ValueNet
H1 = 128         # fc1 out / conv length (padding='same' keeps it 128)
C1, C2 = 3, 9    # conv1 / conv2 output channels
H2 = 128 * 3     # fc2 out
EPS = 1e-5


def _valuenet_kernel(x_ref, w1_ref, b1_ref, c1w_ref, c1b_ref, c2w_ref, c2b_ref,
                     w2_hbm, b2_ref, w3_hbm, b3_ref, wo_ref, bo_ref,
                     out_ref, w2_vmem, w3_vmem, dma_sem):
    # ---- kick off the big weight fetches; they overlap the conv/BN half ----
    # fc1/conv1/bn1/conv2 never touch w2/w3, so their HBM->VMEM DMAs run
    # entirely under that compute instead of serializing before the kernel.
    w2_cp = pltpu.make_async_copy(w2_hbm, w2_vmem, dma_sem.at[0])
    w3_cp = pltpu.make_async_copy(w3_hbm, w3_vmem, dma_sem.at[1])
    w2_cp.start()
    w3_cp.start()

    # ---- hoisted constants: lane iota + conv boundary masks (built once) ----
    lane = lax.broadcasted_iota(jnp.int32, (B, H1), 1)
    mask_lo = lane >= 1          # valid region when reading x[l-1]  (k == 0)
    mask_hi = lane <= H1 - 2     # valid region when reading x[l+1]  (k == 2)

    def sigmoid(x):
        # single EUP tanh instead of exp + reciprocal
        return 0.5 * jnp.tanh(0.5 * x) + 0.5

    def shift_same(x, k):
        """x[b, l + k - 1] with zero padding (kernel_size=3, padding=1)."""
        if k == 1:
            return x
        s = (1 - k) % H1                        # +1 for k=0, L-1 (== -1) for k=2
        rolled = pltpu.roll(x, shift=s, axis=1)
        return jnp.where(mask_lo if k == 0 else mask_hi, rolled, 0.0)

    def conv1d_same(chans_in, w_ref, b_ref, c_out):
        """Conv1d(kernel=3, padding=1) on a list of (B, L) channel tiles.
        w_ref: SMEM (c_out, c_in*3), b_ref: SMEM (c_out,)."""
        c_in = len(chans_in)
        shifted = [[shift_same(chans_in[ci], k) for k in range(3)]
                   for ci in range(c_in)]
        outs = []
        for co in range(c_out):
            acc = jnp.full((B, H1), b_ref[co], dtype=jnp.float32)
            for ci in range(c_in):
                for k in range(3):
                    acc = acc + w_ref[co, ci * 3 + k] * shifted[ci][k]
            outs.append(acc)
        return outs

    # ---- fc1 (bf16 MXU, f32 accumulate) + sigmoid -------------------------
    h1 = sigmoid(
        jnp.dot(x_ref[...].astype(jnp.bfloat16), w1_ref[...],
                preferred_element_type=jnp.float32) + b1_ref[...])

    # ---- conv1 (1 -> 3) + sigmoid applied twice (as in the torch forward) --
    c1 = conv1d_same([h1], c1w_ref, c1b_ref, C1)
    c1 = [sigmoid(sigmoid(c)) for c in c1]

    # ---- batch_norm1: per channel over (batch, length); one-pass stats -----
    inv_n1 = 1.0 / float(B * H1)
    bn1 = []
    for c in c1:
        s1 = jnp.sum(c)
        s2 = jnp.sum(c * c)
        m = s1 * inv_n1
        v = s2 * inv_n1 - m * m
        bn1.append((c - m) * lax.rsqrt(v + EPS))

    # ---- conv2 (3 -> 9) + sigmoid; flatten via lane-aligned register concat -
    c2 = conv1d_same(bn1, c2w_ref, c2b_ref, C2)
    flat = jnp.concatenate([sigmoid(c) for c in c2], axis=-1)   # (B, 1152) f32

    # ---- flatten + fc2 as ONE (B,1152)x(1152,384) MXU contraction ----------
    w2_cp.wait()
    h5 = sigmoid(
        jnp.dot(flat.astype(jnp.bfloat16), w2_vmem[...],
                preferred_element_type=jnp.float32) + b2_ref[...])

    # ---- batch_norm2: per feature over the batch; one-pass stats -----------
    inv_b = 1.0 / float(B)
    s1b = jnp.sum(h5, axis=0, keepdims=True)
    s2b = jnp.sum(h5 * h5, axis=0, keepdims=True)
    m2 = s1b * inv_b
    v2 = s2b * inv_b - m2 * m2
    h6 = (h5 - m2) * lax.rsqrt(v2 + EPS)

    # ---- fc3 (bf16 MXU) + sigmoid ------------------------------------------
    w3_cp.wait()
    h7 = sigmoid(
        jnp.dot(h6.astype(jnp.bfloat16), w3_vmem[...],
                preferred_element_type=jnp.float32) + b3_ref[...])

    # ---- out: Linear(128, 1) as a lane reduction (avoids an N=1 matmul) ----
    out_ref[...] = (jnp.sum(h7 * wo_ref[...], axis=-1, keepdims=True)
                    + bo_ref[0, 0])


def init_params(key):
    """Deterministic torch-style uniform(-1/sqrt(fan_in), 1/sqrt(fan_in)) init.
    MXU weights (w1/w2/w3) are stored in bf16; everything else stays f32."""
    ks = jax.random.split(key, 12)

    def u(k, shape, fan_in):
        bound = 1.0 / jnp.sqrt(jnp.float32(fan_in))
        return jax.random.uniform(k, shape, jnp.float32, -bound, bound)

    p = {}
    p["w1"] = u(ks[0], (IN, H1), IN).astype(jnp.bfloat16)   # fc1 W, transposed
    p["b1"] = u(ks[1], (1, H1), IN)
    p["c1w"] = u(ks[2], (C1, 1 * 3), 1 * 3)                 # conv1 W (Cout, Cin*K)
    p["c1b"] = u(ks[3], (C1,), 1 * 3)
    p["c2w"] = u(ks[4], (C2, C1 * 3), C1 * 3)               # conv2 W (Cout, Cin*K)
    p["c2b"] = u(ks[5], (C2,), C1 * 3)
    w2 = u(ks[6], (H2, C2 * 128), C2 * 128)                 # torch fc2 W (384, 1152)
    p["w2"] = jnp.transpose(w2).astype(jnp.bfloat16)        # stored as (1152, 384)
    p["b2"] = u(ks[7], (1, H2), C2 * 128)
    p["w3"] = u(ks[8], (H2, H1), H2).astype(jnp.bfloat16)   # fc3 W, transposed
    p["b3"] = u(ks[9], (1, H1), H2)
    p["wo"] = u(ks[10], (1, H1), H1)                        # out W (1, 128)
    p["bo"] = u(ks[11], (1, 1), H1)                         # out bias
    return p


@jax.jit
def valuenet_forward(x_ncl, params):
    x = x_ncl.reshape(B, IN).astype(jnp.float32)   # glue: squeeze channel dim
    vmem = pl.BlockSpec(memory_space=pltpu.MemorySpace.VMEM)
    smem = pl.BlockSpec(memory_space=pltpu.MemorySpace.SMEM)
    hbm = pl.BlockSpec(memory_space=pl.ANY)        # w2/w3 DMA'd manually in-kernel
    return pl.pallas_call(
        _valuenet_kernel,
        out_shape=jax.ShapeDtypeStruct((B, 1), jnp.float32),
        in_specs=[vmem,                    # x
                  vmem, vmem,              # fc1
                  smem, smem,              # conv1 (scalar weights in SMEM)
                  smem, smem,              # conv2
                  hbm, vmem,               # fc2 (w2 stays in HBM, bias in VMEM)
                  hbm, vmem,               # fc3 (w3 stays in HBM, bias in VMEM)
                  vmem, smem],             # out
        out_specs=vmem,
        scratch_shapes=[pltpu.VMEM((C2 * H1, H2), jnp.bfloat16),   # w2 landing buf
                        pltpu.VMEM((H2, H1), jnp.bfloat16),        # w3 landing buf
                        pltpu.SemaphoreType.DMA((2,))],            # w2 / w3 sems
    )(x, params["w1"], params["b1"], params["c1w"], params["c1b"],
      params["c2w"], params["c2b"], params["w2"], params["b2"],
      params["w3"], params["b3"], params["wo"], params["bo"])


def reference_forward(x_ncl, p):
    """Plain-JAX f32 reference with identical semantics (for a sanity check).
    Uses the same (bf16-stored) weights, upcast to f32."""
    x = x_ncl.reshape(B, IN).astype(jnp.float32)
    w1 = p["w1"].astype(jnp.float32)
    w2t = p["w2"].astype(jnp.float32)          # (1152, 384) == W2^T
    w3 = p["w3"].astype(jnp.float32)
    h1 = jax.nn.sigmoid(x @ w1 + p["b1"])      # (B, 128)

    def conv1d(inp, w, b):   # inp (B, Cin, L), w (Cout, Cin, 3), padding=1
        out = lax.conv_general_dilated(inp, w, (1,), ((1, 1),),
                                       dimension_numbers=("NCH", "OIH", "NCH"))
        return out + b[None, :, None]

    c1 = conv1d(h1[:, None, :], p["c1w"].reshape(C1, 1, 3), p["c1b"])
    c1 = jax.nn.sigmoid(jax.nn.sigmoid(c1))
    m1 = jnp.mean(c1, axis=(0, 2), keepdims=True)
    v1 = jnp.mean((c1 - m1) ** 2, axis=(0, 2), keepdims=True)
    bn1 = (c1 - m1) * lax.rsqrt(v1 + EPS)
    c2 = jax.nn.sigmoid(conv1d(bn1, p["c2w"].reshape(C2, C1, 3), p["c2b"]))
    flat = c2.reshape(B, C2 * 128)
    h5 = jax.nn.sigmoid(flat @ w2t + p["b2"])
    m2 = jnp.mean(h5, axis=0, keepdims=True)
    v2 = jnp.mean((h5 - m2) ** 2, axis=0, keepdims=True)
    h6 = (h5 - m2) * lax.rsqrt(v2 + EPS)
    h7 = jax.nn.sigmoid(h6 @ w3 + p["b3"])
    return jnp.sum(h7 * p["wo"], axis=-1, keepdims=True) + p["bo"][0, 0]


if __name__ == "__main__":
    key = jax.random.PRNGKey(0)
    pkey, xkey = jax.random.split(key)
    params = init_params(pkey)
    x = jax.random.normal(xkey, (B, 1, IN), jnp.float32)   # NCL, as Conv1d expects

    y = valuenet_forward(x, params)
    y = jax.block_until_ready(y)

    y_ref = reference_forward(x, params)
    assert y.shape == (B, 1), y.shape
    assert jnp.allclose(y, y_ref, atol=1e-2, rtol=1e-2), (y, y_ref)
    print("KERNEL_OK")
</pallas_src>

<mosaic_0001>
module attributes {stable_mosaic.version = 11 : i64} {
  func.func @_valuenet_kernel(%arg0: memref<8x32xf32, #tpu.memory_space<vmem>>, %arg1: memref<32x128xbf16, #tpu.memory_space<vmem>>, %arg2: memref<1x128xf32, #tpu.memory_space<vmem>>, %arg3: memref<3x3xf32, #tpu.memory_space<smem>>, %arg4: memref<3xf32, #tpu.memory_space<smem>>, %arg5: memref<9x9xf32, #tpu.memory_space<smem>>, %arg6: memref<9xf32, #tpu.memory_space<smem>>, %arg7: memref<1152x384xbf16, #tpu.memory_space<any>>, %arg8: memref<1x384xf32, #tpu.memory_space<vmem>>, %arg9: memref<384x128xbf16, #tpu.memory_space<any>>, %arg10: memref<1x128xf32, #tpu.memory_space<vmem>>, %arg11: memref<1x128xf32, #tpu.memory_space<vmem>>, %arg12: memref<1x1xf32, #tpu.memory_space<smem>>, %arg13: memref<8x1xf32, #tpu.memory_space<vmem>>, %arg14: memref<1152x384xbf16, #tpu.memory_space<vmem>>, %arg15: memref<384x128xbf16, #tpu.memory_space<vmem>>, %arg16: memref<2x!tpu.dma_semaphore, #tpu.memory_space<semaphore_mem>>) attributes {dimension_semantics = [], scalar_prefetch = 0 : i64, scratch_operands = 3 : i64, tpu.core_type = #tpu.core_type<tc>} {
    %c0_i32 = arith.constant 0 : i32
    %0 = tpu.memref_slice %arg16[%c0_i32] : memref<2x!tpu.dma_semaphore, #tpu.memory_space<semaphore_mem>> -> memref<1x!tpu.dma_semaphore, #tpu.memory_space<semaphore_mem>>
    %1 = tpu.memref_squeeze %0 : memref<1x!tpu.dma_semaphore, #tpu.memory_space<semaphore_mem>> -> memref<!tpu.dma_semaphore, #tpu.memory_space<semaphore_mem>>
    tpu.enqueue_dma source(%arg7 : memref<1152x384xbf16, #tpu.memory_space<any>>) target(%arg14 : memref<1152x384xbf16, #tpu.memory_space<vmem>>) target_semaphore(%1 : memref<!tpu.dma_semaphore, #tpu.memory_space<semaphore_mem>>)
    %c1_i32 = arith.constant 1 : i32
    %2 = tpu.memref_slice %arg16[%c1_i32] : memref<2x!tpu.dma_semaphore, #tpu.memory_space<semaphore_mem>> -> memref<1x!tpu.dma_semaphore, #tpu.memory_space<semaphore_mem>>
    %3 = tpu.memref_squeeze %2 : memref<1x!tpu.dma_semaphore, #tpu.memory_space<semaphore_mem>> -> memref<!tpu.dma_semaphore, #tpu.memory_space<semaphore_mem>>
    tpu.enqueue_dma source(%arg9 : memref<384x128xbf16, #tpu.memory_space<any>>) target(%arg15 : memref<384x128xbf16, #tpu.memory_space<vmem>>) target_semaphore(%3 : memref<!tpu.dma_semaphore, #tpu.memory_space<semaphore_mem>>)
    %4 = tpu.iota {dimensions = array<i32: 1>} : vector<8x128xi32>
    %c1_i32_0 = arith.constant 1 : i32
    %5 = vector.broadcast %c1_i32_0 : i32 to vector<8x128xi32>
    %6 = arith.cmpi sge, %4, %5 : vector<8x128xi32>
    %c126_i32 = arith.constant 126 : i32
    %7 = vector.broadcast %c126_i32 : i32 to vector<8x128xi32>
    %8 = arith.cmpi sle, %4, %7 : vector<8x128xi32>
    %c0 = arith.constant 0 : index
    %c0_1 = arith.constant 0 : index
    %9 = vector.load %arg0[%c0, %c0_1] : memref<8x32xf32, #tpu.memory_space<vmem>>, vector<8x32xf32>
    %10 = arith.truncf %9 : vector<8x32xf32> to vector<8x32xbf16>
    %c0_2 = arith.constant 0 : index
    %c0_3 = arith.constant 0 : index
    %11 = vector.load %arg1[%c0_2, %c0_3] : memref<32x128xbf16, #tpu.memory_space<vmem>>, vector<32x128xbf16>
    %cst = arith.constant dense<0.000000e+00> : vector<8x128xf32>
    %12 = tpu.matmul %10, %11, %cst {dimension_numbers = #tpu.dot_dimension_numbers<[1], [0], [0], [1], [0, 0, 1, 1], [], []>} : vector<8x32xbf16>, vector<32x128xbf16>, vector<8x128xf32> -> vector<8x128xf32>
    %c0_4 = arith.constant 0 : index
    %c0_5 = arith.constant 0 : index
    %13 = vector.load %arg2[%c0_4, %c0_5] : memref<1x128xf32, #tpu.memory_space<vmem>>, vector<1x128xf32>
    %14 = vector.broadcast %13 : vector<1x128xf32> to vector<8x128xf32>
    %15 = arith.addf %12, %14 : vector<8x128xf32>
    %cst_6 = arith.constant 5.000000e-01 : f32
    %16 = vector.broadcast %cst_6 : f32 to vector<8x128xf32>
    %17 = arith.mulf %16, %15 : vector<8x128xf32>
    %18 = math.tanh %17 : vector<8x128xf32>
    %cst_7 = arith.constant 5.000000e-01 : f32
    %19 = vector.broadcast %cst_7 : f32 to vector<8x128xf32>
    %20 = arith.mulf %19, %18 : vector<8x128xf32>
    %cst_8 = arith.constant 5.000000e-01 : f32
    %21 = vector.broadcast %cst_8 : f32 to vector<8x128xf32>
    %22 = arith.addf %20, %21 : vector<8x128xf32>
    %c1_i32_9 = arith.constant 1 : i32
    %23 = tpu.dynamic_rotate %22 by %c1_i32_9 dim 1 : vector<8x128xf32>, i32 -> vector<8x128xf32>
    %cst_10 = arith.constant 0.000000e+00 : f32
    %24 = vector.broadcast %cst_10 : f32 to vector<8x128xf32>
    %25 = arith.select %6, %23, %24 : vector<8x128xi1>, vector<8x128xf32>
    %c127_i32 = arith.constant 127 : i32
    %26 = tpu.dynamic_rotate %22 by %c127_i32 dim 1 : vector<8x128xf32>, i32 -> vector<8x128xf32>
    %cst_11 = arith.constant 0.000000e+00 : f32
    %27 = vector.broadcast %cst_11 : f32 to vector<8x128xf32>
    %28 = arith.select %8, %26, %27 : vector<8x128xi1>, vector<8x128xf32>
    %c0_12 = arith.constant 0 : index
    %29 = memref.load %arg4[%c0_12] : memref<3xf32, #tpu.memory_space<smem>>
    %30 = vector.broadcast %29 : f32 to vector<8x128xf32>
    %c0_13 = arith.constant 0 : index
    %c0_14 = arith.constant 0 : index
    %31 = memref.load %arg3[%c0_13, %c0_14] : memref<3x3xf32, #tpu.memory_space<smem>>
    %32 = vector.broadcast %31 : f32 to vector<8x128xf32>
    %33 = arith.mulf %32, %25 : vector<8x128xf32>
    %34 = arith.addf %30, %33 : vector<8x128xf32>
    %c0_15 = arith.constant 0 : index
    %c1 = arith.constant 1 : index
    %35 = memref.load %arg3[%c0_15, %c1] : memref<3x3xf32, #tpu.memory_space<smem>>
    %36 = vector.broadcast %35 : f32 to vector<8x128xf32>
    %37 = arith.mulf %36, %22 : vector<8x128xf32>
    %38 = arith.addf %34, %37 : vector<8x128xf32>
    %c0_16 = arith.constant 0 : index
    %c2 = arith.constant 2 : index
    %39 = memref.load %arg3[%c0_16, %c2] : memref<3x3xf32, #tpu.memory_space<smem>>
    %40 = vector.broadcast %39 : f32 to vector<8x128xf32>
    %41 = arith.mulf %40, %28 : vector<8x128xf32>
    %42 = arith.addf %38, %41 : vector<8x128xf32>
    %c1_17 = arith.constant 1 : index
    %43 = memref.load %arg4[%c1_17] : memref<3xf32, #tpu.memory_space<smem>>
    %44 = vector.broadcast %43 : f32 to vector<8x128xf32>
    %c1_18 = arith.constant 1 : index
    %c0_19 = arith.constant 0 : index
    %45 = memref.load %arg3[%c1_18, %c0_19] : memref<3x3xf32, #tpu.memory_space<smem>>
    %46 = vector.broadcast %45 : f32 to vector<8x128xf32>
    %47 = arith.mulf %46, %25 : vector<8x128xf32>
    %48 = arith.addf %44, %47 : vector<8x128xf32>
    %c1_20 = arith.constant 1 : index
    %c1_21 = arith.constant 1 : index
    %49 = memref.load %arg3[%c1_20, %c1_21] : memref<3x3xf32, #tpu.memory_space<smem>>
    %50 = vector.broadcast %49 : f32 to vector<8x128xf32>
    %51 = arith.mulf %50, %22 : vector<8x128xf32>
    %52 = arith.addf %48, %51 : vector<8x128xf32>
    %c1_22 = arith.constant 1 : index
    %c2_23 = arith.constant 2 : index
    %53 = memref.load %arg3[%c1_22, %c2_23] : memref<3x3xf32, #tpu.memory_space<smem>>
    %54 = vector.broadcast %53 : f32 to vector<8x128xf32>
    %55 = arith.mulf %54, %28 : vector<8x128xf32>
    %56 = arith.addf %52, %55 : vector<8x128xf32>
    %c2_24 = arith.constant 2 : index
    %57 = memref.load %arg4[%c2_24] : memref<3xf32, #tpu.memory_space<smem>>
    %58 = vector.broadcast %57 : f32 to vector<8x128xf32>
    %c2_25 = arith.constant 2 : index
    %c0_26 = arith.constant 0 : index
    %59 = memref.load %arg3[%c2_25, %c0_26] : memref<3x3xf32, #tpu.memory_space<smem>>
    %60 = vector.broadcast %59 : f32 to vector<8x128xf32>
    %61 = arith.mulf %60, %25 : vector<8x128xf32>
    %62 = arith.addf %58, %61 : vector<8x128xf32>
    %c2_27 = arith.constant 2 : index
    %c1_28 = arith.constant 1 : index
    %63 = memref.load %arg3[%c2_27, %c1_28] : memref<3x3xf32, #tpu.memory_space<smem>>
    %64 = vector.broadcast %63 : f32 to vector<8x128xf32>
    %65 = arith.mulf %64, %22 : vector<8x128xf32>
    %66 = arith.addf %62, %65 : vector<8x128xf32>
    %c2_29 = arith.constant 2 : index
    %c2_30 = arith.constant 2 : index
    %67 = memref.load %arg3[%c2_29, %c2_30] : memref<3x3xf32, #tpu.memory_space<smem>>
    %68 = vector.broadcast %67 : f32 to vector<8x128xf32>
    %69 = arith.mulf %68, %28 : vector<8x128xf32>
    %70 = arith.addf %66, %69 : vector<8x128xf32>
    %cst_31 = arith.constant 5.000000e-01 : f32
    %71 = vector.broadcast %cst_31 : f32 to vector<8x128xf32>
    %72 = arith.mulf %71, %42 : vector<8x128xf32>
    %73 = math.tanh %72 : vector<8x128xf32>
    %cst_32 = arith.constant 5.000000e-01 : f32
    %74 = vector.broadcast %cst_32 : f32 to vector<8x128xf32>
    %75 = arith.mulf %74, %73 : vector<8x128xf32>
    %cst_33 = arith.constant 5.000000e-01 : f32
    %76 = vector.broadcast %cst_33 : f32 to vector<8x128xf32>
    %77 = arith.addf %75, %76 : vector<8x128xf32>
    %cst_34 = arith.constant 5.000000e-01 : f32
    %78 = vector.broadcast %cst_34 : f32 to vector<8x128xf32>
    %79 = arith.mulf %78, %77 : vector<8x128xf32>
    %80 = math.tanh %79 : vector<8x128xf32>
    %cst_35 = arith.constant 5.000000e-01 : f32
    %81 = vector.broadcast %cst_35 : f32 to vector<8x128xf32>
    %82 = arith.mulf %81, %80 : vector<8x128xf32>
    %cst_36 = arith.constant 5.000000e-01 : f32
    %83 = vector.broadcast %cst_36 : f32 to vector<8x128xf32>
    %84 = arith.addf %82, %83 : vector<8x128xf32>
    %cst_37 = arith.constant 5.000000e-01 : f32
    %85 = vector.broadcast %cst_37 : f32 to vector<8x128xf32>
    %86 = arith.mulf %85, %56 : vector<8x128xf32>
    %87 = math.tanh %86 : vector<8x128xf32>
    %cst_38 = arith.constant 5.000000e-01 : f32
    %88 = vector.broadcast %cst_38 : f32 to vector<8x128xf32>
    %89 = arith.mulf %88, %87 : vector<8x128xf32>
    %cst_39 = arith.constant 5.000000e-01 : f32
    %90 = vector.broadcast %cst_39 : f32 to vector<8x128xf32>
    %91 = arith.addf %89, %90 : vector<8x128xf32>
    %cst_40 = arith.constant 5.000000e-01 : f32
    %92 = vector.broadcast %cst_40 : f32 to vector<8x128xf32>
    %93 = arith.mulf %92, %91 : vector<8x128xf32>
    %94 = math.tanh %93 : vector<8x128xf32>
    %cst_41 = arith.constant 5.000000e-01 : f32
    %95 = vector.broadcast %cst_41 : f32 to vector<8x128xf32>
    %96 = arith.mulf %95, %94 : vector<8x128xf32>
    %cst_42 = arith.constant 5.000000e-01 : f32
    %97 = vector.broadcast %cst_42 : f32 to vector<8x128xf32>
    %98 = arith.addf %96, %97 : vector<8x128xf32>
    %cst_43 = arith.constant 5.000000e-01 : f32
    %99 = vector.broadcast %cst_43 : f32 to vector<8x128xf32>
    %100 = arith.mulf %99, %70 : vector<8x128xf32>
    %101 = math.tanh %100 : vector<8x128xf32>
    %cst_44 = arith.constant 5.000000e-01 : f32
    %102 = vector.broadcast %cst_44 : f32 to vector<8x128xf32>
    %103 = arith.mulf %102, %101 : vector<8x128xf32>
    %cst_45 = arith.constant 5.000000e-01 : f32
    %104 = vector.broadcast %cst_45 : f32 to vector<8x128xf32>
    %105 = arith.addf %103, %104 : vector<8x128xf32>
    %cst_46 = arith.constant 5.000000e-01 : f32
    %106 = vector.broadcast %cst_46 : f32 to vector<8x128xf32>
    %107 = arith.mulf %106, %105 : vector<8x128xf32>
    %108 = math.tanh %107 : vector<8x128xf32>
    %cst_47 = arith.constant 5.000000e-01 : f32
    %109 = vector.broadcast %cst_47 : f32 to vector<8x128xf32>
    %110 = arith.mulf %109, %108 : vector<8x128xf32>
    %cst_48 = arith.constant 5.000000e-01 : f32
    %111 = vector.broadcast %cst_48 : f32 to vector<8x128xf32>
    %112 = arith.addf %110, %111 : vector<8x128xf32>
    %113 = vector.shape_cast %84 : vector<8x128xf32> to vector<1x8x128xf32>
    %cst_49 = arith.constant dense<0.000000e+00> : vector<1xf32>
    %114 = vector.multi_reduction <add>, %113, %cst_49 [1, 2] : vector<1x8x128xf32> to vector<1xf32>
    %115 = vector.shape_cast %114 : vector<1xf32> to vector<1x1x1xf32>
    %116 = vector.extract %115[0, 0, 0] : f32 from vector<1x1x1xf32>
    %117 = arith.mulf %84, %84 : vector<8x128xf32>
    %118 = vector.shape_cast %117 : vector<8x128xf32> to vector<1x8x128xf32>
    %cst_50 = arith.constant dense<0.000000e+00> : vector<1xf32>
    %119 = vector.multi_reduction <add>, %118, %cst_50 [1, 2] : vector<1x8x128xf32> to vector<1xf32>
    %120 = vector.shape_cast %119 : vector<1xf32> to vector<1x1x1xf32>
    %121 = vector.extract %120[0, 0, 0] : f32 from vector<1x1x1xf32>
    %cst_51 = arith.constant 9.765625E-4 : f32
    %122 = arith.mulf %116, %cst_51 : f32
    %cst_52 = arith.constant 9.765625E-4 : f32
    %123 = arith.mulf %121, %cst_52 : f32
    %124 = arith.mulf %122, %122 : f32
    %125 = arith.subf %123, %124 : f32
    %126 = vector.broadcast %122 : f32 to vector<8x128xf32>
    %127 = arith.subf %84, %126 : vector<8x128xf32>
    %cst_53 = arith.constant 9.99999974E-6 : f32
    %128 = arith.addf %125, %cst_53 : f32
    %129 = math.rsqrt %128 : f32
    %130 = vector.broadcast %129 : f32 to vector<8x128xf32>
    %131 = arith.mulf %127, %130 : vector<8x128xf32>
    %132 = vector.shape_cast %98 : vector<8x128xf32> to vector<1x8x128xf32>
    %cst_54 = arith.constant dense<0.000000e+00> : vector<1xf32>
    %133 = vector.multi_reduction <add>, %132, %cst_54 [1, 2] : vector<1x8x128xf32> to vector<1xf32>
    %134 = vector.shape_cast %133 : vector<1xf32> to vector<1x1x1xf32>
    %135 = vector.extract %134[0, 0, 0] : f32 from vector<1x1x1xf32>
    %136 = arith.mulf %98, %98 : vector<8x128xf32>
    %137 = vector.shape_cast %136 : vector<8x128xf32> to vector<1x8x128xf32>
    %cst_55 = arith.constant dense<0.000000e+00> : vector<1xf32>
    %138 = vector.multi_reduction <add>, %137, %cst_55 [1, 2] : vector<1x8x128xf32> to vector<1xf32>
    %139 = vector.shape_cast %138 : vector<1xf32> to vector<1x1x1xf32>
    %140 = vector.extract %139[0, 0, 0] : f32 from vector<1x1x1xf32>
    %cst_56 = arith.constant 9.765625E-4 : f32
    %141 = arith.mulf %135, %cst_56 : f32
    %cst_57 = arith.constant 9.765625E-4 : f32
    %142 = arith.mulf %140, %cst_57 : f32
    %143 = arith.mulf %141, %141 : f32
    %144 = arith.subf %142, %143 : f32
    %145 = vector.broadcast %141 : f32 to vector<8x128xf32>
    %146 = arith.subf %98, %145 : vector<8x128xf32>
    %cst_58 = arith.constant 9.99999974E-6 : f32
    %147 = arith.addf %144, %cst_58 : f32
    %148 = math.rsqrt %147 : f32
    %149 = vector.broadcast %148 : f32 to vector<8x128xf32>
    %150 = arith.mulf %146, %149 : vector<8x128xf32>
    %151 = vector.shape_cast %112 : vector<8x128xf32> to vector<1x8x128xf32>
    %cst_59 = arith.constant dense<0.000000e+00> : vector<1xf32>
    %152 = vector.multi_reduction <add>, %151, %cst_59 [1, 2] : vector<1x8x128xf32> to vector<1xf32>
    %153 = vector.shape_cast %152 : vector<1xf32> to vector<1x1x1xf32>
    %154 = vector.extract %153[0, 0, 0] : f32 from vector<1x1x1xf32>
    %155 = arith.mulf %112, %112 : vector<8x128xf32>
    %156 = vector.shape_cast %155 : vector<8x128xf32> to vector<1x8x128xf32>
    %cst_60 = arith.constant dense<0.000000e+00> : vector<1xf32>
    %157 = vector.multi_reduction <add>, %156, %cst_60 [1, 2] : vector<1x8x128xf32> to vector<1xf32>
    %158 = vector.shape_cast %157 : vector<1xf32> to vector<1x1x1xf32>
    %159 = vector.extract %158[0, 0, 0] : f32 from vector<1x1x1xf32>
    %cst_61 = arith.constant 9.765625E-4 : f32
    %160 = arith.mulf %154, %cst_61 : f32
    %cst_62 = arith.constant 9.765625E-4 : f32
    %161 = arith.mulf %159, %cst_62 : f32
    %162 = arith.mulf %160, %160 : f32
    %163 = arith.subf %161, %162 : f32
    %164 = vector.broadcast %160 : f32 to vector<8x128xf32>
    %165 = arith.subf %112, %164 : vector<8x128xf32>
    %cst_63 = arith.constant 9.99999974E-6 : f32
    %166 = arith.addf %163, %cst_63 : f32
    %167 = math.rsqrt %166 : f32
    %168 = vector.broadcast %167 : f32 to vector<8x128xf32>
    %169 = arith.mulf %165, %168 : vector<8x128xf32>
    %c1_i32_64 = arith.constant 1 : i32
    %170 = tpu.dynamic_rotate %131 by %c1_i32_64 dim 1 : vector<8x128xf32>, i32 -> vector<8x128xf32>
    %cst_65 = arith.constant 0.000000e+00 : f32
    %171 = vector.broadcast %cst_65 : f32 to vector<8x128xf32>
    %172 = arith.select %6, %170, %171 : vector<8x128xi1>, vector<8x128xf32>
    %c127_i32_66 = arith.constant 127 : i32
    %173 = tpu.dynamic_rotate %131 by %c127_i32_66 dim 1 : vector<8x128xf32>, i32 -> vector<8x128xf32>
    %cst_67 = arith.constant 0.000000e+00 : f32
    %174 = vector.broadcast %cst_67 : f32 to vector<8x128xf32>
    %175 = arith.select %8, %173, %174 : vector<8x128xi1>, vector<8x128xf32>
    %c1_i32_68 = arith.constant 1 : i32
    %176 = tpu.dynamic_rotate %150 by %c1_i32_68 dim 1 : vector<8x128xf32>, i32 -> vector<8x128xf32>
    %cst_69 = arith.constant 0.000000e+00 : f32
    %177 = vector.broadcast %cst_69 : f32 to vector<8x128xf32>
    %178 = arith.select %6, %176, %177 : vector<8x128xi1>, vector<8x128xf32>
    %c127_i32_70 = arith.constant 127 : i32
    %179 = tpu.dynamic_rotate %150 by %c127_i32_70 dim 1 : vector<8x128xf32>, i32 -> vector<8x128xf32>
    %cst_71 = arith.constant 0.000000e+00 : f32
    %180 = vector.broadcast %cst_71 : f32 to vector<8x128xf32>
    %181 = arith.select %8, %179, %180 : vector<8x128xi1>, vector<8x128xf32>
    %c1_i32_72 = arith.constant 1 : i32
    %182 = tpu.dynamic_rotate %169 by %c1_i32_72 dim 1 : vector<8x128xf32>, i32 -> vector<8x128xf32>
    %cst_73 = arith.constant 0.000000e+00 : f32
    %183 = vector.broadcast %cst_73 : f32 to vector<8x128xf32>
    %184 = arith.select %6, %182, %183 : vector<8x128xi1>, vector<8x128xf32>
    %c127_i32_74 = arith.constant 127 : i32
    %185 = tpu.dynamic_rotate %169 by %c127_i32_74 dim 1 : vector<8x128xf32>, i32 -> vector<8x128xf32>
    %cst_75 = arith.constant 0.000000e+00 : f32
    %186 = vector.broadcast %cst_75 : f32 to vector<8x128xf32>
    %187 = arith.select %8, %185, %186 : vector<8x128xi1>, vector<8x128xf32>
    %c0_76 = arith.constant 0 : index
    %188 = memref.load %arg6[%c0_76] : memref<9xf32, #tpu.memory_space<smem>>
    %189 = vector.broadcast %188 : f32 to vector<8x128xf32>
    %c0_77 = arith.constant 0 : index
    %c0_78 = arith.constant 0 : index
    %190 = memref.load %arg5[%c0_77, %c0_78] : memref<9x9xf32, #tpu.memory_space<smem>>
    %191 = vector.broadcast %190 : f32 to vector<8x128xf32>
    %192 = arith.mulf %191, %172 : vector<8x128xf32>
    %193 = arith.addf %189, %192 : vector<8x128xf32>
    %c0_79 = arith.constant 0 : index
    %c1_80 = arith.constant 1 : index
    %194 = memref.load %arg5[%c0_79, %c1_80] : memref<9x9xf32, #tpu.memory_space<smem>>
    %195 = vector.broadcast %194 : f32 to vector<8x128xf32>
    %196 = arith.mulf %195, %131 : vector<8x128xf32>
    %197 = arith.addf %193, %196 : vector<8x128xf32>
    %c0_81 = arith.constant 0 : index
    %c2_82 = arith.constant 2 : index
    %198 = memref.load %arg5[%c0_81, %c2_82] : memref<9x9xf32, #tpu.memory_space<smem>>
    %199 = vector.broadcast %198 : f32 to vector<8x128xf32>
    %200 = arith.mulf %199, %175 : vector<8x128xf32>
    %201 = arith.addf %197, %200 : vector<8x128xf32>
    %c0_83 = arith.constant 0 : index
    %c3 = arith.constant 3 : index
    %202 = memref.load %arg5[%c0_83, %c3] : memref<9x9xf32, #tpu.memory_space<smem>>
    %203 = vector.broadcast %202 : f32 to vector<8x128xf32>
    %204 = arith.mulf %203, %178 : vector<8x128xf32>
    %205 = arith.addf %201, %204 : vector<8x128xf32>
    %c0_84 = arith.constant 0 : index
    %c4 = arith.constant 4 : index
    %206 = memref.load %arg5[%c0_84, %c4] : memref<9x9xf32, #tpu.memory_space<smem>>
    %207 = vector.broadcast %206 : f32 to vector<8x128xf32>
    %208 = arith.mulf %207, %150 : vector<8x128xf32>
    %209 = arith.addf %205, %208 : vector<8x128xf32>
    %c0_85 = arith.constant 0 : index
    %c5 = arith.constant 5 : index
    %210 = memref.load %arg5[%c0_85, %c5] : memref<9x9xf32, #tpu.memory_space<smem>>
    %211 = vector.broadcast %210 : f32 to vector<8x128xf32>
    %212 = arith.mulf %211, %181 : vector<8x128xf32>
    %213 = arith.addf %209, %212 : vector<8x128xf32>
    %c0_86 = arith.constant 0 : index
    %c6 = arith.constant 6 : index
    %214 = memref.load %arg5[%c0_86, %c6] : memref<9x9xf32, #tpu.memory_space<smem>>
    %215 = vector.broadcast %214 : f32 to vector<8x128xf32>
    %216 = arith.mulf %215, %184 : vector<8x128xf32>
    %217 = arith.addf %213, %216 : vector<8x128xf32>
    %c0_87 = arith.constant 0 : index
    %c7 = arith.constant 7 : index
    %218 = memref.load %arg5[%c0_87, %c7] : memref<9x9xf32, #tpu.memory_space<smem>>
    %219 = vector.broadcast %218 : f32 to vector<8x128xf32>
    %220 = arith.mulf %219, %169 : vector<8x128xf32>
    %221 = arith.addf %217, %220 : vector<8x128xf32>
    %c0_88 = arith.constant 0 : index
    %c8 = arith.constant 8 : index
    %222 = memref.load %arg5[%c0_88, %c8] : memref<9x9xf32, #tpu.memory_space<smem>>
    %223 = vector.broadcast %222 : f32 to vector<8x128xf32>
    %224 = arith.mulf %223, %187 : vector<8x128xf32>
    %225 = arith.addf %221, %224 : vector<8x128xf32>
    %c1_89 = arith.constant 1 : index
    %226 = memref.load %arg6[%c1_89] : memref<9xf32, #tpu.memory_space<smem>>
    %227 = vector.broadcast %226 : f32 to vector<8x128xf32>
    %c1_90 = arith.constant 1 : index
    %c0_91 = arith.constant 0 : index
    %228 = memref.load %arg5[%c1_90, %c0_91] : memref<9x9xf32, #tpu.memory_space<smem>>
    %229 = vector.broadcast %228 : f32 to vector<8x128xf32>
    %230 = arith.mulf %229, %172 : vector<8x128xf32>
    %231 = arith.addf %227, %230 : vector<8x128xf32>
    %c1_92 = arith.constant 1 : index
    %c1_93 = arith.constant 1 : index
    %232 = memref.load %arg5[%c1_92, %c1_93] : memref<9x9xf32, #tpu.memory_space<smem>>
    %233 = vector.broadcast %232 : f32 to vector<8x128xf32>
    %234 = arith.mulf %233, %131 : vector<8x128xf32>
    %235 = arith.addf %231, %234 : vector<8x128xf32>
    %c1_94 = arith.constant 1 : index
    %c2_95 = arith.constant 2 : index
    %236 = memref.load %arg5[%c1_94, %c2_95] : memref<9x9xf32, #tpu.memory_space<smem>>
    %237 = vector.broadcast %236 : f32 to vector<8x128xf32>
    %238 = arith.mulf %237, %175 : vector<8x128xf32>
    %239 = arith.addf %235, %238 : vector<8x128xf32>
    %c1_96 = arith.constant 1 : index
    %c3_97 = arith.constant 3 : index
    %240 = memref.load %arg5[%c1_96, %c3_97] : memref<9x9xf32, #tpu.memory_space<smem>>
    %241 = vector.broadcast %240 : f32 to vector<8x128xf32>
    %242 = arith.mulf %241, %178 : vector<8x128xf32>
    %243 = arith.addf %239, %242 : vector<8x128xf32>
    %c1_98 = arith.constant 1 : index
    %c4_99 = arith.constant 4 : index
    %244 = memref.load %arg5[%c1_98, %c4_99] : memref<9x9xf32, #tpu.memory_space<smem>>
    %245 = vector.broadcast %244 : f32 to vector<8x128xf32>
    %246 = arith.mulf %245, %150 : vector<8x128xf32>
    %247 = arith.addf %243, %246 : vector<8x128xf32>
    %c1_100 = arith.constant 1 : index
    %c5_101 = arith.constant 5 : index
    %248 = memref.load %arg5[%c1_100, %c5_101] : memref<9x9xf32, #tpu.memory_space<smem>>
    %249 = vector.broadcast %248 : f32 to vector<8x128xf32>
    %250 = arith.mulf %249, %181 : vector<8x128xf32>
    %251 = arith.addf %247, %250 : vector<8x128xf32>
    %c1_102 = arith.constant 1 : index
    %c6_103 = arith.constant 6 : index
    %252 = memref.load %arg5[%c1_102, %c6_103] : memref<9x9xf32, #tpu.memory_space<smem>>
    %253 = vector.broadcast %252 : f32 to vector<8x128xf32>
    %254 = arith.mulf %253, %184 : vector<8x128xf32>
    %255 = arith.addf %251, %254 : vector<8x128xf32>
    %c1_104 = arith.constant 1 : index
    %c7_105 = arith.constant 7 : index
    %256 = memref.load %arg5[%c1_104, %c7_105] : memref<9x9xf32, #tpu.memory_space<smem>>
    %257 = vector.broadcast %256 : f32 to vector<8x128xf32>
    %258 = arith.mulf %257, %169 : vector<8x128xf32>
    %259 = arith.addf %255, %258 : vector<8x128xf32>
    %c1_106 = arith.constant 1 : index
    %c8_107 = arith.constant 8 : index
    %260 = memref.load %arg5[%c1_106, %c8_107] : memref<9x9xf32, #tpu.memory_space<smem>>
    %261 = vector.broadcast %260 : f32 to vector<8x128xf32>
    %262 = arith.mulf %261, %187 : vector<8x128xf32>
    %263 = arith.addf %259, %262 : vector<8x128xf32>
    %c2_108 = arith.constant 2 : index
    %264 = memref.load %arg6[%c2_108] : memref<9xf32, #tpu.memory_space<smem>>
    %265 = vector.broadcast %264 : f32 to vector<8x128xf32>
    %c2_109 = arith.constant 2 : index
    %c0_110 = arith.constant 0 : index
    %266 = memref.load %arg5[%c2_109, %c0_110] : memref<9x9xf32, #tpu.memory_space<smem>>
    %267 = vector.broadcast %266 : f32 to vector<8x128xf32>
    %268 = arith.mulf %267, %172 : vector<8x128xf32>
    %269 = arith.addf %265, %268 : vector<8x128xf32>
    %c2_111 = arith.constant 2 : index
    %c1_112 = arith.constant 1 : index
    %270 = memref.load %arg5[%c2_111, %c1_112] : memref<9x9xf32, #tpu.memory_space<smem>>
    %271 = vector.broadcast %270 : f32 to vector<8x128xf32>
    %272 = arith.mulf %271, %131 : vector<8x128xf32>
    %273 = arith.addf %269, %272 : vector<8x128xf32>
    %c2_113 = arith.constant 2 : index
    %c2_114 = arith.constant 2 : index
    %274 = memref.load %arg5[%c2_113, %c2_114] : memref<9x9xf32, #tpu.memory_space<smem>>
    %275 = vector.broadcast %274 : f32 to vector<8x128xf32>
    %276 = arith.mulf %275, %175 : vector<8x128xf32>
    %277 = arith.addf %273, %276 : vector<8x128xf32>
    %c2_115 = arith.constant 2 : index
    %c3_116 = arith.constant 3 : index
    %278 = memref.load %arg5[%c2_115, %c3_116] : memref<9x9xf32, #tpu.memory_space<smem>>
    %279 = vector.broadcast %278 : f32 to vector<8x128xf32>
    %280 = arith.mulf %279, %178 : vector<8x128xf32>
    %281 = arith.addf %277, %280 : vector<8x128xf32>
    %c2_117 = arith.constant 2 : index
    %c4_118 = arith.constant 4 : index
    %282 = memref.load %arg5[%c2_117, %c4_118] : memref<9x9xf32, #tpu.memory_space<smem>>
    %283 = vector.broadcast %282 : f32 to vector<8x128xf32>
    %284 = arith.mulf %283, %150 : vector<8x128xf32>
    %285 = arith.addf %281, %284 : vector<8x128xf32>
    %c2_119 = arith.constant 2 : index
    %c5_120 = arith.constant 5 : index
    %286 = memref.load %arg5[%c2_119, %c5_120] : memref<9x9xf32, #tpu.memory_space<smem>>
    %287 = vector.broadcast %286 : f32 to vector<8x128xf32>
    %288 = arith.mulf %287, %181 : vector<8x128xf32>
    %289 = arith.addf %285, %288 : vector<8x128xf32>
    %c2_121 = arith.constant 2 : index
    %c6_122 = arith.constant 6 : index
    %290 = memref.load %arg5[%c2_121, %c6_122] : memref<9x9xf32, #tpu.memory_space<smem>>
    %291 = vector.broadcast %290 : f32 to vector<8x128xf32>
    %292 = arith.mulf %291, %184 : vector<8x128xf32>
    %293 = arith.addf %289, %292 : vector<8x128xf32>
    %c2_123 = arith.constant 2 : index
    %c7_124 = arith.constant 7 : index
    %294 = memref.load %arg5[%c2_123, %c7_124] : memref<9x9xf32, #tpu.memory_space<smem>>
    %295 = vector.broadcast %294 : f32 to vector<8x128xf32>
    %296 = arith.mulf %295, %169 : vector<8x128xf32>
    %297 = arith.addf %293, %296 : vector<8x128xf32>
    %c2_125 = arith.constant 2 : index
    %c8_126 = arith.constant 8 : index
    %298 = memref.load %arg5[%c2_125, %c8_126] : memref<9x9xf32, #tpu.memory_space<smem>>
    %299 = vector.broadcast %298 : f32 to vector<8x128xf32>
    %300 = arith.mulf %299, %187 : vector<8x128xf32>
    %301 = arith.addf %297, %300 : vector<8x128xf32>
    %c3_127 = arith.constant 3 : index
    %302 = memref.load %arg6[%c3_127] : memref<9xf32, #tpu.memory_space<smem>>
    %303 = vector.broadcast %302 : f32 to vector<8x128xf32>
    %c3_128 = arith.constant 3 : index
    %c0_129 = arith.constant 0 : index
    %304 = memref.load %arg5[%c3_128, %c0_129] : memref<9x9xf32, #tpu.memory_space<smem>>
    %305 = vector.broadcast %304 : f32 to vector<8x128xf32>
    %306 = arith.mulf %305, %172 : vector<8x128xf32>
    %307 = arith.addf %303, %306 : vector<8x128xf32>
    %c3_130 = arith.constant 3 : index
    %c1_131 = arith.constant 1 : index
    %308 = memref.load %arg5[%c3_130, %c1_131] : memref<9x9xf32, #tpu.memory_space<smem>>
    %309 = vector.broadcast %308 : f32 to vector<8x128xf32>
    %310 = arith.mulf %309, %131 : vector<8x128xf32>
    %311 = arith.addf %307, %310 : vector<8x128xf32>
    %c3_132 = arith.constant 3 : index
    %c2_133 = arith.constant 2 : index
    %312 = memref.load %arg5[%c3_132, %c2_133] : memref<9x9xf32, #tpu.memory_space<smem>>
    %313 = vector.broadcast %312 : f32 to vector<8x128xf32>
    %314 = arith.mulf %313, %175 : vector<8x128xf32>
    %315 = arith.addf %311, %314 : vector<8x128xf32>
    %c3_134 = arith.constant 3 : index
    %c3_135 = arith.constant 3 : index
    %316 = memref.load %arg5[%c3_134, %c3_135] : memref<9x9xf32, #tpu.memory_space<smem>>
    %317 = vector.broadcast %316 : f32 to vector<8x128xf32>
    %318 = arith.mulf %317, %178 : vector<8x128xf32>
    %319 = arith.addf %315, %318 : vector<8x128xf32>
    %c3_136 = arith.constant 3 : index
    %c4_137 = arith.constant 4 : index
    %320 = memref.load %arg5[%c3_136, %c4_137] : memref<9x9xf32, #tpu.memory_space<smem>>
    %321 = vector.broadcast %320 : f32 to vector<8x128xf32>
    %322 = arith.mulf %321, %150 : vector<8x128xf32>
    %323 = arith.addf %319, %322 : vector<8x128xf32>
    %c3_138 = arith.constant 3 : index
    %c5_139 = arith.constant 5 : index
    %324 = memref.load %arg5[%c3_138, %c5_139] : memref<9x9xf32, #tpu.memory_space<smem>>
    %325 = vector.broadcast %324 : f32 to vector<8x128xf32>
    %326 = arith.mulf %325, %181 : vector<8x128xf32>
    %327 = arith.addf %323, %326 : vector<8x128xf32>
    %c3_140 = arith.constant 3 : index
    %c6_141 = arith.constant 6 : index
    %328 = memref.load %arg5[%c3_140, %c6_141] : memref<9x9xf32, #tpu.memory_space<smem>>
    %329 = vector.broadcast %328 : f32 to vector<8x128xf32>
    %330 = arith.mulf %329, %184 : vector<8x128xf32>
    %331 = arith.addf %327, %330 : vector<8x128xf32>
    %c3_142 = arith.constant 3 : index
    %c7_143 = arith.constant 7 : index
    %332 = memref.load %arg5[%c3_142, %c7_143] : memref<9x9xf32, #tpu.memory_space<smem>>
    %333 = vector.broadcast %332 : f32 to vector<8x128xf32>
    %334 = arith.mulf %333, %169 : vector<8x128xf32>
    %335 = arith.addf %331, %334 : vector<8x128xf32>
    %c3_144 = arith.constant 3 : index
    %c8_145 = arith.constant 8 : index
    %336 = memref.load %arg5[%c3_144, %c8_145] : memref<9x9xf32, #tpu.memory_space<smem>>
    %337 = vector.broadcast %336 : f32 to vector<8x128xf32>
    %338 = arith.mulf %337, %187 : vector<8x128xf32>
    %339 = arith.addf %335, %338 : vector<8x128xf32>
    %c4_146 = arith.constant 4 : index
    %340 = memref.load %arg6[%c4_146] : memref<9xf32, #tpu.memory_space<smem>>
    %341 = vector.broadcast %340 : f32 to vector<8x128xf32>
    %c4_147 = arith.constant 4 : index
    %c0_148 = arith.constant 0 : index
    %342 = memref.load %arg5[%c4_147, %c0_148] : memref<9x9xf32, #tpu.memory_space<smem>>
    %343 = vector.broadcast %342 : f32 to vector<8x128xf32>
    %344 = arith.mulf %343, %172 : vector<8x128xf32>
    %345 = arith.addf %341, %344 : vector<8x128xf32>
    %c4_149 = arith.constant 4 : index
    %c1_150 = arith.constant 1 : index
    %346 = memref.load %arg5[%c4_149, %c1_150] : memref<9x9xf32, #tpu.memory_space<smem>>
    %347 = vector.broadcast %346 : f32 to vector<8x128xf32>
    %348 = arith.mulf %347, %131 : vector<8x128xf32>
    %349 = arith.addf %345, %348 : vector<8x128xf32>
    %c4_151 = arith.constant 4 : index
    %c2_152 = arith.constant 2 : index
    %350 = memref.load %arg5[%c4_151, %c2_152] : memref<9x9xf32, #tpu.memory_space<smem>>
    %351 = vector.broadcast %350 : f32 to vector<8x128xf32>
    %352 = arith.mulf %351, %175 : vector<8x128xf32>
    %353 = arith.addf %349, %352 : vector<8x128xf32>
    %c4_153 = arith.constant 4 : index
    %c3_154 = arith.constant 3 : index
    %354 = memref.load %arg5[%c4_153, %c3_154] : memref<9x9xf32, #tpu.memory_space<smem>>
    %355 = vector.broadcast %354 : f32 to vector<8x128xf32>
    %356 = arith.mulf %355, %178 : vector<8x128xf32>
    %357 = arith.addf %353, %356 : vector<8x128xf32>
    %c4_155 = arith.constant 4 : index
    %c4_156 = arith.constant 4 : index
    %358 = memref.load %arg5[%c4_155, %c4_156] : memref<9x9xf32, #tpu.memory_space<smem>>
    %359 = vector.broadcast %358 : f32 to vector<8x128xf32>
    %360 = arith.mulf %359, %150 : vector<8x128xf32>
    %361 = arith.addf %357, %360 : vector<8x128xf32>
    %c4_157 = arith.constant 4 : index
    %c5_158 = arith.constant 5 : index
    %362 = memref.load %arg5[%c4_157, %c5_158] : memref<9x9xf32, #tpu.memory_space<smem>>
    %363 = vector.broadcast %362 : f32 to vector<8x128xf32>
    %364 = arith.mulf %363, %181 : vector<8x128xf32>
    %365 = arith.addf %361, %364 : vector<8x128xf32>
    %c4_159 = arith.constant 4 : index
    %c6_160 = arith.constant 6 : index
    %366 = memref.load %arg5[%c4_159, %c6_160] : memref<9x9xf32, #tpu.memory_space<smem>>
    %367 = vector.broadcast %366 : f32 to vector<8x128xf32>
    %368 = arith.mulf %367, %184 : vector<8x128xf32>
    %369 = arith.addf %365, %368 : vector<8x128xf32>
    %c4_161 = arith.constant 4 : index
    %c7_162 = arith.constant 7 : index
    %370 = memref.load %arg5[%c4_161, %c7_162] : memref<9x9xf32, #tpu.memory_space<smem>>
    %371 = vector.broadcast %370 : f32 to vector<8x128xf32>
    %372 = arith.mulf %371, %169 : vector<8x128xf32>
    %373 = arith.addf %369, %372 : vector<8x128xf32>
    %c4_163 = arith.constant 4 : index
    %c8_164 = arith.constant 8 : index
    %374 = memref.load %arg5[%c4_163, %c8_164] : memref<9x9xf32, #tpu.memory_space<smem>>
    %375 = vector.broadcast %374 : f32 to vector<8x128xf32>
    %376 = arith.mulf %375, %187 : vector<8x128xf32>
    %377 = arith.addf %373, %376 : vector<8x128xf32>
    %c5_165 = arith.constant 5 : index
    %378 = memref.load %arg6[%c5_165] : memref<9xf32, #tpu.memory_space<smem>>
    %379 = vector.broadcast %378 : f32 to vector<8x128xf32>
    %c5_166 = arith.constant 5 : index
    %c0_167 = arith.constant 0 : index
    %380 = memref.load %arg5[%c5_166, %c0_167] : memref<9x9xf32, #tpu.memory_space<smem>>
    %381 = vector.broadcast %380 : f32 to vector<8x128xf32>
    %382 = arith.mulf %381, %172 : vector<8x128xf32>
    %383 = arith.addf %379, %382 : vector<8x128xf32>
    %c5_168 = arith.constant 5 : index
    %c1_169 = arith.constant 1 : index
    %384 = memref.load %arg5[%c5_168, %c1_169] : memref<9x9xf32, #tpu.memory_space<smem>>
    %385 = vector.broadcast %384 : f32 to vector<8x128xf32>
    %386 = arith.mulf %385, %131 : vector<8x128xf32>
    %387 = arith.addf %383, %386 : vector<8x128xf32>
    %c5_170 = arith.constant 5 : index
    %c2_171 = arith.constant 2 : index
    %388 = memref.load %arg5[%c5_170, %c2_171] : memref<9x9xf32, #tpu.memory_space<smem>>
    %389 = vector.broadcast %388 : f32 to vector<8x128xf32>
    %390 = arith.mulf %389, %175 : vector<8x128xf32>
    %391 = arith.addf %387, %390 : vector<8x128xf32>
    %c5_172 = arith.constant 5 : index
    %c3_173 = arith.constant 3 : index
    %392 = memref.load %arg5[%c5_172, %c3_173] : memref<9x9xf32, #tpu.memory_space<smem>>
    %393 = vector.broadcast %392 : f32 to vector<8x128xf32>
    %394 = arith.mulf %393, %178 : vector<8x128xf32>
    %395 = arith.addf %391, %394 : vector<8x128xf32>
    %c5_174 = arith.constant 5 : index
    %c4_175 = arith.constant 4 : index
    %396 = memref.load %arg5[%c5_174, %c4_175] : memref<9x9xf32, #tpu.memory_space<smem>>
    %397 = vector.broadcast %396 : f32 to vector<8x128xf32>
    %398 = arith.mulf %397, %150 : vector<8x128xf32>
    %399 = arith.addf %395, %398 : vector<8x128xf32>
    %c5_176 = arith.constant 5 : index
    %c5_177 = arith.constant 5 : index
    %400 = memref.load %arg5[%c5_176, %c5_177] : memref<9x9xf32, #tpu.memory_space<smem>>
    %401 = vector.broadcast %400 : f32 to vector<8x128xf32>
    %402 = arith.mulf %401, %181 : vector<8x128xf32>
    %403 = arith.addf %399, %402 : vector<8x128xf32>
    %c5_178 = arith.constant 5 : index
    %c6_179 = arith.constant 6 : index
    %404 = memref.load %arg5[%c5_178, %c6_179] : memref<9x9xf32, #tpu.memory_space<smem>>
    %405 = vector.broadcast %404 : f32 to vector<8x128xf32>
    %406 = arith.mulf %405, %184 : vector<8x128xf32>
    %407 = arith.addf %403, %406 : vector<8x128xf32>
    %c5_180 = arith.constant 5 : index
    %c7_181 = arith.constant 7 : index
    %408 = memref.load %arg5[%c5_180, %c7_181] : memref<9x9xf32, #tpu.memory_space<smem>>
    %409 = vector.broadcast %408 : f32 to vector<8x128xf32>
    %410 = arith.mulf %409, %169 : vector<8x128xf32>
    %411 = arith.addf %407, %410 : vector<8x128xf32>
    %c5_182 = arith.constant 5 : index
    %c8_183 = arith.constant 8 : index
    %412 = memref.load %arg5[%c5_182, %c8_183] : memref<9x9xf32, #tpu.memory_space<smem>>
    %413 = vector.broadcast %412 : f32 to vector<8x128xf32>
    %414 = arith.mulf %413, %187 : vector<8x128xf32>
    %415 = arith.addf %411, %414 : vector<8x128xf32>
    %c6_184 = arith.constant 6 : index
    %416 = memref.load %arg6[%c6_184] : memref<9xf32, #tpu.memory_space<smem>>
    %417 = vector.broadcast %416 : f32 to vector<8x128xf32>
    %c6_185 = arith.constant 6 : index
    %c0_186 = arith.constant 0 : index
    %418 = memref.load %arg5[%c6_185, %c0_186] : memref<9x9xf32, #tpu.memory_space<smem>>
    %419 = vector.broadcast %418 : f32 to vector<8x128xf32>
    %420 = arith.mulf %419, %172 : vector<8x128xf32>
    %421 = arith.addf %417, %420 : vector<8x128xf32>
    %c6_187 = arith.constant 6 : index
    %c1_188 = arith.constant 1 : index
    %422 = memref.load %arg5[%c6_187, %c1_188] : memref<9x9xf32, #tpu.memory_space<smem>>
    %423 = vector.broadcast %422 : f32 to vector<8x128xf32>
    %424 = arith.mulf %423, %131 : vector<8x128xf32>
    %425 = arith.addf %421, %424 : vector<8x128xf32>
    %c6_189 = arith.constant 6 : index
    %c2_190 = arith.constant 2 : index
    %426 = memref.load %arg5[%c6_189, %c2_190] : memref<9x9xf32, #tpu.memory_space<smem>>
    %427 = vector.broadcast %426 : f32 to vector<8x128xf32>
    %428 = arith.mulf %427, %175 : vector<8x128xf32>
    %429 = arith.addf %425, %428 : vector<8x128xf32>
    %c6_191 = arith.constant 6 : index
    %c3_192 = arith.constant 3 : index
    %430 = memref.load %arg5[%c6_191, %c3_192] : memref<9x9xf32, #tpu.memory_space<smem>>
    %431 = vector.broadcast %430 : f32 to vector<8x128xf32>
    %432 = arith.mulf %431, %178 : vector<8x128xf32>
    %433 = arith.addf %429, %432 : vector<8x128xf32>
    %c6_193 = arith.constant 6 : index
    %c4_194 = arith.constant 4 : index
    %434 = memref.load %arg5[%c6_193, %c4_194] : memref<9x9xf32, #tpu.memory_space<smem>>
    %435 = vector.broadcast %434 : f32 to vector<8x128xf32>
    %436 = arith.mulf %435, %150 : vector<8x128xf32>
    %437 = arith.addf %433, %436 : vector<8x128xf32>
    %c6_195 = arith.constant 6 : index
    %c5_196 = arith.constant 5 : index
    %438 = memref.load %arg5[%c6_195, %c5_196] : memref<9x9xf32, #tpu.memory_space<smem>>
    %439 = vector.broadcast %438 : f32 to vector<8x128xf32>
    %440 = arith.mulf %439, %181 : vector<8x128xf32>
    %441 = arith.addf %437, %440 : vector<8x128xf32>
    %c6_197 = arith.constant 6 : index
    %c6_198 = arith.constant 6 : index
    %442 = memref.load %arg5[%c6_197, %c6_198] : memref<9x9xf32, #tpu.memory_space<smem>>
    %443 = vector.broadcast %442 : f32 to vector<8x128xf32>
    %444 = arith.mulf %443, %184 : vector<8x128xf32>
    %445 = arith.addf %441, %444 : vector<8x128xf32>
    %c6_199 = arith.constant 6 : index
    %c7_200 = arith.constant 7 : index
    %446 = memref.load %arg5[%c6_199, %c7_200] : memref<9x9xf32, #tpu.memory_space<smem>>
    %447 = vector.broadcast %446 : f32 to vector<8x128xf32>
    %448 = arith.mulf %447, %169 : vector<8x128xf32>
    %449 = arith.addf %445, %448 : vector<8x128xf32>
    %c6_201 = arith.constant 6 : index
    %c8_202 = arith.constant 8 : index
    %450 = memref.load %arg5[%c6_201, %c8_202] : memref<9x9xf32, #tpu.memory_space<smem>>
    %451 = vector.broadcast %450 : f32 to vector<8x128xf32>
    %452 = arith.mulf %451, %187 : vector<8x128xf32>
    %453 = arith.addf %449, %452 : vector<8x128xf32>
    %c7_203 = arith.constant 7 : index
    %454 = memref.load %arg6[%c7_203] : memref<9xf32, #tpu.memory_space<smem>>
    %455 = vector.broadcast %454 : f32 to vector<8x128xf32>
    %c7_204 = arith.constant 7 : index
    %c0_205 = arith.constant 0 : index
    %456 = memref.load %arg5[%c7_204, %c0_205] : memref<9x9xf32, #tpu.memory_space<smem>>
    %457 = vector.broadcast %456 : f32 to vector<8x128xf32>
    %458 = arith.mulf %457, %172 : vector<8x128xf32>
    %459 = arith.addf %455, %458 : vector<8x128xf32>
    %c7_206 = arith.constant 7 : index
    %c1_207 = arith.constant 1 : index
    %460 = memref.load %arg5[%c7_206, %c1_207] : memref<9x9xf32, #tpu.memory_space<smem>>
    %461 = vector.broadcast %460 : f32 to vector<8x128xf32>
    %462 = arith.mulf %461, %131 : vector<8x128xf32>
    %463 = arith.addf %459, %462 : vector<8x128xf32>
    %c7_208 = arith.constant 7 : index
    %c2_209 = arith.constant 2 : index
    %464 = memref.load %arg5[%c7_208, %c2_209] : memref<9x9xf32, #tpu.memory_space<smem>>
    %465 = vector.broadcast %464 : f32 to vector<8x128xf32>
    %466 = arith.mulf %465, %175 : vector<8x128xf32>
    %467 = arith.addf %463, %466 : vector<8x128xf32>
    %c7_210 = arith.constant 7 : index
    %c3_211 = arith.constant 3 : index
    %468 = memref.load %arg5[%c7_210, %c3_211] : memref<9x9xf32, #tpu.memory_space<smem>>
    %469 = vector.broadcast %468 : f32 to vector<8x128xf32>
    %470 = arith.mulf %469, %178 : vector<8x128xf32>
    %471 = arith.addf %467, %470 : vector<8x128xf32>
    %c7_212 = arith.constant 7 : index
    %c4_213 = arith.constant 4 : index
    %472 = memref.load %arg5[%c7_212, %c4_213] : memref<9x9xf32, #tpu.memory_space<smem>>
    %473 = vector.broadcast %472 : f32 to vector<8x128xf32>
    %474 = arith.mulf %473, %150 : vector<8x128xf32>
    %475 = arith.addf %471, %474 : vector<8x128xf32>
    %c7_214 = arith.constant 7 : index
    %c5_215 = arith.constant 5 : index
    %476 = memref.load %arg5[%c7_214, %c5_215] : memref<9x9xf32, #tpu.memory_space<smem>>
    %477 = vector.broadcast %476 : f32 to vector<8x128xf32>
    %478 = arith.mulf %477, %181 : vector<8x128xf32>
    %479 = arith.addf %475, %478 : vector<8x128xf32>
    %c7_216 = arith.constant 7 : index
    %c6_217 = arith.constant 6 : index
    %480 = memref.load %arg5[%c7_216, %c6_217] : memref<9x9xf32, #tpu.memory_space<smem>>
    %481 = vector.broadcast %480 : f32 to vector<8x128xf32>
    %482 = arith.mulf %481, %184 : vector<8x128xf32>
    %483 = arith.addf %479, %482 : vector<8x128xf32>
    %c7_218 = arith.constant 7 : index
    %c7_219 = arith.constant 7 : index
    %484 = memref.load %arg5[%c7_218, %c7_219] : memref<9x9xf32, #tpu.memory_space<smem>>
    %485 = vector.broadcast %484 : f32 to vector<8x128xf32>
    %486 = arith.mulf %485, %169 : vector<8x128xf32>
    %487 = arith.addf %483, %486 : vector<8x128xf32>
    %c7_220 = arith.constant 7 : index
    %c8_221 = arith.constant 8 : index
    %488 = memref.load %arg5[%c7_220, %c8_221] : memref<9x9xf32, #tpu.memory_space<smem>>
    %489 = vector.broadcast %488 : f32 to vector<8x128xf32>
    %490 = arith.mulf %489, %187 : vector<8x128xf32>
    %491 = arith.addf %487, %490 : vector<8x128xf32>
    %c8_222 = arith.constant 8 : index
    %492 = memref.load %arg6[%c8_222] : memref<9xf32, #tpu.memory_space<smem>>
    %493 = vector.broadcast %492 : f32 to vector<8x128xf32>
    %c8_223 = arith.constant 8 : index
    %c0_224 = arith.constant 0 : index
    %494 = memref.load %arg5[%c8_223, %c0_224] : memref<9x9xf32, #tpu.memory_space<smem>>
    %495 = vector.broadcast %494 : f32 to vector<8x128xf32>
    %496 = arith.mulf %495, %172 : vector<8x128xf32>
    %497 = arith.addf %493, %496 : vector<8x128xf32>
    %c8_225 = arith.constant 8 : index
    %c1_226 = arith.constant 1 : index
    %498 = memref.load %arg5[%c8_225, %c1_226] : memref<9x9xf32, #tpu.memory_space<smem>>
    %499 = vector.broadcast %498 : f32 to vector<8x128xf32>
    %500 = arith.mulf %499, %131 : vector<8x128xf32>
    %501 = arith.addf %497, %500 : vector<8x128xf32>
    %c8_227 = arith.constant 8 : index
    %c2_228 = arith.constant 2 : index
    %502 = memref.load %arg5[%c8_227, %c2_228] : memref<9x9xf32, #tpu.memory_space<smem>>
    %503 = vector.broadcast %502 : f32 to vector<8x128xf32>
    %504 = arith.mulf %503, %175 : vector<8x128xf32>
    %505 = arith.addf %501, %504 : vector<8x128xf32>
    %c8_229 = arith.constant 8 : index
    %c3_230 = arith.constant 3 : index
    %506 = memref.load %arg5[%c8_229, %c3_230] : memref<9x9xf32, #tpu.memory_space<smem>>
    %507 = vector.broadcast %506 : f32 to vector<8x128xf32>
    %508 = arith.mulf %507, %178 : vector<8x128xf32>
    %509 = arith.addf %505, %508 : vector<8x128xf32>
    %c8_231 = arith.constant 8 : index
    %c4_232 = arith.constant 4 : index
    %510 = memref.load %arg5[%c8_231, %c4_232] : memref<9x9xf32, #tpu.memory_space<smem>>
    %511 = vector.broadcast %510 : f32 to vector<8x128xf32>
    %512 = arith.mulf %511, %150 : vector<8x128xf32>
    %513 = arith.addf %509, %512 : vector<8x128xf32>
    %c8_233 = arith.constant 8 : index
    %c5_234 = arith.constant 5 : index
    %514 = memref.load %arg5[%c8_233, %c5_234] : memref<9x9xf32, #tpu.memory_space<smem>>
    %515 = vector.broadcast %514 : f32 to vector<8x128xf32>
    %516 = arith.mulf %515, %181 : vector<8x128xf32>
    %517 = arith.addf %513, %516 : vector<8x128xf32>
    %c8_235 = arith.constant 8 : index
    %c6_236 = arith.constant 6 : index
    %518 = memref.load %arg5[%c8_235, %c6_236] : memref<9x9xf32, #tpu.memory_space<smem>>
    %519 = vector.broadcast %518 : f32 to vector<8x128xf32>
    %520 = arith.mulf %519, %184 : vector<8x128xf32>
    %521 = arith.addf %517, %520 : vector<8x128xf32>
    %c8_237 = arith.constant 8 : index
    %c7_238 = arith.constant 7 : index
    %522 = memref.load %arg5[%c8_237, %c7_238] : memref<9x9xf32, #tpu.memory_space<smem>>
    %523 = vector.broadcast %522 : f32 to vector<8x128xf32>
    %524 = arith.mulf %523, %169 : vector<8x128xf32>
    %525 = arith.addf %521, %524 : vector<8x128xf32>
    %c8_239 = arith.constant 8 : index
    %c8_240 = arith.constant 8 : index
    %526 = memref.load %arg5[%c8_239, %c8_240] : memref<9x9xf32, #tpu.memory_space<smem>>
    %527 = vector.broadcast %526 : f32 to vector<8x128xf32>
    %528 = arith.mulf %527, %187 : vector<8x128xf32>
    %529 = arith.addf %525, %528 : vector<8x128xf32>
    %cst_241 = arith.constant 5.000000e-01 : f32
    %530 = vector.broadcast %cst_241 : f32 to vector<8x128xf32>
    %531 = arith.mulf %530, %225 : vector<8x128xf32>
    %532 = math.tanh %531 : vector<8x128xf32>
    %cst_242 = arith.constant 5.000000e-01 : f32
    %533 = vector.broadcast %cst_242 : f32 to vector<8x128xf32>
    %534 = arith.mulf %533, %532 : vector<8x128xf32>
    %cst_243 = arith.constant 5.000000e-01 : f32
    %535 = vector.broadcast %cst_243 : f32 to vector<8x128xf32>
    %536 = arith.addf %534, %535 : vector<8x128xf32>
    %cst_244 = arith.constant 5.000000e-01 : f32
    %537 = vector.broadcast %cst_244 : f32 to vector<8x128xf32>
    %538 = arith.mulf %537, %263 : vector<8x128xf32>
    %539 = math.tanh %538 : vector<8x128xf32>
    %cst_245 = arith.constant 5.000000e-01 : f32
    %540 = vector.broadcast %cst_245 : f32 to vector<8x128xf32>
    %541 = arith.mulf %540, %539 : vector<8x128xf32>
    %cst_246 = arith.constant 5.000000e-01 : f32
    %542 = vector.broadcast %cst_246 : f32 to vector<8x128xf32>
    %543 = arith.addf %541, %542 : vector<8x128xf32>
    %cst_247 = arith.constant 5.000000e-01 : f32
    %544 = vector.broadcast %cst_247 : f32 to vector<8x128xf32>
    %545 = arith.mulf %544, %301 : vector<8x128xf32>
    %546 = math.tanh %545 : vector<8x128xf32>
    %cst_248 = arith.constant 5.000000e-01 : f32
    %547 = vector.broadcast %cst_248 : f32 to vector<8x128xf32>
    %548 = arith.mulf %547, %546 : vector<8x128xf32>
    %cst_249 = arith.constant 5.000000e-01 : f32
    %549 = vector.broadcast %cst_249 : f32 to vector<8x128xf32>
    %550 = arith.addf %548, %549 : vector<8x128xf32>
    %cst_250 = arith.constant 5.000000e-01 : f32
    %551 = vector.broadcast %cst_250 : f32 to vector<8x128xf32>
    %552 = arith.mulf %551, %339 : vector<8x128xf32>
    %553 = math.tanh %552 : vector<8x128xf32>
    %cst_251 = arith.constant 5.000000e-01 : f32
    %554 = vector.broadcast %cst_251 : f32 to vector<8x128xf32>
    %555 = arith.mulf %554, %553 : vector<8x128xf32>
    %cst_252 = arith.constant 5.000000e-01 : f32
    %556 = vector.broadcast %cst_252 : f32 to vector<8x128xf32>
    %557 = arith.addf %555, %556 : vector<8x128xf32>
    %cst_253 = arith.constant 5.000000e-01 : f32
    %558 = vector.broadcast %cst_253 : f32 to vector<8x128xf32>
    %559 = arith.mulf %558, %377 : vector<8x128xf32>
    %560 = math.tanh %559 : vector<8x128xf32>
    %cst_254 = arith.constant 5.000000e-01 : f32
    %561 = vector.broadcast %cst_254 : f32 to vector<8x128xf32>
    %562 = arith.mulf %561, %560 : vector<8x128xf32>
    %cst_255 = arith.constant 5.000000e-01 : f32
    %563 = vector.broadcast %cst_255 : f32 to vector<8x128xf32>
    %564 = arith.addf %562, %563 : vector<8x128xf32>
    %cst_256 = arith.constant 5.000000e-01 : f32
    %565 = vector.broadcast %cst_256 : f32 to vector<8x128xf32>
    %566 = arith.mulf %565, %415 : vector<8x128xf32>
    %567 = math.tanh %566 : vector<8x128xf32>
    %cst_257 = arith.constant 5.000000e-01 : f32
    %568 = vector.broadcast %cst_257 : f32 to vector<8x128xf32>
    %569 = arith.mulf %568, %567 : vector<8x128xf32>
    %cst_258 = arith.constant 5.000000e-01 : f32
    %570 = vector.broadcast %cst_258 : f32 to vector<8x128xf32>
    %571 = arith.addf %569, %570 : vector<8x128xf32>
    %cst_259 = arith.constant 5.000000e-01 : f32
    %572 = vector.broadcast %cst_259 : f32 to vector<8x128xf32>
    %573 = arith.mulf %572, %453 : vector<8x128xf32>
    %574 = math.tanh %573 : vector<8x128xf32>
    %cst_260 = arith.constant 5.000000e-01 : f32
    %575 = vector.broadcast %cst_260 : f32 to vector<8x128xf32>
    %576 = arith.mulf %575, %574 : vector<8x128xf32>
    %cst_261 = arith.constant 5.000000e-01 : f32
    %577 = vector.broadcast %cst_261 : f32 to vector<8x128xf32>
    %578 = arith.addf %576, %577 : vector<8x128xf32>
    %cst_262 = arith.constant 5.000000e-01 : f32
    %579 = vector.broadcast %cst_262 : f32 to vector<8x128xf32>
    %580 = arith.mulf %579, %491 : vector<8x128xf32>
    %581 = math.tanh %580 : vector<8x128xf32>
    %cst_263 = arith.constant 5.000000e-01 : f32
    %582 = vector.broadcast %cst_263 : f32 to vector<8x128xf32>
    %583 = arith.mulf %582, %581 : vector<8x128xf32>
    %cst_264 = arith.constant 5.000000e-01 : f32
    %584 = vector.broadcast %cst_264 : f32 to vector<8x128xf32>
    %585 = arith.addf %583, %584 : vector<8x128xf32>
    %cst_265 = arith.constant 5.000000e-01 : f32
    %586 = vector.broadcast %cst_265 : f32 to vector<8x128xf32>
    %587 = arith.mulf %586, %529 : vector<8x128xf32>
    %588 = math.tanh %587 : vector<8x128xf32>
    %cst_266 = arith.constant 5.000000e-01 : f32
    %589 = vector.broadcast %cst_266 : f32 to vector<8x128xf32>
    %590 = arith.mulf %589, %588 : vector<8x128xf32>
    %cst_267 = arith.constant 5.000000e-01 : f32
    %591 = vector.broadcast %cst_267 : f32 to vector<8x128xf32>
    %592 = arith.addf %590, %591 : vector<8x128xf32>
    %593 = tpu.concatenate %536, %543, %550, %557, %564, %571, %578, %585, %592 in 1 : vector<8x128xf32>, vector<8x128xf32>, vector<8x128xf32>, vector<8x128xf32>, vector<8x128xf32>, vector<8x128xf32>, vector<8x128xf32>, vector<8x128xf32>, vector<8x128xf32> -> vector<8x1152xf32>
    %c0_i32_268 = arith.constant 0 : i32
    %594 = tpu.memref_slice %arg16[%c0_i32_268] : memref<2x!tpu.dma_semaphore, #tpu.memory_space<semaphore_mem>> -> memref<1x!tpu.dma_semaphore, #tpu.memory_space<semaphore_mem>>
    %595 = tpu.memref_squeeze %594 : memref<1x!tpu.dma_semaphore, #tpu.memory_space<semaphore_mem>> -> memref<!tpu.dma_semaphore, #tpu.memory_space<semaphore_mem>>
    tpu.wait_dma2 semaphore(%595 : memref<!tpu.dma_semaphore, #tpu.memory_space<semaphore_mem>>) src(%arg7 : memref<1152x384xbf16, #tpu.memory_space<any>>) dst(%arg14 : memref<1152x384xbf16, #tpu.memory_space<vmem>>)
    %596 = arith.truncf %593 : vector<8x1152xf32> to vector<8x1152xbf16>
    %c0_269 = arith.constant 0 : index
    %c0_270 = arith.constant 0 : index
    %597 = vector.load %arg14[%c0_269, %c0_270] : memref<1152x384xbf16, #tpu.memory_space<vmem>>, vector<1152x384xbf16>
    %cst_271 = arith.constant dense<0.000000e+00> : vector<8x384xf32>
    %598 = tpu.matmul %596, %597, %cst_271 {dimension_numbers = #tpu.dot_dimension_numbers<[1], [0], [0], [1], [0, 0, 1, 1], [], []>} : vector<8x1152xbf16>, vector<1152x384xbf16>, vector<8x384xf32> -> vector<8x384xf32>
    %c0_272 = arith.constant 0 : index
    %c0_273 = arith.constant 0 : index
    %599 = vector.load %arg8[%c0_272, %c0_273] : memref<1x384xf32, #tpu.memory_space<vmem>>, vector<1x384xf32>
    %600 = vector.broadcast %599 : vector<1x384xf32> to vector<8x384xf32>
    %601 = arith.addf %598, %600 : vector<8x384xf32>
    %cst_274 = arith.constant 5.000000e-01 : f32
    %602 = vector.broadcast %cst_274 : f32 to vector<8x384xf32>
    %603 = arith.mulf %602, %601 : vector<8x384xf32>
    %604 = math.tanh %603 : vector<8x384xf32>
    %cst_275 = arith.constant 5.000000e-01 : f32
    %605 = vector.broadcast %cst_275 : f32 to vector<8x384xf32>
    %606 = arith.mulf %605, %604 : vector<8x384xf32>
    %cst_276 = arith.constant 5.000000e-01 : f32
    %607 = vector.broadcast %cst_276 : f32 to vector<8x384xf32>
    %608 = arith.addf %606, %607 : vector<8x384xf32>
    %cst_277 = arith.constant dense<0.000000e+00> : vector<384xf32>
    %609 = vector.multi_reduction <add>, %608, %cst_277 [0] : vector<8x384xf32> to vector<384xf32>
    %610 = vector.shape_cast %609 : vector<384xf32> to vector<1x384xf32>
    %611 = arith.mulf %608, %608 : vector<8x384xf32>
    %cst_278 = arith.constant dense<0.000000e+00> : vector<384xf32>
    %612 = vector.multi_reduction <add>, %611, %cst_278 [0] : vector<8x384xf32> to vector<384xf32>
    %613 = vector.shape_cast %612 : vector<384xf32> to vector<1x384xf32>
    %cst_279 = arith.constant 1.250000e-01 : f32
    %614 = vector.broadcast %cst_279 : f32 to vector<1x384xf32>
    %615 = arith.mulf %610, %614 : vector<1x384xf32>
    %cst_280 = arith.constant 1.250000e-01 : f32
    %616 = vector.broadcast %cst_280 : f32 to vector<1x384xf32>
    %617 = arith.mulf %613, %616 : vector<1x384xf32>
    %618 = arith.mulf %615, %615 : vector<1x384xf32>
    %619 = arith.subf %617, %618 : vector<1x384xf32>
    %620 = vector.broadcast %615 : vector<1x384xf32> to vector<8x384xf32>
    %621 = arith.subf %608, %620 : vector<8x384xf32>
    %cst_281 = arith.constant 9.99999974E-6 : f32
    %622 = vector.broadcast %cst_281 : f32 to vector<1x384xf32>
    %623 = arith.addf %619, %622 : vector<1x384xf32>
    %624 = math.rsqrt %623 : vector<1x384xf32>
    %625 = vector.broadcast %624 : vector<1x384xf32> to vector<8x384xf32>
    %626 = arith.mulf %621, %625 : vector<8x384xf32>
    %c1_i32_282 = arith.constant 1 : i32
    %627 = tpu.memref_slice %arg16[%c1_i32_282] : memref<2x!tpu.dma_semaphore, #tpu.memory_space<semaphore_mem>> -> memref<1x!tpu.dma_semaphore, #tpu.memory_space<semaphore_mem>>
    %628 = tpu.memref_squeeze %627 : memref<1x!tpu.dma_semaphore, #tpu.memory_space<semaphore_mem>> -> memref<!tpu.dma_semaphore, #tpu.memory_space<semaphore_mem>>
    tpu.wait_dma2 semaphore(%628 : memref<!tpu.dma_semaphore, #tpu.memory_space<semaphore_mem>>) src(%arg9 : memref<384x128xbf16, #tpu.memory_space<any>>) dst(%arg15 : memref<384x128xbf16, #tpu.memory_space<vmem>>)
    %629 = arith.truncf %626 : vector<8x384xf32> to vector<8x384xbf16>
    %c0_283 = arith.constant 0 : index
    %c0_284 = arith.constant 0 : index
    %630 = vector.load %arg15[%c0_283, %c0_284] : memref<384x128xbf16, #tpu.memory_space<vmem>>, vector<384x128xbf16>
    %cst_285 = arith.constant dense<0.000000e+00> : vector<8x128xf32>
    %631 = tpu.matmul %629, %630, %cst_285 {dimension_numbers = #tpu.dot_dimension_numbers<[1], [0], [0], [1], [0, 0, 1, 1], [], []>} : vector<8x384xbf16>, vector<384x128xbf16>, vector<8x128xf32> -> vector<8x128xf32>
    %c0_286 = arith.constant 0 : index
    %c0_287 = arith.constant 0 : index
    %632 = vector.load %arg10[%c0_286, %c0_287] : memref<1x128xf32, #tpu.memory_space<vmem>>, vector<1x128xf32>
    %633 = vector.broadcast %632 : vector<1x128xf32> to vector<8x128xf32>
    %634 = arith.addf %631, %633 : vector<8x128xf32>
    %cst_288 = arith.constant 5.000000e-01 : f32
    %635 = vector.broadcast %cst_288 : f32 to vector<8x128xf32>
    %636 = arith.mulf %635, %634 : vector<8x128xf32>
    %637 = math.tanh %636 : vector<8x128xf32>
    %cst_289 = arith.constant 5.000000e-01 : f32
    %638 = vector.broadcast %cst_289 : f32 to vector<8x128xf32>
    %639 = arith.mulf %638, %637 : vector<8x128xf32>
    %cst_290 = arith.constant 5.000000e-01 : f32
    %640 = vector.broadcast %cst_290 : f32 to vector<8x128xf32>
    %641 = arith.addf %639, %640 : vector<8x128xf32>
    %c0_291 = arith.constant 0 : index
    %c0_292 = arith.constant 0 : index
    %642 = vector.load %arg11[%c0_291, %c0_292] : memref<1x128xf32, #tpu.memory_space<vmem>>, vector<1x128xf32>
    %643 = vector.broadcast %642 : vector<1x128xf32> to vector<8x128xf32>
    %644 = arith.mulf %641, %643 : vector<8x128xf32>
    %cst_293 = arith.constant dense<0.000000e+00> : vector<8xf32>
    %645 = vector.multi_reduction <add>, %644, %cst_293 [1] : vector<8x128xf32> to vector<8xf32>
    %646 = vector.shape_cast %645 : vector<8xf32> to vector<8x1xf32>
    %c0_294 = arith.constant 0 : index
    %c0_295 = arith.constant 0 : index
    %647 = memref.load %arg12[%c0_294, %c0_295] : memref<1x1xf32, #tpu.memory_space<smem>>
    %648 = vector.broadcast %647 : f32 to vector<8x1xf32>
    %649 = arith.addf %646, %648 : vector<8x1xf32>
    %c0_296 = arith.constant 0 : index
    %c0_297 = arith.constant 0 : index
    %650 = vector.load %arg13[%c0_296, %c0_297] : memref<8x1xf32, #tpu.memory_space<vmem>>, vector<8x1xf32>
    tpu.vector_store %arg13[%c0_296, %c0_297], %649 {strides = array<i32>} : memref<8x1xf32, #tpu.memory_space<vmem>>, vector<8x1xf32>,
    return
  }
}

</mosaic_0001>

<bundles_post_ra>
// kernel: valuenet_forward.1
= control target key start
LH: loop header
LB: loop body
LE: loop exit
PB: predicated region body
PF: predicated region fallthrough
CT: control target
= control target key end

     0   :  { %s5324_s0 = inlined_call_operand.hbm [shape: f32[8,32], index: 0, kind: input, shape index: {}]   ;;  %s5325_s1 = inlined_call_operand.hbm [shape: bf16[32,128], index: 1, kind: input, shape index: {}]   ;;  %s5326_s2 = inlined_call_operand.hbm [shape: f32[1,128], index: 2, kind: input, shape index: {}]   ;;  %s5327_s3 = inlined_call_operand.vmem [shape: f32[3,3], index: 3, kind: input, shape index: {}]   ;;  %s5328_s4 = inlined_call_operand.hbm [shape: f32[3], index: 4, kind: input, shape index: {}]   ;;  %s5329_s5 = inlined_call_operand.hbm [shape: f32[9,9], index: 5, kind: input, shape index: {}]   ;;  %s5330_s6 = inlined_call_operand.vmem [shape: f32[9], index: 6, kind: input, shape index: {}]   ;;  %s5331_s7 = inlined_call_operand.hbm [shape: bf16[1152,384], index: 7, kind: input, shape index: {}]   ;;  %s5332_s8 = inlined_call_operand.vmem [shape: f32[1,384], index: 8, kind: input, shape index: {}]   ;;  %s5333_s9 = inlined_call_operand.hbm [shape: bf16[384,128], index: 9, kind: input, shape index: {}]   ;;  %s5334_s10 = inlined_call_operand.hbm [shape: f32[1,128], index: 10, kind: input, shape index: {}]   ;;  %s5335_s11 = inlined_call_operand.vmem [shape: f32[1,128], index: 11, kind: input, shape index: {}]   ;;  %s5336_s12 = inlined_call_operand.<no memory space> [shape: f32[1,1], index: 12, kind: input, shape index: {}]   ;;  %s5337_s13 = inlined_call_operand.vmem [shape: f32[8,1], index: 13, kind: output, shape index: {}]  }
   0x1   :  { %5341 = sst [smem:[#allocation48_spill]] %s5331_s7 }
   0x2   :  { %5342 = sst [smem:[#allocation49_spill]] %s5332_s8 }
   0x3   :  { %5343 = sst [smem:[#allocation50_spill]] %s5333_s9 }
   0x4   :  { %5344 = sst [smem:[#allocation51_spill]] %s5335_s11 }
   0x5   :  { %5345 = sst [smem:[#allocation52_spill]] %s5336_s12 }
   0x6   :  { %5346 = sst [smem:[#allocation53_spill]] %s5337_s13 }
   0x7   :  { %19 = vsyncpa [#allocation7], 0 }
   0x8   :  { %20 = vsyncpa [#allocation11], 0 }
   0x9   :  { %21 = vsyncpa [#allocation9], 0 }
   0xa   :  { %22 = vsyncpa [#allocation8], 0 }
   0xb   :  { %23 = vsyncpa [#allocation16], 0 }
   0xc   :  { %24 = vsyncpa [#allocation18], 0  ;;  %s41_s27 = sshll.u32 %s5325_s1, 4  ;;  %s42_s27 = int_to_ptr.hbm [resolvable:$true] %s41_s27 }
   0xd   :  { %25 = vsyncpa [#allocation20], 0  ;;  %s4618_s28 = smov [#allocation10]   ;;  %s31_s15 = sshll.u32 %s5324_s0, 4  ;;  %s32_s15 = int_to_ptr.hbm [resolvable:$true] %s31_s15 }
   0xe   :  { %s43_s29 = sshll.u32 %s4618_s28, 4  ;;  %s4619_s16 = smov 64   ;;  %s44_s29 = int_to_ptr.vmem [resolvable:$true] %s43_s29 }
   0xf   :  { %s4620_s17 = smov 4   ;;  %s4621_s18 = smov [#allocation6]  }
  0x10   :  { %49 = dma.hbm_to_vmem [thread:$0]  %s42_s27, 256, %s44_s29, [#allocation11], %s4619_s16, %s4619_s16, %s4620_s17  }
  0x11   :  { %s33_s19 = sshll.u32 %s4621_s18, 4  ;;  %s55_s22 = sshll.u32 %s5326_s2, 4  ;;  %s34_s19 = int_to_ptr.vmem [resolvable:$true] %s33_s19  ;;  %s56_s22 = int_to_ptr.hbm [resolvable:$true] %s55_s22 }
  0x12   :  { %36 = dma.hbm_to_vmem [thread:$0]  %s32_s15, 128, %s34_s19, [#allocation7]  }
  0x13   :  { %s66_s24 = sshll.u32 %s5327_s3, 4  ;;  %s4622_s25 = smov [#allocation12]   ;;  %s67_s24 = int_to_ptr.vmem [resolvable:$true] %s66_s24 }
  0x14   :  { %s57_s26 = sshll.u32 %s4622_s25, 4  ;;  %s4623_s0 = smov [#allocation13]   ;;  %s58_s26 = int_to_ptr.vmem [resolvable:$true] %s57_s26 }
  0x15   :  { %60 = dma.hbm_to_vmem [thread:$0]  %s56_s22, 16, %s58_s26, [#allocation11]  }
  0x16   :  { %69 = dma.vmem_to_smem %s67_s24, 64, %s4623_s0, [#allocation9]  }
  0x17   :  { %s75_s29 = sshll.u32 %s5328_s4, 4  ;;  %s83_s14 = sshll.u32 %s5329_s5, 4  ;;  %s76_s29 = int_to_ptr.hbm [resolvable:$true] %s75_s29  ;;  %s84_s14 = int_to_ptr.hbm [resolvable:$true] %s83_s14 }
  0x18   :  { %s4624_s15 = smov [#allocation14]   ;;  %s4625_s3 = smov [#allocation15]  }
  0x19   :  { %78 = dma.hbm_to_smem %s76_s29, 16, %s4624_s15, [#allocation8]  }
  0x1a   :  { %s4626_s16 = smov 128   ;;  %s4627_s17 = smov 8  }
  0x1b   :  { %89 = dma.hbm_to_smem %s84_s14, 256, %s4625_s3, [#allocation16], %s4626_s16, %s4626_s16, %s4627_s17  }
  0x1c   :  { %s95_s20 = sshll.u32 %s5330_s6, 4  ;;  %s106_s4 = sshll.u32 %s5334_s10, 4  ;;  %s96_s20 = int_to_ptr.vmem [resolvable:$true] %s95_s20  ;;  %s107_s4 = int_to_ptr.hbm [resolvable:$true] %s106_s4 }
  0x1d   :  { %s4628_s1 = smov [#allocation17]   ;;  %s4629_s5 = smov [#allocation19]  }
  0x1e   :  { %98 = dma.vmem_to_smem %s96_s20, 16, %s4628_s1, [#allocation18]  }
  0x1f   :  { %s108_s23 = sshll.u32 %s4629_s5, 4  ;;  %s109_s23 = int_to_ptr.vmem [resolvable:$true] %s108_s23 }
  0x20   :  { %111 = dma.hbm_to_vmem [thread:$0]  %s107_s4, 16, %s109_s23, [#allocation20]  }
  0x21   :  { %4600 = dma.done.wait [#allocation7], 128  }
  0x22   :  { %4601 = vsyncadd [#allocation7], 4294967168 }
  0x23   :  { %4602 = dma.done.wait [#allocation11], 272  }
  0x24   :  { %4603 = vsyncadd [#allocation11], 4294967024 }
  0x25   :  { %4604 = dma.done.wait [#allocation9], 64  }
  0x26   :  { %4605 = vsyncadd [#allocation9], 4294967232 }
  0x27   :  { %4606 = dma.done.wait [#allocation8], 16  }
  0x28   :  { %4607 = vsyncadd [#allocation8], 4294967280 }
  0x29   :  { %4608 = dma.done.wait [#allocation16], 256  }
  0x2a   :  { %4609 = vsyncadd [#allocation16], 4294967040 }
  0x2b   :  { %4610 = dma.done.wait [#allocation18], 16  }
  0x2c   :  { %4611 = vsyncadd [#allocation18], 4294967280 }
  0x2d   :  { %4612 = dma.done.wait [#allocation20], 16  }
  0x2e   :  { %4613 = vsyncadd [#allocation20], 4294967280 }
  0x2f   :  { %148 = sfence }
  0x30   :  { %v4078_v0 = vld [vmem:[#allocation10 + $0x8] sm:$0xff]  ;;  %v4077_v1 = vld [vmem:[#allocation10] sm:$0xff]  ;;  %v181_v2 = vld [vmem:[#allocation6] sm:$0xff]  ;;  %vm203_vm0 = vcmask 261120   ;;  %s5338_s6 = smov 1   ;;  %s5339_s10 = smov 127   ;;  %v177_v12 = vlaneseq }
  0x31   :  { %213 = vmatpush.bf16.msra.mxu0 %v4078_v0  ;;  %v182_v3 = vpack.c.bf16 %v181_v2, %v181_v2  ;;  %v4353_v4 = vld [vmem:[#allocation12] ss:$0 sm:$0xff]  ;;  %s4730_s24 = sld [smem:[#allocation13 + $0x1]] }
  0x32   :  { %s232_s25 = sld [smem:[#allocation13]]  ;;  %v4734_v13 = vand.u32 127, %v177_v12 }
  0x33   :  { %s3020_s26 = sld [smem:[#allocation13 + $0x80]] }
  0x34   :  { %s3024_s0 = sld [smem:[#allocation13 + $0x100]]  ;;  %vm179_vm1 = vcmp.ge.s32.totalorder %v4734_v13, 1  ;;  %vm180_vm2 = vcmp.le.s32.totalorder %v4734_v13, 126 }
  0x35   :  { %214 = vmatpush.bf16.msra.mxu0 %v4077_v1  ;;  %s4732_s27 = sld [smem:[#allocation13 + $0x81]] }
  0x36   :  { %s230_s28 = sld [smem:[#allocation14]] }
  0x37   :  { %s3019_s29 = sld [smem:[#allocation14 + $0x1]]  ;;  %v237_v25 = vstv %s4730_s24 }
  0x38   :  { %3016 = vmatmul.msk.bf16.vlgmr.msra.gmra.mxu0 %vm203_vm0, %v182_v3  ;;  %s3023_s2 = sld [smem:[#allocation14 + $0x2]]  ;;  %v233_v14 = vstv %s232_s25 }
  0x39   :  { %s3025_s30 = sld [smem:[#allocation13 + $0x101]]  ;;  %v247_v15 = vstv %s3020_s26 }
  0x3a   :  { %s4736_s14 = sld [smem:[#allocation13 + $0x2]]  ;;  %v261_v16 = vstv %s3024_s0 }
  0x3b   :  { %s4739_s15 = sld [smem:[#allocation13 + $0x82]]  ;;  %v251_v26 = vstv %s4732_s27 }
  0x3c   :  { %s3026_s3 = sld [smem:[#allocation13 + $0x102]]  ;;  %v231_v18 = vstv %s230_s28 }
  0x3d   :  { %v245_v20 = vstv %s3019_s29  ;;  %s4841_s13 = sld [smem:[#allocation15 + $0x180]] }
  0x3e   :  { %v259_v24 = vstv %s3023_s2  ;;  %s4843_s12 = sld [smem:[#allocation17 + $0x4]] }
  0x3f   :  { %v265_v29 = vstv %s3025_s30  ;;  %s4845_s11 = sld [smem:[#allocation15 + $0x200]] }
  0x40   :  { %v241_v32 = vstv %s4736_s14  ;;  %s4847_s8 = sld [smem:[#allocation17 + $0x5]] }
  0x41   :  { %v255_v33 = vstv %s4739_s15  ;;  %s4849_s9 = sld [smem:[#allocation15 + $0x280]] }
  0x42   :  { %v269_v34 = vstv %s3026_s3  ;;  %s4851_s7 = sld [smem:[#allocation17 + $0x6]] }
  0x43   :  { %5350 = sst [smem:[#allocation39_spill]] %s4841_s13 }
  0x44   :  { %5351 = sst [smem:[#allocation40_spill]] %s4843_s12 }
  0x45   :  { %5352 = sst [smem:[#allocation41_spill]] %s4845_s11 }
  0x46   :  { %s4857_s13 = sld [smem:[#allocation15 + $0x380]] }
  0x47   :  { %5353 = sst [smem:[#allocation42_spill]] %s4849_s9 }
  0x48   :  { %5354 = sst [smem:[#allocation43_spill]] %s4851_s7 }
  0x49   :  { %s4859_s12 = sld [smem:[#allocation17 + $0x8]] }
  0x4a   :  { %s4861_s11 = sld [smem:[#allocation15 + $0x400]] }
  0x4b   :  { %s4867_s9 = sld [smem:[#allocation15 + $0x82]] }
  0x4c   :  { %5355 = sst [smem:[#allocation44_spill]] %s4857_s13 }
  0x4d   :  { %s4871_s7 = sld [smem:[#allocation15 + $0x102]] }
  0x4e   :  { %s4877_s13 = sld [smem:[#allocation15 + $0x182]] }
  0xb5   :  { %v216_v5 = vpop.f32.mrf.mxu0 }
  0xb6   :  { %v217_v6 = vadd.f32 %v4353_v4, %v216_v5 }
  0xb8   :  { %v220_v7 = vmul.f32 0.5, %v217_v6 }
  0xba   :  { %4354 = vtanh.f32 %v220_v7 }
  0xbd   :  { %v218_v8 = vpop.f32.mrf.mxu0 }
  0xc0   :  { %v4355_v9 = vpop.eup %4354 }
  0xc1   :  { %v222_v10 = vmul.f32 0.5, %v4355_v9 }
  0xc3   :  { %v223_v11 = vadd.f32 0.5, %v222_v10 }
  0xc5   :  { %224 = vrot.lane.b32.xlu0 %v223_v11, %s5338_s6  ;;  %v238_v31 = vmul.f32 %v237_v25, %v223_v11  ;;  %v252_v35 = vmul.f32 %v251_v26, %v223_v11  ;;  %v266_v37 = vmul.f32 %v265_v29, %v223_v11 }
  0xcd   :  { %227 = vrot.lane.b32.xlu0 %v223_v11, %s5339_s10 }
 0x137   :  { %v225_v17 = vpop.permute.xlu0 %224 }
 0x138   :  { %v226_v19 = vsel %vm179_vm1, %v225_v17, 0.0 }
 0x139   :  { %v234_v21 = vmul.f32 %v233_v14, %v226_v19  ;;  %v248_v22 = vmul.f32 %v247_v15, %v226_v19  ;;  %v262_v23 = vmul.f32 %v261_v16, %v226_v19 }
 0x13b   :  { %v235_v27 = vadd.f32 %v234_v21, %v231_v18  ;;  %v249_v28 = vadd.f32 %v248_v22, %v245_v20  ;;  %v263_v30 = vadd.f32 %v262_v23, %v259_v24 }
 0x13d   :  { %v239_v39 = vadd.f32 %v238_v31, %v235_v27  ;;  %v253_v40 = vadd.f32 %v252_v35, %v249_v28  ;;  %v267_v43 = vadd.f32 %v266_v37, %v263_v30 }
 0x13f   :  { %v228_v36 = vpop.permute.xlu0 %227 }
 0x140   :  { %v229_v38 = vsel %vm180_vm2, %v228_v36, 0.0 }
 0x141   :  { %v242_v41 = vmul.f32 %v241_v32, %v229_v38  ;;  %v256_v42 = vmul.f32 %v255_v33, %v229_v38  ;;  %v270_v44 = vmul.f32 %v269_v34, %v229_v38 }
 0x143   :  { %v243_v45 = vadd.f32 %v242_v41, %v239_v39  ;;  %v257_v46 = vadd.f32 %v256_v42, %v253_v40  ;;  %v271_v47 = vadd.f32 %v270_v44, %v267_v43 }
 0x145   :  { %v272_v48 = vmul.f32 0.5, %v243_v45  ;;  %v280_v49 = vmul.f32 0.5, %v257_v46  ;;  %v288_v50 = vmul.f32 0.5, %v271_v47 }
 0x147   :  { %4356 = vtanh.f32 %v272_v48 }
 0x148   :  { %4358 = vtanh.f32 %v280_v49 }
 0x149   :  { %4360 = vtanh.f32 %v288_v50 }
 0x14d   :  { %v4357_v51 = vpop.eup %4356 }
 0x14e   :  { %v4359_v52 = vpop.eup %4358  ;;  %v274_v53 = vmul.f32 0.5, %v4357_v51 }
 0x14f   :  { %v4361_v54 = vpop.eup %4360  ;;  %v282_v55 = vmul.f32 0.5, %v4359_v52 }
 0x150   :  { %v290_v56 = vmul.f32 0.5, %v4361_v54  ;;  %v275_v57 = vadd.f32 0.5, %v274_v53 }
 0x151   :  { %v283_v58 = vadd.f32 0.5, %v282_v55 }
 0x152   :  { %v291_v59 = vadd.f32 0.5, %v290_v56  ;;  %v276_v60 = vmul.f32 0.5, %v275_v57 }
 0x153   :  { %v284_v61 = vmul.f32 0.5, %v283_v58 }
 0x154   :  { %v292_v62 = vmul.f32 0.5, %v291_v59  ;;  %4362 = vtanh.f32 %v276_v60 }
 0x155   :  { %4364 = vtanh.f32 %v284_v61 }
 0x156   :  { %4366 = vtanh.f32 %v292_v62 }
 0x15a   :  { %v4363_v63 = vpop.eup %4362 }
 0x15b   :  { %v4365_v0 = vpop.eup %4364  ;;  %v278_v1 = vmul.f32 0.5, %v4363_v63 }
 0x15c   :  { %v4367_v2 = vpop.eup %4366  ;;  %v286_v3 = vmul.f32 0.5, %v4365_v0 }
 0x15d   :  { %v294_v4 = vmul.f32 0.5, %v4367_v2  ;;  %v4750_v5 = vadd.f32 0.5, %v278_v1 }
 0x15e   :  { %v4752_v6 = vadd.f32 0.5, %v286_v3 }
 0x15f   :  { %v4754_v7 = vadd.f32 0.5, %v294_v4  ;;  %296 = vadd.xlane.f32.xlu1 %v4750_v5  ;;  %v305_v8 = vmul.f32 %v4750_v5, %v4750_v5 }
 0x160   :  { %336 = vadd.xlane.f32.xlu2 %v4752_v6  ;;  %v345_v9 = vmul.f32 %v4752_v6, %v4752_v6 }
 0x161   :  { %376 = vadd.xlane.f32.xlu0 %v4754_v7  ;;  %v385_v10 = vmul.f32 %v4754_v7, %v4754_v7 }
 0x167   :  { %306 = vadd.xlane.f32.xlu1 %v305_v8 }
 0x168   :  { %346 = vadd.xlane.f32.xlu2 %v345_v9 }
 0x16f   :  { %386 = vadd.xlane.f32.xlu1 %v385_v10 }
 0x1d2   :  { %v297_v11 = vpop.xlane.xlu1 %296 }
 0x1d3   :  { %v298_v12 = vrot.slane %v297_v11, 4  ;;  %v337_v26 = vpop.xlane.xlu2 %336 }
 0x1d4   :  { %v338_v28 = vrot.slane %v337_v26, 4  ;;  %v377_v52 = vpop.xlane.xlu0 %376 }
 0x1d5   :  { %v299_v14 = vadd.f32 %v298_v12, %v297_v11  ;;  %v378_v54 = vrot.slane %v377_v52, 4 }
 0x1d6   :  { %v339_v31 = vadd.f32 %v338_v28, %v337_v26 }
 0x1d7   :  { %v300_v15 = vrot.slane %v299_v14, 2  ;;  %v379_v57 = vadd.f32 %v378_v54, %v377_v52 }
 0x1d8   :  { %v340_v33 = vrot.slane %v339_v31, 2 }
 0x1d9   :  { %v301_v16 = vadd.f32 %v300_v15, %v299_v14  ;;  %v380_v59 = vrot.slane %v379_v57, 2 }
 0x1da   :  { %v307_v17 = vpop.xlane.xlu1 %306  ;;  %v341_v38 = vadd.f32 %v340_v33, %v339_v31 }
 0x1db   :  { %v308_v18 = vrot.slane %v307_v17, 4  ;;  %v302_v19 = vrot.slane %v301_v16, 1  ;;  %v347_v27 = vpop.xlane.xlu2 %346  ;;  %v381_v63 = vadd.f32 %v380_v59, %v379_v57 }
 0x1dc   :  { %v348_v29 = vrot.slane %v347_v27, 4  ;;  %v342_v42 = vrot.slane %v341_v38, 1 }
 0x1dd   :  { %v309_v20 = vadd.f32 %v308_v18, %v307_v17  ;;  %v303_v21 = vadd.f32 %v302_v19, %v301_v16  ;;  %v382_v4 = vrot.slane %v381_v63, 1 }
 0x1de   :  { %v349_v32 = vadd.f32 %v348_v29, %v347_v27  ;;  %v343_v46 = vadd.f32 %v342_v42, %v341_v38 }
 0x1df   :  { %v310_v22 = vrot.slane %v309_v20, 2  ;;  %4319 = vpush %v303_v21  ;;  %v383_v10 = vadd.f32 %v382_v4, %v381_v63  ;;  %v739_v4 = vstv %s4859_s12  ;;  %s5372_s12 = smov 1  }
 0x1e0   :  { %v350_v35 = vrot.slane %v349_v32, 2 }
 0x1e1   :  { %v311_v23 = vadd.f32 %v310_v22, %v309_v20 }
 0x1e2   :  { %v351_v39 = vadd.f32 %v350_v35, %v349_v32  ;;  %v387_v53 = vpop.xlane.xlu1 %386 }
 0x1e3   :  { %v312_v24 = vrot.slane %v311_v23, 1  ;;  %v388_v55 = vrot.slane %v387_v53, 4 }
 0x1e4   :  { %v352_v43 = vrot.slane %v351_v39, 1 }
 0x1e5   :  { %v313_v25 = vadd.f32 %v312_v24, %v311_v23  ;;  %v389_v58 = vadd.f32 %v388_v55, %v387_v53 }
 0x1e6   :  { %v353_v47 = vadd.f32 %v352_v43, %v351_v39 }
 0x1e7   :  { %4321 = vpush %v313_v25  ;;  %v390_v61 = vrot.slane %v389_v58, 2 }
 0x1e9   :  { %v391_v1 = vadd.f32 %v390_v61, %v389_v58  ;;  %v625_v61 = vstv %s4847_s8 }
 0x210   :  { %s4320_s16 = spop %4319 }
 0x211   :  { %s4765_s17 = smul.f32 0.0009765625, %s4320_s16  ;;  %s4793_s16 = sld [smem:[#allocation15 + $0x1]] }
 0x213   :  { %s317_s18 = smul.f32 %s4765_s17, %s4765_s17  ;;  %v319_v48 = vstv %s4765_s17  ;;  %s4795_s17 = sld [smem:[#allocation15 + $0x81]] }
 0x214   :  { %v320_v49 = vsub.f32 %v4750_v5, %v319_v48  ;;  %v392_v5 = vrot.slane %v391_v1, 1 }
 0x216   :  { %v393_v11 = vadd.f32 %v392_v5, %v391_v1 }
 0x217   :  { %v441_v24 = vstv %s4793_s16  ;;  %s4892_s16 = sld [smem:[#allocation15 + $0x202]] }
 0x218   :  { %s4322_s19 = spop %4321 }
 0x219   :  { %s316_s20 = smul.f32 0.0009765625, %s4322_s19  ;;  %s4799_s19 = sld [smem:[#allocation15 + $0x181]]  ;;  %v479_v25 = vstv %s4795_s17 }
 0x21a   :  { %s4900_s17 = sld [smem:[#allocation15 + $0x282]] }
 0x21b   :  { %s318_s21 = ssub.f32 %s316_s20, %s317_s18 }
 0x21c   :  { %s4797_s18 = sld [smem:[#allocation15 + $0x101]] }
 0x21d   :  { %s321_s22 = sadd.f32 1e-05, %s318_s21 }
 0x21e   :  { %s4801_s20 = sld [smem:[#allocation15 + $0x201]] }
 0x21f   :  { %v322_v30 = vstv %s321_s22  ;;  %s4803_s21 = sld [smem:[#allocation15 + $0x281]]  ;;  %v555_v27 = vstv %s4799_s19 }
 0x220   :  { %4368 = vrsqrt.f32 %v322_v30  ;;  %vm329_vm4 = vweird.f32 %v322_v30  ;;  %s4805_s22 = sld [smem:[#allocation15 + $0x301]] }
 0x221   :  { %5356 = sst [smem:[#allocation45_spill]] %s4892_s16 }
 0x222   :  { %v517_v26 = vstv %s4797_s18  ;;  %5357 = sst [smem:[#allocation46_spill]] %s4900_s17 }
 0x223   :  { %s4908_s18 = sld [smem:[#allocation15 + $0x302]] }
 0x224   :  { %v593_v28 = vstv %s4801_s20  ;;  %s5366_s16 = sld [smem:[#allocation43_spill]] }
 0x225   :  { %v631_v29 = vstv %s4803_s21  ;;  %s5361_s21 = sld [smem:[#allocation39_spill]] }
 0x226   :  { %v4369_v34 = vpop.eup %4368 }
 0x227   :  { %v324_v36 = vmul.f32 %v4369_v34, %v322_v30  ;;  %vm330_vm3 = vweird.f32 %v4369_v34  ;;  %v669_v30 = vstv %s4805_s22  ;;  %s5362_s22 = sld [smem:[#allocation40_spill]] }
 0x228   :  { %vm331_vm5 = vmor %vm329_vm4, %vm330_vm3 }
 0x229   :  { %v325_v37 = vmul.f32 %v4369_v34, %v324_v36  ;;  %5358 = sst [smem:[#allocation47_spill]] %s4908_s18 }
 0x22a   :  { %s5365_s18 = sld [smem:[#allocation42_spill]] }
 0x22b   :  { %v326_v40 = vmul.f32 0.5, %v325_v37  ;;  %v551_v58 = vstv %s5361_s21 }
 0x22d   :  { %v327_v41 = vsub.f32 1.5, %v326_v40  ;;  %v587_v59 = vstv %s5362_s22  ;;  %s4633_s22 = smov [#allocation3]  }
 0x22f   :  { %v328_v44 = vmul.f32 %v4369_v34, %v327_v41 }
 0x230   :  { %v627_v63 = vstv %s5365_s18  ;;  %s5118_s18 = sld [smem:[#allocation15 + $0x388]] }
 0x231   :  { %v332_v45 = vsel %vm331_vm5, %v4369_v34, %v328_v44 }
 0x232   :  { %4323 = vpush %v332_v45 }
 0x233   :  { %4325 = vpush %v343_v46 }
 0x234   :  { %4327 = vpush %v353_v47 }
 0x263   :  { %s4324_s4 = spop %4323 }
 0x264   :  { %v334_v50 = vstv %s4324_s4  ;;  %s4326_s1 = spop %4325  ;;  %s4807_s4 = sld [smem:[#allocation15 + $0x381]] }
 0x265   :  { %v4771_v51 = vmul.f32 %v334_v50, %v320_v49  ;;  %s4773_s5 = smul.f32 0.0009765625, %s4326_s1  ;;  %s4328_s23 = spop %4327 }
 0x266   :  { %s356_s24 = smul.f32 0.0009765625, %s4328_s23  ;;  %s4809_s1 = sld [smem:[#allocation15 + $0x401]] }
 0x267   :  { %s357_s25 = smul.f32 %s4773_s5, %s4773_s5  ;;  %419 = vrot.lane.b32.xlu1 %v4771_v51, %s5339_s10  ;;  %416 = vrot.lane.b32.xlu2 %v4771_v51, %s5338_s6  ;;  %v359_v12 = vstv %s4773_s5  ;;  %s4811_s5 = sld [smem:[#allocation15 + $0x4]]  ;;  %v4881_v33 = vmul.f32 %v441_v24, %v4771_v51  ;;  %v4884_v34 = vmul.f32 %v479_v25, %v4771_v51  ;;  %v4887_v35 = vmul.f32 %v517_v26, %v4771_v51 }
 0x268   :  { %v360_v14 = vsub.f32 %v4752_v6, %v359_v12  ;;  %s4813_s23 = sld [smem:[#allocation15 + $0x84]]  ;;  %v4890_v36 = vmul.f32 %v555_v27, %v4771_v51  ;;  %v4895_v37 = vmul.f32 %v593_v28, %v4771_v51  ;;  %v4898_v38 = vmul.f32 %v631_v29, %v4771_v51 }
 0x269   :  { %s358_s26 = ssub.f32 %s356_s24, %s357_s25  ;;  %v4903_v39 = vmul.f32 %v669_v30, %v4771_v51  ;;  %v559_v12 = vstv %s4877_s13 }
 0x26a   :  { %s4815_s24 = sld [smem:[#allocation15 + $0x104]]  ;;  %v707_v31 = vstv %s4807_s4 }
 0x26b   :  { %s361_s0 = sadd.f32 1e-05, %s358_s26  ;;  %v4906_v40 = vmul.f32 %v707_v31, %v4771_v51 }
 0x26c   :  { %s4817_s25 = sld [smem:[#allocation15 + $0x184]]  ;;  %v745_v32 = vstv %s4809_s1 }
 0x26d   :  { %v362_v56 = vstv %s361_s0  ;;  %s4819_s26 = sld [smem:[#allocation15 + $0x204]]  ;;  %v4911_v41 = vmul.f32 %v745_v32, %v4771_v51  ;;  %v453_v42 = vstv %s4811_s5 }
 0x26e   :  { %4370 = vrsqrt.f32 %v362_v56  ;;  %vm369_vm7 = vweird.f32 %v362_v56  ;;  %s4821_s0 = sld [smem:[#allocation15 + $0x284]]  ;;  %v491_v43 = vstv %s4813_s23 }
 0x26f   :  { %s4916_s4 = sld [smem:[#allocation15 + $0x382]] }
 0x270   :  { %v529_v44 = vstv %s4815_s24  ;;  %s5363_s1 = sld [smem:[#allocation41_spill]] }
 0x271   :  { %s5367_s5 = sld [smem:[#allocation44_spill]] }
 0x272   :  { %v567_v45 = vstv %s4817_s25  ;;  %s5368_s23 = sld [smem:[#allocation45_spill]] }
 0x273   :  { %v605_v46 = vstv %s4819_s26  ;;  %s5369_s24 = sld [smem:[#allocation46_spill]] }
 0x274   :  { %v4371_v60 = vpop.eup %4370  ;;  %v643_v47 = vstv %s4821_s0  ;;  %s4934_s25 = sld [smem:[#allocation15 + $0x402]] }
 0x275   :  { %v364_v62 = vmul.f32 %v4371_v60, %v362_v56  ;;  %vm370_vm6 = vweird.f32 %v4371_v60  ;;  %s5370_s26 = sld [smem:[#allocation47_spill]] }
 0x276   :  { %vm371_vm8 = vmor %vm369_vm7, %vm370_vm6  ;;  %s4974_s13 = sld [smem:[#allocation15 + $0x183]] }
 0x277   :  { %v365_v0 = vmul.f32 %v4371_v60, %v364_v62  ;;  %s5006_s0 = sld [smem:[#allocation15 + $0x383]] }
 0x279   :  { %v366_v2 = vmul.f32 0.5, %v365_v0  ;;  %v663_v0 = vstv %s5366_s16  ;;  %s4632_s16 = smov [#allocation2]  }
 0x27a   :  { %v749_v32 = vstv %s4934_s25  ;;  %s5076_s25 = sld [smem:[#allocation15 + $0x207]] }
 0x27b   :  { %v367_v3 = vsub.f32 1.5, %v366_v2 }
 0x27d   :  { %v368_v8 = vmul.f32 %v4371_v60, %v367_v3  ;;  %v703_v3 = vstv %s5367_s5  ;;  %s5070_s5 = sld [smem:[#allocation15 + $0x87]] }
 0x27f   :  { %v372_v9 = vsel %vm371_vm8, %v4371_v60, %v368_v8  ;;  %v589_v60 = vstv %s5363_s1  ;;  %v741_v8 = vstv %s4861_s11  ;;  %s4959_s11 = sld [smem:[#allocation15 + $0x83]] }
 0x280   :  { %4329 = vpush %v372_v9  ;;  %s5068_s1 = sld [smem:[#allocation15 + $0x7]] }
 0x281   :  { %4331 = vpush %v383_v10  ;;  %v483_v10 = vstv %s4867_s9  ;;  %s5371_s9 = smov 127  }
 0x282   :  { %4333 = vpush %v393_v11  ;;  %v521_v11 = vstv %s4871_s7  ;;  %s4967_s7 = sld [smem:[#allocation15 + $0x103]] }
 0x2b1   :  { %s4330_s27 = spop %4329 }
 0x2b2   :  { %v374_v15 = vstv %s4330_s27  ;;  %s4332_s28 = spop %4331  ;;  %s4823_s27 = sld [smem:[#allocation15 + $0x304]] }
 0x2b3   :  { %v4783_v16 = vmul.f32 %v374_v15, %v360_v14  ;;  %s4785_s29 = smul.f32 0.0009765625, %s4332_s28  ;;  %s4334_s2 = spop %4333  ;;  %v597_v14 = vstv %s5368_s23  ;;  %v635_v15 = vstv %s5369_s24 }
 0x2b4   :  { %s396_s30 = smul.f32 0.0009765625, %s4334_s2  ;;  %s4825_s28 = sld [smem:[#allocation15 + $0x384]] }
 0x2b5   :  { %5347 = sst [smem:[#allocation36_spill]] %s4785_s29  ;;  %s397_s14 = smul.f32 %s4785_s29, %s4785_s29  ;;  %422 = vrot.lane.b32.xlu2 %v4783_v16, %s5338_s6  ;;  %v4965_v24 = vmul.f32 %v491_v43, %v4783_v16  ;;  %v4979_v43 = vmul.f32 %v529_v44, %v4783_v16 }
 0x2b6   :  { %s4827_s2 = sld [smem:[#allocation15]] }
 0x2b7   :  { %s398_s15 = ssub.f32 %s396_s30, %s397_s14 }
 0x2b8   :  { %s4829_s30 = sld [smem:[#allocation15 + $0x80]]  ;;  %v681_v48 = vstv %s4823_s27 }
 0x2b9   :  { %s401_s3 = sadd.f32 1e-05, %s398_s15 }
 0x2ba   :  { %s4831_s14 = sld [smem:[#allocation17]]  ;;  %v719_v52 = vstv %s4825_s28 }
 0x2bb   :  { %v402_v17 = vstv %s401_s3  ;;  %s4833_s15 = sld [smem:[#allocation17 + $0x1]]  ;;  %v5002_v44 = vmul.f32 %v719_v52, %v4783_v16 }
 0x2bc   :  { %4372 = vrsqrt.f32 %v402_v17  ;;  %vm409_vm10 = vweird.f32 %v402_v17  ;;  %s4835_s3 = sld [smem:[#allocation17 + $0x2]]  ;;  %v437_v50 = vstv %s4827_s2 }
 0x2bd   :  { %425 = vrot.lane.b32.xlu2 %v4783_v16, %s5339_s10  ;;  %s4837_s6 = sld [smem:[#allocation15 + $0x100]] }
 0x2be   :  { %s4839_s10 = sld [smem:[#allocation17 + $0x3]]  ;;  %v475_v53 = vstv %s4829_s30 }
 0x2bf   :  { %s4853_s29 = sld [smem:[#allocation15 + $0x300]] }
 0x2c0   :  { %s5364_s17 = sld [smem:[#allocation36_spill]]  ;;  %v435_v49 = vstv %s4831_s14 }
 0x2c1   :  { %v473_v51 = vstv %s4833_s15  ;;  %v417_v57 = vpop.permute.xlu2 %416  ;;  %s5004_s28 = sld [smem:[#allocation15 + $0x303]] }
 0x2c2   :  { %v4373_v6 = vpop.eup %4372  ;;  %v511_v54 = vstv %s4835_s3  ;;  %v418_v5 = vsel %vm179_vm1, %v417_v57, 0.0  ;;  %v4994_v57 = vmul.f32 %v643_v47, %v4783_v16  ;;  %s5009_s27 = sld [smem:[#allocation15 + $0x403]] }
 0x2c3   :  { %v404_v18 = vmul.f32 %v4373_v6, %v402_v17  ;;  %vm410_vm9 = vweird.f32 %v4373_v6  ;;  %5348 = sst [smem:[#allocation37_spill]] %s4837_s6  ;;  %v552_v25 = vmul.f32 %v551_v58, %v418_v5  ;;  %v590_v26 = vmul.f32 %v589_v60, %v418_v5 }
 0x2c4   :  { %vm411_vm11 = vmor %vm409_vm10, %vm410_vm9  ;;  %5349 = sst [smem:[#allocation38_spill]] %s4839_s10  ;;  %v628_v27 = vmul.f32 %v627_v63, %v418_v5  ;;  %v704_v30 = vmul.f32 %v703_v3, %v418_v5  ;;  %v742_v31 = vmul.f32 %v741_v8, %v418_v5 }
 0x2c5   :  { %v405_v19 = vmul.f32 %v4373_v6, %v404_v18  ;;  %s4855_s10 = sld [smem:[#allocation17 + $0x7]]  ;;  %v665_v1 = vstv %s4853_s29  ;;  %v673_v18 = vstv %s5370_s26  ;;  %v591_v60 = vadd.f32 %v590_v26, %v587_v59 }
 0x2c6   :  { %s4863_s6 = sld [smem:[#allocation15 + $0x2]]  ;;  %v399_v62 = vstv %s5364_s17  ;;  %v666_v29 = vmul.f32 %v665_v1, %v418_v5  ;;  %v743_v3 = vadd.f32 %v742_v31, %v739_v4  ;;  %s159_s17 = sshll.u32 %s4632_s16, 4  ;;  %s160_s17 = int_to_ptr.vmem [resolvable:$true] %s159_s17 }
 0x2c7   :  { %v406_v20 = vmul.f32 0.5, %v405_v19  ;;  %s5359_s19 = sld [smem:[#allocation37_spill]]  ;;  %v400_v17 = vsub.f32 %v4754_v7, %v399_v62  ;;  %v711_v19 = vstv %s4916_s4  ;;  %v629_v62 = vadd.f32 %v628_v27, %v625_v61  ;;  %s173_s4 = sshll.u32 %s4633_s22, 4  ;;  %s174_s4 = int_to_ptr.vmem [resolvable:$true] %s173_s4 }
 0x2c8   :  { %s5360_s20 = sld [smem:[#allocation38_spill]]  ;;  %v667_v63 = vadd.f32 %v666_v29, %v663_v0 }
 0x2c9   :  { %v407_v21 = vsub.f32 1.5, %v406_v20  ;;  %s4989_s29 = sld [smem:[#allocation15 + $0x283]] }
 0x2ca   :  { %v671_v4 = vadd.f32 %v4903_v39, %v667_v63  ;;  %v487_v39 = vstv %s4959_s11  ;;  %s5023_s2 = sld [smem:[#allocation15 + $0x404]] }
 0x2cb   :  { %v408_v22 = vmul.f32 %v4373_v6, %v407_v21  ;;  %v701_v2 = vstv %s4855_s10  ;;  %s4955_s10 = sld [smem:[#allocation15 + $0x3]]  ;;  %v476_v21 = vmul.f32 %v475_v53, %v418_v5  ;;  %v4985_v53 = vmul.f32 %v605_v46, %v4783_v16 }
 0x2cc   :  { %v445_v9 = vstv %s4863_s6  ;;  %s4976_s6 = sld [smem:[#allocation15 + $0x203]]  ;;  %v705_v1 = vadd.f32 %v704_v30, %v701_v2  ;;  %v633_v2 = vadd.f32 %v4898_v38, %v629_v62 }
 0x2cd   :  { %v412_v23 = vsel %vm411_vm11, %v4373_v6, %v408_v22  ;;  %v513_v55 = vstv %s5359_s19  ;;  %v438_v6 = vmul.f32 %v437_v50, %v418_v5  ;;  %v4982_v50 = vmul.f32 %v567_v45, %v4783_v16  ;;  %s5373_s15 = sld [smem:[#allocation48_spill]] }
 0x2ce   :  { %4335 = vpush %v412_v23  ;;  %v549_v56 = vstv %s5360_s20  ;;  %v4962_v23 = vmul.f32 %v453_v42, %v4783_v16  ;;  %v514_v7 = vmul.f32 %v513_v55, %v418_v5  ;;  %v477_v45 = vadd.f32 %v476_v21, %v473_v51  ;;  %s5374_s20 = sld [smem:[#allocation50_spill]] }
 0x2cf   :  { %v439_v42 = vadd.f32 %v438_v6, %v435_v49  ;;  %v4999_v49 = vmul.f32 %v681_v48, %v4783_v16  ;;  %v553_v46 = vadd.f32 %v552_v25, %v549_v56  ;;  %v563_v6 = vstv %s4974_s13  ;;  %s5072_s23 = sld [smem:[#allocation15 + $0x107]] }
 0x2d0   :  { %v515_v58 = vadd.f32 %v514_v7, %v511_v54  ;;  %v481_v59 = vadd.f32 %v4884_v34, %v477_v45  ;;  %v747_v34 = vadd.f32 %v4911_v41, %v743_v3  ;;  %v639_v41 = vstv %s4989_s29  ;;  %s5074_s24 = sld [smem:[#allocation15 + $0x187]] }
 0x2d1   :  { %v443_v47 = vadd.f32 %v4881_v33, %v439_v42  ;;  %v557_v0 = vadd.f32 %v4890_v36, %v553_v46  ;;  %v595_v33 = vadd.f32 %v4895_v37, %v591_v60  ;;  %v449_v38 = vstv %s4955_s10  ;;  %s5078_s26 = sld [smem:[#allocation15 + $0x287]] }
 0x2d2   :  { %v519_v61 = vadd.f32 %v4887_v35, %v515_v58  ;;  %v753_v25 = vstv %s5009_s27  ;;  %s5082_s10 = sld [smem:[#allocation15 + $0x387]] }
 0x2d3   :  { %s157_s3 = sshll.u32 %s5373_s15, 4  ;;  %s5084_s11 = sld [smem:[#allocation15 + $0x407]]  ;;  %s158_s3 = int_to_ptr.hbm [resolvable:$true] %s157_s3 }
 0x2d4   :  { %162 = dma.hbm_to_vmem [thread:$0]  %s158_s3, 27648, %s160_s17, [#allocation4] }
 0x2d5   :  { %s171_s21 = sshll.u32 %s5374_s20, 4  ;;  %s5092_s13 = sld [smem:[#allocation15 + $0x185]]  ;;  %s172_s21 = int_to_ptr.hbm [resolvable:$true] %s171_s21 }
 0x2d6   :  { %176 = dma.hbm_to_vmem [thread:$0]  %s172_s21, 3072, %s174_s4, [#allocation4 + $0x1] }
 0x2d7   :  { %s5096_s29 = sld [smem:[#allocation15 + $0x285]] }
 0x2d8   :  { %s5102_s27 = sld [smem:[#allocation15 + $0x405]] }
 0x2d9   :  { %v420_v28 = vpop.permute.xlu1 %419  ;;  %s5106_s30 = sld [smem:[#allocation15 + $0x88]] }
 0x2da   :  { %v421_v55 = vsel %vm180_vm2, %v420_v28, 0.0  ;;  %s5108_s14 = sld [smem:[#allocation15 + $0x108]] }
 0x2db   :  { %v446_v5 = vmul.f32 %v445_v9, %v421_v55  ;;  %v484_v48 = vmul.f32 %v483_v10, %v421_v55  ;;  %v522_v8 = vmul.f32 %v521_v11, %v421_v55  ;;  %v560_v52 = vmul.f32 %v559_v12, %v421_v55  ;;  %s5110_s15 = sld [smem:[#allocation15 + $0x188]] }
 0x2dc   :  { %v598_v51 = vmul.f32 %v597_v14, %v421_v55  ;;  %v636_v54 = vmul.f32 %v635_v15, %v421_v55  ;;  %v674_v56 = vmul.f32 %v673_v18, %v421_v55  ;;  %v709_v9 = vadd.f32 %v4906_v40, %v705_v1  ;;  %s5112_s3 = sld [smem:[#allocation15 + $0x208]] }
 0x2dd   :  { %v447_v10 = vadd.f32 %v446_v5, %v443_v47  ;;  %v485_v35 = vadd.f32 %v484_v48, %v481_v59  ;;  %v523_v11 = vadd.f32 %v522_v8, %v519_v61  ;;  %v712_v36 = vmul.f32 %v711_v19, %v421_v55  ;;  %s5114_s16 = sld [smem:[#allocation15 + $0x288]] }
 0x2de   :  { %v561_v12 = vadd.f32 %v560_v52, %v557_v0  ;;  %v599_v14 = vadd.f32 %v598_v51, %v595_v33  ;;  %v637_v37 = vadd.f32 %v636_v54, %v633_v2  ;;  %v675_v15 = vadd.f32 %v674_v56, %v671_v4  ;;  %s5116_s17 = sld [smem:[#allocation15 + $0x308]] }
 0x2df   :  { %v601_v40 = vstv %s4976_s6  ;;  %v677_v18 = vstv %s5004_s28  ;;  %v713_v19 = vadd.f32 %v712_v36, %v709_v9  ;;  %v750_v7 = vmul.f32 %v749_v32, %v421_v55  ;;  %s5094_s6 = sld [smem:[#allocation15 + $0x205]] }
 0x2e0   :  { %v757_v59 = vstv %s5023_s2  ;;  %s5098_s28 = sld [smem:[#allocation15 + $0x305]]  ;;  %v655_v33 = vstv %s5078_s26 }
 0x2e1   :  { %v758_v61 = vmul.f32 %v757_v59, %v4783_v16  ;;  %s5104_s2 = sld [smem:[#allocation15 + $0x8]]  ;;  %v465_v16 = vstv %s5068_s1 }
 0x2e2   :  { %s5120_s19 = sld [smem:[#allocation15 + $0x6]] }
 0x2e3   :  { %s5123_s20 = sld [smem:[#allocation15 + $0x86]] }
 0x2e4   :  { %s5127_s21 = sld [smem:[#allocation15 + $0x106]] }
 0x2e5   :  { %s5135_s22 = sld [smem:[#allocation15 + $0x186]]  ;;  %v609_v36 = vstv %s5094_s6 }
 0x2e6   :  { %s5143_s4 = sld [smem:[#allocation15 + $0x206]] }
 0x2e7   :  { %s5150_s1 = sld [smem:[#allocation15 + $0x286]] }
 0x2ff   :  { %s4336_s8 = spop %4335 }
 0x300   :  { %v414_v20 = vstv %s4336_s8  ;;  %s5080_s8 = sld [smem:[#allocation15 + $0x307]] }
 0x301   :  { %v4957_v22 = vmul.f32 %v414_v20, %v400_v17  ;;  %v525_v17 = vstv %s4967_s7  ;;  %v715_v20 = vstv %s5006_s0  ;;  %s5086_s7 = sld [smem:[#allocation15 + $0x5]] }
 0x302   :  { %s5100_s0 = sld [smem:[#allocation15 + $0x385]] }
 0x303   :  { %431 = vrot.lane.b32.xlu2 %v4957_v22, %s5371_s9  ;;  %428 = vrot.lane.b32.xlu1 %v4957_v22, %s5372_s12  ;;  %s5088_s9 = sld [smem:[#allocation15 + $0x85]] }
 0x304   :  { %s5090_s12 = sld [smem:[#allocation15 + $0x105]] }
 0x306   :  { %v693_v2 = vstv %s5080_s8 }
 0x307   :  { %v457_v4 = vstv %s5086_s7 }
 0x309   :  { %v495_v9 = vstv %s5088_s9 }
 0x30f   :  { %v423_v21 = vpop.permute.xlu2 %422 }
 0x310   :  { %v424_v26 = vsel %vm179_vm1, %v423_v21, 0.0  ;;  %v735_v21 = vstv %s5118_s18 }
 0x311   :  { %v450_v27 = vmul.f32 %v449_v38, %v424_v26  ;;  %v488_v28 = vmul.f32 %v487_v39, %v424_v26  ;;  %v526_v29 = vmul.f32 %v525_v17, %v424_v26  ;;  %v564_v30 = vmul.f32 %v563_v6, %v424_v26 }
 0x312   :  { %v602_v31 = vmul.f32 %v601_v40, %v424_v26  ;;  %v640_v42 = vmul.f32 %v639_v41, %v424_v26  ;;  %v678_v45 = vmul.f32 %v677_v18, %v424_v26  ;;  %v716_v58 = vmul.f32 %v715_v20, %v424_v26 }
 0x313   :  { %v451_v32 = vadd.f32 %v450_v27, %v447_v10  ;;  %v489_v55 = vadd.f32 %v488_v28, %v485_v35  ;;  %v527_v46 = vadd.f32 %v526_v29, %v523_v11  ;;  %v565_v60 = vadd.f32 %v564_v30, %v561_v12 }
 0x314   :  { %v603_v62 = vadd.f32 %v602_v31, %v599_v14  ;;  %v641_v63 = vadd.f32 %v640_v42, %v637_v37  ;;  %v679_v1 = vadd.f32 %v678_v45, %v675_v15  ;;  %v717_v3 = vadd.f32 %v716_v58, %v713_v19 }
 0x315   :  { %v754_v47 = vmul.f32 %v753_v25, %v424_v26  ;;  %v5041_v5 = vadd.f32 %v4962_v23, %v451_v32  ;;  %v5044_v48 = vadd.f32 %v4965_v24, %v489_v55  ;;  %v5047_v8 = vadd.f32 %v4979_v43, %v527_v46 }
 0x316   :  { %v5050_v52 = vadd.f32 %v4982_v50, %v565_v60  ;;  %v5053_v51 = vadd.f32 %v4985_v53, %v603_v62  ;;  %v5056_v54 = vadd.f32 %v4994_v57, %v641_v63  ;;  %v5059_v56 = vadd.f32 %v4999_v49, %v679_v1 }
 0x317   :  { %v751_v23 = vadd.f32 %v750_v7, %v747_v34  ;;  %v5062_v24 = vadd.f32 %v5002_v44, %v717_v3  ;;  %v503_v50 = vstv %s5070_s5  ;;  %v541_v53 = vstv %s5072_s23  ;;  %v426_v57 = vpop.permute.xlu2 %425  ;;  %s5156_s5 = sld [smem:[#allocation15 + $0x306]] }
 0x318   :  { %v579_v49 = vstv %s5074_s24  ;;  %v617_v44 = vstv %s5076_s25  ;;  %v731_v34 = vstv %s5082_s10  ;;  %v769_v10 = vstv %s5084_s11  ;;  %s5162_s23 = sld [smem:[#allocation15 + $0x386]] }
 0x319   :  { %v755_v43 = vadd.f32 %v754_v47, %v751_v23  ;;  %v533_v35 = vstv %s5090_s12  ;;  %v571_v11 = vstv %s5092_s13  ;;  %v647_v12 = vstv %s5096_s29  ;;  %s5165_s24 = sld [smem:[#allocation15 + $0x406]] }
 0x31a   :  { %v685_v14 = vstv %s5098_s28  ;;  %v723_v37 = vstv %s5100_s0  ;;  %v761_v15 = vstv %s5102_s27  ;;  %v427_v38 = vsel %vm180_vm2, %v426_v57, 0.0  ;;  %s5205_s25 = sld [smem:[#allocation15 + $0x408]] }
 0x31b   :  { %v5066_v0 = vadd.f32 %v758_v61, %v755_v43  ;;  %v469_v39 = vstv %s5104_s2  ;;  %v507_v17 = vstv %s5106_s30  ;;  %v545_v6 = vstv %s5108_s14 }
 0x31c   :  { %v583_v40 = vstv %s5110_s15  ;;  %v621_v41 = vstv %s5112_s3  ;;  %v659_v18 = vstv %s5114_s16  ;;  %v697_v20 = vstv %s5116_s17 }
 0x31d   :  { %v458_v19 = vmul.f32 %v457_v4, %v427_v38  ;;  %v496_v7 = vmul.f32 %v495_v9, %v427_v38  ;;  %v534_v25 = vmul.f32 %v533_v35, %v427_v38  ;;  %v466_v26 = vmul.f32 %v465_v16, %v4957_v22 }
 0x31e   :  { %v572_v27 = vmul.f32 %v571_v11, %v427_v38  ;;  %v610_v28 = vmul.f32 %v609_v36, %v427_v38  ;;  %v648_v29 = vmul.f32 %v647_v12, %v427_v38  ;;  %v686_v30 = vmul.f32 %v685_v14, %v427_v38 }
 0x31f   :  { %v724_v31 = vmul.f32 %v723_v37, %v427_v38  ;;  %v762_v42 = vmul.f32 %v761_v15, %v427_v38  ;;  %v504_v45 = vmul.f32 %v503_v50, %v4957_v22  ;;  %v542_v58 = vmul.f32 %v541_v53, %v4957_v22 }
 0x320   :  { %v580_v55 = vmul.f32 %v579_v49, %v4957_v22  ;;  %v618_v46 = vmul.f32 %v617_v44, %v4957_v22  ;;  %v656_v60 = vmul.f32 %v655_v33, %v4957_v22  ;;  %v694_v62 = vmul.f32 %v693_v2, %v4957_v22 }
 0x321   :  { %v459_v63 = vadd.f32 %v458_v19, %v5041_v5  ;;  %v497_v1 = vadd.f32 %v496_v7, %v5044_v48  ;;  %v535_v3 = vadd.f32 %v534_v25, %v5047_v8  ;;  %v732_v47 = vmul.f32 %v731_v34, %v4957_v22 }
 0x322   :  { %v573_v23 = vadd.f32 %v572_v27, %v5050_v52  ;;  %v611_v59 = vadd.f32 %v610_v28, %v5053_v51  ;;  %v649_v43 = vadd.f32 %v648_v29, %v5056_v54  ;;  %v687_v61 = vadd.f32 %v686_v30, %v5059_v56 }
 0x323   :  { %v725_v5 = vadd.f32 %v724_v31, %v5062_v24  ;;  %v763_v16 = vadd.f32 %v762_v42, %v5066_v0  ;;  %v461_v8 = vstv %s5120_s19  ;;  %v499_v50 = vstv %s5123_s20 }
 0x324   :  { %v537_v53 = vstv %s5127_s21  ;;  %v575_v57 = vstv %s5135_s22  ;;  %v613_v49 = vstv %s5143_s4  ;;  %v651_v52 = vstv %s5150_s1 }
 0x325   :  { %v689_v44 = vstv %s5156_s5  ;;  %v727_v51 = vstv %s5162_s23  ;;  %v765_v33 = vstv %s5165_s24 }
 0x35d   :  { %v432_v32 = vpop.permute.xlu2 %431 }
 0x35e   :  { %v5185_v48 = vsel %vm180_vm2, %v432_v32, 0.0 }
 0x35f   :  { %v470_v54 = vmul.f32 %v469_v39, %v5185_v48  ;;  %v508_v56 = vmul.f32 %v507_v17, %v5185_v48  ;;  %v546_v24 = vmul.f32 %v545_v6, %v5185_v48  ;;  %v584_v0 = vmul.f32 %v583_v40, %v5185_v48 }
 0x360   :  { %v622_v4 = vmul.f32 %v621_v41, %v5185_v48  ;;  %v660_v9 = vmul.f32 %v659_v18, %v5185_v48  ;;  %v698_v34 = vmul.f32 %v697_v20, %v5185_v48 }
 0x375   :  { %v429_v2 = vpop.permute.xlu1 %428 }
 0x376   :  { %v430_v35 = vsel %vm179_vm1, %v429_v2, 0.0 }
 0x377   :  { %v462_v11 = vmul.f32 %v461_v8, %v430_v35  ;;  %v500_v36 = vmul.f32 %v499_v50, %v430_v35  ;;  %v538_v12 = vmul.f32 %v537_v53, %v430_v35  ;;  %v576_v14 = vmul.f32 %v575_v57, %v430_v35 }
 0x378   :  { %v614_v37 = vmul.f32 %v613_v49, %v430_v35  ;;  %v652_v15 = vmul.f32 %v651_v52, %v430_v35  ;;  %v690_v38 = vmul.f32 %v689_v44, %v430_v35  ;;  %v728_v39 = vmul.f32 %v727_v51, %v430_v35 }
 0x379   :  { %v463_v17 = vadd.f32 %v462_v11, %v459_v63  ;;  %v501_v6 = vadd.f32 %v500_v36, %v497_v1  ;;  %v539_v40 = vadd.f32 %v538_v12, %v535_v3  ;;  %v577_v41 = vadd.f32 %v576_v14, %v573_v23 }
 0x37a   :  { %v615_v18 = vadd.f32 %v614_v37, %v611_v59  ;;  %v653_v20 = vadd.f32 %v652_v15, %v649_v43  ;;  %v691_v19 = vadd.f32 %v690_v38, %v687_v61  ;;  %v729_v13 = vadd.f32 %v728_v39, %v725_v5 }
 0x37b   :  { %v467_v7 = vadd.f32 %v466_v26, %v463_v17  ;;  %v505_v25 = vadd.f32 %v504_v45, %v501_v6  ;;  %v543_v27 = vadd.f32 %v542_v58, %v539_v40  ;;  %v581_v28 = vadd.f32 %v580_v55, %v577_v41 }
 0x37c   :  { %v619_v29 = vadd.f32 %v618_v46, %v615_v18  ;;  %v657_v30 = vadd.f32 %v656_v60, %v653_v20  ;;  %v695_v31 = vadd.f32 %v694_v62, %v691_v19  ;;  %v733_v42 = vadd.f32 %v732_v47, %v729_v13 }
 0x37d   :  { %v471_v32 = vadd.f32 %v470_v54, %v467_v7  ;;  %v509_v63 = vadd.f32 %v508_v56, %v505_v25  ;;  %v547_v1 = vadd.f32 %v546_v24, %v543_v27  ;;  %v585_v3 = vadd.f32 %v584_v0, %v581_v28 }
 0x37e   :  { %v736_v23 = vmul.f32 %v735_v21, %v5185_v48  ;;  %v623_v59 = vadd.f32 %v622_v4, %v619_v29  ;;  %v661_v43 = vadd.f32 %v660_v9, %v657_v30  ;;  %v699_v61 = vadd.f32 %v698_v34, %v695_v31 }
 0x37f   :  { %v766_v26 = vmul.f32 %v765_v33, %v430_v35  ;;  %v776_v45 = vmul.f32 0.5, %v471_v32  ;;  %v780_v58 = vmul.f32 0.5, %v509_v63  ;;  %v784_v55 = vmul.f32 0.5, %v547_v1 }
 0x380   :  { %v773_v46 = vstv %s5205_s25  ;;  %v737_v5 = vadd.f32 %v736_v23, %v733_v42  ;;  %v788_v60 = vmul.f32 0.5, %v585_v3  ;;  %v770_v62 = vmul.f32 %v769_v10, %v4957_v22 }
 0x381   :  { %v767_v47 = vadd.f32 %v766_v26, %v763_v16  ;;  %4374 = vtanh.f32 %v776_v45  ;;  %v792_v8 = vmul.f32 0.5, %v623_v59  ;;  %v796_v50 = vmul.f32 0.5, %v661_v43 }
 0x382   :  { %4376 = vtanh.f32 %v780_v58  ;;  %v774_v21 = vmul.f32 %v773_v46, %v5185_v48  ;;  %v800_v57 = vmul.f32 0.5, %v699_v61  ;;  %v804_v49 = vmul.f32 0.5, %v737_v5 }
 0x383   :  { %v771_v53 = vadd.f32 %v770_v62, %v767_v47  ;;  %4378 = vtanh.f32 %v784_v55 }
 0x384   :  { %4380 = vtanh.f32 %v788_v60 }
 0x385   :  { %v775_v52 = vadd.f32 %v774_v21, %v771_v53  ;;  %4382 = vtanh.f32 %v792_v8 }
 0x386   :  { %4384 = vtanh.f32 %v796_v50 }
 0x387   :  { %v4375_v44 = vpop.eup %4374  ;;  %4386 = vtanh.f32 %v800_v57  ;;  %v808_v51 = vmul.f32 0.5, %v775_v52 }
 0x388   :  { %v4377_v33 = vpop.eup %4376  ;;  %v778_v22 = vmul.f32 0.5, %v4375_v44  ;;  %4388 = vtanh.f32 %v804_v49 }
 0x389   :  { %v4379_v10 = vpop.eup %4378  ;;  %v782_v16 = vmul.f32 0.5, %v4377_v33  ;;  %4390 = vtanh.f32 %v808_v51 }
 0x38a   :  { %v4381_v54 = vpop.eup %4380  ;;  %v5215_v56 = vadd.f32 0.5, %v778_v22  ;;  %v786_v48 = vmul.f32 0.5, %v4379_v10 }
 0x38b   :  { %v4383_v24 = vpop.eup %4382  ;;  %v5217_v0 = vadd.f32 0.5, %v782_v16  ;;  %v790_v2 = vmul.f32 0.5, %v4381_v54 }
 0x38c   :  { %v4385_v4 = vpop.eup %4384  ;;  %v5219_v9 = vadd.f32 0.5, %v786_v48  ;;  %v794_v34 = vmul.f32 0.5, %v4383_v24 }
 0x38d   :  { %v4387_v35 = vpop.eup %4386  ;;  %v5221_v11 = vadd.f32 0.5, %v790_v2  ;;  %v798_v36 = vmul.f32 0.5, %v4385_v4 }
 0x38e   :  { %v4389_v12 = vpop.eup %4388  ;;  %v5223_v14 = vadd.f32 0.5, %v794_v34  ;;  %v802_v37 = vmul.f32 0.5, %v4387_v35 }
 0x38f   :  { %v4391_v15 = vpop.eup %4390  ;;  %v5225_v38 = vadd.f32 0.5, %v798_v36  ;;  %v806_v39 = vmul.f32 0.5, %v4389_v12 }
 0x390   :  { %v5227_v17 = vadd.f32 0.5, %v802_v37  ;;  %v810_v6 = vmul.f32 0.5, %v4391_v15 }
 0x391   :  { %v5229_v40 = vadd.f32 0.5, %v806_v39 }
 0x392   :  { %v5231_v41 = vadd.f32 0.5, %v810_v6 }
 0x393   :  { %4614 = dma.done.wait [#allocation4], 27648 }
 0x394   :  { %4615 = vsyncadd [#allocation4], 4294939648  ;;  %v3201_v18 = vld [vmem:[#allocation2 + $0xa8] sm:$0xf]  ;;  %v4101_v20 = vld [vmem:[#allocation2 + $0xb0] sm:$0xf0] }
 0x395   :  { %v3297_v19 = vld [vmem:[#allocation2 + $0x168] sm:$0xf]  ;;  %v3202_v13 = vor.u32 %v4101_v20, %v3201_v18  ;;  %v4125_v7 = vld [vmem:[#allocation2 + $0x170] sm:$0xf0]  ;;  %v3189_v30 = vld [vmem:[#allocation2 + $0x90] sm:$0xf] }
 0x396   :  { %v3393_v25 = vld [vmem:[#allocation2 + $0x228] sm:$0xf]  ;;  %v4149_v27 = vld [vmem:[#allocation2 + $0x230] sm:$0xf0]  ;;  %v3298_v28 = vor.u32 %v4125_v7, %v3297_v19  ;;  %v4098_v31 = vld [vmem:[#allocation2 + $0x98] sm:$0xf0] }
 0x397   :  { %v3394_v29 = vor.u32 %v4149_v27, %v3393_v25  ;;  %v3285_v42 = vld [vmem:[#allocation2 + $0x150] sm:$0xf]  ;;  %2273 = vmatpush.bf16.msra.mxu1 %v3202_v13  ;;  %v3190_v32 = vor.u32 %v4098_v31, %v3189_v30  ;;  %v4122_v63 = vld [vmem:[#allocation2 + $0x158] sm:$0xf0]  ;;  %v3177_v43 = vld [vmem:[#allocation2 + $0x78] sm:$0xf] }
 0x398   :  { %v3381_v1 = vld [vmem:[#allocation2 + $0x210] sm:$0xf]  ;;  %v4146_v3 = vld [vmem:[#allocation2 + $0x218] sm:$0xf0]  ;;  %2286 = vmatpush.bf16.msra.mxu2 %v3298_v28  ;;  %v3286_v23 = vor.u32 %v4122_v63, %v3285_v42  ;;  %v4095_v61 = vld [vmem:[#allocation2 + $0x80] sm:$0xf0] }
 0x399   :  { %2299 = vmatpush.bf16.msra.mxu3 %v3394_v29  ;;  %v3382_v59 = vor.u32 %v4146_v3, %v3381_v1  ;;  %v3273_v26 = vld [vmem:[#allocation2 + $0x138] sm:$0xf]  ;;  %v4119_v45 = vld [vmem:[#allocation2 + $0x140] sm:$0xf0]  ;;  %v3178_v46 = vor.u32 %v4095_v61, %v3177_v43  ;;  %v3165_v5 = vld [vmem:[#allocation2 + $0x60] sm:$0xf] }
 0x39a   :  { %v3369_v58 = vld [vmem:[#allocation2 + $0x1f8] sm:$0xf]  ;;  %v4143_v55 = vld [vmem:[#allocation2 + $0x200] sm:$0xf0]  ;;  %v4092_v60 = vld [vmem:[#allocation2 + $0x68] sm:$0xf0]  ;;  %v3274_v62 = vor.u32 %v4119_v45, %v3273_v26 }
 0x39b   :  { %2274 = vmatpush.bf16.msra.mxu1 %v3190_v32  ;;  %v3370_v47 = vor.u32 %v4143_v55, %v3369_v58  ;;  %v3261_v8 = vld [vmem:[#allocation2 + $0x120] sm:$0xf]  ;;  %v3489_v50 = vld [vmem:[#allocation2 + $0x2e8] sm:$0xf]  ;;  %v4173_v21 = vld [vmem:[#allocation2 + $0x2f0] sm:$0xf0]  ;;  %v3166_v51 = vor.u32 %v4092_v60, %v3165_v5 }
 0x39c   :  { %2287 = vmatpush.bf16.msra.mxu2 %v3286_v23  ;;  %v4116_v53 = vld [vmem:[#allocation2 + $0x128] sm:$0xf0]  ;;  %v3357_v57 = vld [vmem:[#allocation2 + $0x1e0] sm:$0xf]  ;;  %v3490_v52 = vor.u32 %v4173_v21, %v3489_v50  ;;  %v3477_v44 = vld [vmem:[#allocation2 + $0x2d0] sm:$0xf] }
 0x39d   :  { %2300 = vmatpush.bf16.msra.mxu3 %v3382_v59  ;;  %v4140_v49 = vld [vmem:[#allocation2 + $0x1e8] sm:$0xf0]  ;;  %v3153_v33 = vld [vmem:[#allocation2 + $0x48] sm:$0xf]  ;;  %v4089_v22 = vld [vmem:[#allocation2 + $0x50] sm:$0xf0]  ;;  %v3262_v16 = vor.u32 %v4116_v53, %v3261_v8 }
 0x39e   :  { %2312 = vmatpush.bf16.msrb.mxu0 %v3490_v52  ;;  %v4170_v10 = vld [vmem:[#allocation2 + $0x2d8] sm:$0xf0]  ;;  %v3358_v54 = vor.u32 %v4140_v49, %v3357_v57  ;;  %v3249_v48 = vld [vmem:[#allocation2 + $0x108] sm:$0xf]  ;;  %v4113_v24 = vld [vmem:[#allocation2 + $0x110] sm:$0xf0]  ;;  %v3154_v12 = vor.u32 %v4089_v22, %v3153_v33 }
 0x39f   :  { %2275 = vmatpush.bf16.msra.mxu1 %v3178_v46  ;;  %v3345_v2 = vld [vmem:[#allocation2 + $0x1c8] sm:$0xf]  ;;  %v3478_v4 = vor.u32 %v4170_v10, %v3477_v44  ;;  %v4137_v34 = vld [vmem:[#allocation2 + $0x1d0] sm:$0xf0]  ;;  %v3465_v35 = vld [vmem:[#allocation2 + $0x2b8] sm:$0xf]  ;;  %v3250_v6 = vor.u32 %v4113_v24, %v3249_v48 }
 0x3a0   :  { %2288 = vmatpush.bf16.msra.mxu2 %v3274_v62  ;;  %v4167_v36 = vld [vmem:[#allocation2 + $0x2c0] sm:$0xf0]  ;;  %v3141_v37 = vld [vmem:[#allocation2 + $0x30] sm:$0xf]  ;;  %v4086_v15 = vld [vmem:[#allocation2 + $0x38] sm:$0xf0]  ;;  %v3346_v18 = vor.u32 %v4137_v34, %v3345_v2 }
 0x3a1   :  { %2301 = vmatpush.bf16.msra.mxu3 %v3370_v47  ;;  %v3466_v39 = vor.u32 %v4167_v36, %v3465_v35  ;;  %v3237_v20 = vld [vmem:[#allocation2 + $0xf0] sm:$0xf]  ;;  %v3453_v19 = vld [vmem:[#allocation2 + $0x2a0] sm:$0xf]  ;;  %v4164_v13 = vld [vmem:[#allocation2 + $0x2a8] sm:$0xf0]  ;;  %v3142_v28 = vor.u32 %v4086_v15, %v3141_v37 }
 0x3a2   :  { %2313 = vmatpush.bf16.msrb.mxu0 %v3478_v4  ;;  %v4110_v7 = vld [vmem:[#allocation2 + $0xf8] sm:$0xf0]  ;;  %v3333_v25 = vld [vmem:[#allocation2 + $0x1b0] sm:$0xf]  ;;  %v3129_v29 = vld [vmem:[#allocation2 + $0x18] sm:$0xf]  ;;  %v3454_v31 = vor.u32 %v4164_v13, %v3453_v19  ;;  %v5243_v19 = vpack.c.bf16 %v5219_v9, %v5219_v9 }
 0x3a3   :  { %2276 = vmatpush.bf16.msra.mxu1 %v3166_v51  ;;  %v4134_v27 = vld [vmem:[#allocation2 + $0x1b8] sm:$0xf0]  ;;  %v4083_v30 = vld [vmem:[#allocation2 + $0x20] sm:$0xf0]  ;;  %v3238_v42 = vor.u32 %v4110_v7, %v3237_v20  ;;  %v3225_v63 = vld [vmem:[#allocation2 + $0xd8] sm:$0xf] }
 0x3a4   :  { %2289 = vmatpush.bf16.msra.mxu2 %v3262_v16  ;;  %v3334_v32 = vor.u32 %v4134_v27, %v3333_v25  ;;  %v4107_v1 = vld [vmem:[#allocation2 + $0xe0] sm:$0xf0]  ;;  %v3441_v3 = vld [vmem:[#allocation2 + $0x288] sm:$0xf]  ;;  %v3321_v23 = vld [vmem:[#allocation2 + $0x198] sm:$0xf]  ;;  %v3130_v61 = vor.u32 %v4083_v30, %v3129_v29 }
 0x3a5   :  { %2302 = vmatpush.bf16.msra.mxu3 %v3358_v54  ;;  %v4131_v59 = vld [vmem:[#allocation2 + $0x1a0] sm:$0xf0]  ;;  %v4161_v43 = vld [vmem:[#allocation2 + $0x290] sm:$0xf0]  ;;  %v3117_v26 = vld [vmem:[#allocation2] sm:$0xf]  ;;  %v3226_v46 = vor.u32 %v4107_v1, %v3225_v63 }
 0x3a6   :  { %2314 = vmatpush.bf16.msrb.mxu0 %v3466_v39  ;;  %v4080_v45 = vld [vmem:[#allocation2 + $0x8] sm:$0xf0]  ;;  %v3213_v58 = vld [vmem:[#allocation2 + $0xc0] sm:$0xf]  ;;  %v3442_v55 = vor.u32 %v4161_v43, %v3441_v3  ;;  %v3322_v5 = vor.u32 %v4131_v59, %v3321_v23  ;;  %v3429_v62 = vld [vmem:[#allocation2 + $0x270] sm:$0xf] }
 0x3a7   :  { %2277 = vmatpush.bf16.msra.mxu1 %v3154_v12  ;;  %v4104_v60 = vld [vmem:[#allocation2 + $0xc8] sm:$0xf0]  ;;  %v4158_v47 = vld [vmem:[#allocation2 + $0x278] sm:$0xf0]  ;;  %v3309_v8 = vld [vmem:[#allocation2 + $0x180] sm:$0xf]  ;;  %v3118_v52 = vor.u32 %v4080_v45, %v3117_v26  ;;  %v5235_v12 = vpack.c.bf16 %v5215_v56, %v5215_v56 }
 0x3a8   :  { %2290 = vmatpush.bf16.msra.mxu2 %v3250_v6  ;;  %v4128_v50 = vld [vmem:[#allocation2 + $0x188] sm:$0xf0]  ;;  %v3585_v21 = vld [vmem:[#allocation2 + $0x3a8] sm:$0xf]  ;;  %v4197_v53 = vld [vmem:[#allocation2 + $0x3b0] sm:$0xf0]  ;;  %v3430_v33 = vor.u32 %v4158_v47, %v3429_v62  ;;  %v3214_v22 = vor.u32 %v4104_v60, %v3213_v58  ;;  %v5239_v6 = vpack.c.bf16 %v5217_v0, %v5217_v0  ;;  %v5250_v58 = vpack.c.bf16 %v5221_v11, %v5221_v11 }
 0x3a9   :  { %2303 = vmatpush.bf16.msra.mxu3 %v3346_v18  ;;  %v3681_v57 = vld [vmem:[#allocation2 + $0x468] sm:$0xf]  ;;  %v4221_v49 = vld [vmem:[#allocation2 + $0x470] sm:$0xf0]  ;;  %v3310_v10 = vor.u32 %v4128_v50, %v3309_v8  ;;  %v3417_v16 = vld [vmem:[#allocation2 + $0x258] sm:$0xf]  ;;  %v3586_v48 = vor.u32 %v4197_v53, %v3585_v21 }
 0x3aa   :  { %2315 = vmatpush.bf16.msrb.mxu0 %v3454_v31  ;;  %v3777_v44 = vld [vmem:[#allocation2 + $0x528] sm:$0xf]  ;;  %v4245_v51 = vld [vmem:[#allocation2 + $0x530] sm:$0xf0]  ;;  %v4155_v54 = vld [vmem:[#allocation2 + $0x260] sm:$0xf0]  ;;  %v3682_v24 = vor.u32 %v4221_v49, %v3681_v57 }
 0x3ab   :  { %2278 = vmatpush.bf16.msra.mxu1 %v3142_v28  ;;  %v3573_v2 = vld [vmem:[#allocation2 + $0x390] sm:$0xf]  ;;  %v3778_v4 = vor.u32 %v4245_v51, %v3777_v44  ;;  %v4194_v34 = vld [vmem:[#allocation2 + $0x398] sm:$0xf0]  ;;  %v3418_v39 = vor.u32 %v4155_v54, %v3417_v16  ;;  %v3405_v18 = vld [vmem:[#allocation2 + $0x240] sm:$0xf] }
 0x3ac   :  { %2291 = vmatpush.bf16.msra.mxu2 %v3238_v42  ;;  %v3669_v35 = vld [vmem:[#allocation2 + $0x450] sm:$0xf]  ;;  %v4218_v36 = vld [vmem:[#allocation2 + $0x458] sm:$0xf0]  ;;  %v4152_v20 = vld [vmem:[#allocation2 + $0x248] sm:$0xf0]  ;;  %v3574_v56 = vor.u32 %v4194_v34, %v3573_v2 }
 0x3ad   :  { %2304 = vmatpush.bf16.msra.mxu3 %v3334_v32  ;;  %v3765_v37 = vld [vmem:[#allocation2 + $0x510] sm:$0xf]  ;;  %v4242_v15 = vld [vmem:[#allocation2 + $0x518] sm:$0xf0]  ;;  %v3670_v13 = vor.u32 %v4218_v36, %v3669_v35  ;;  %v3561_v7 = vld [vmem:[#allocation2 + $0x378] sm:$0xf]  ;;  %v3406_v32 = vor.u32 %v4152_v20, %v3405_v18 }
 0x3ae   :  { %2316 = vmatpush.bf16.msrb.mxu0 %v3442_v55  ;;  %v3873_v25 = vld [vmem:[#allocation2 + $0x5e8] sm:$0xf]  ;;  %v4269_v27 = vld [vmem:[#allocation2 + $0x5f0] sm:$0xf0]  ;;  %v3766_v28 = vor.u32 %v4242_v15, %v3765_v37  ;;  %v4191_v29 = vld [vmem:[#allocation2 + $0x380] sm:$0xf0] }
 0x3af   :  { %2279 = vmatpush.bf16.msra.mxu1 %v3130_v61  ;;  %v3657_v0 = vld [vmem:[#allocation2 + $0x438] sm:$0xf]  ;;  %v4215_v30 = vld [vmem:[#allocation2 + $0x440] sm:$0xf0]  ;;  %v3874_v9 = vor.u32 %v4269_v27, %v3873_v25  ;;  %v3562_v63 = vor.u32 %v4191_v29, %v3561_v7  ;;  %v3549_v3 = vld [vmem:[#allocation2 + $0x360] sm:$0xf] }
 0x3b0   :  { %2292 = vmatpush.bf16.msra.mxu2 %v3226_v46  ;;  %v3753_v31 = vld [vmem:[#allocation2 + $0x4f8] sm:$0xf]  ;;  %v4239_v42 = vld [vmem:[#allocation2 + $0x500] sm:$0xf0]  ;;  %v3658_v1 = vor.u32 %v4215_v30, %v3657_v0  ;;  %v3861_v23 = vld [vmem:[#allocation2 + $0x5d0] sm:$0xf] }
 0x3b1   :  { %2305 = vmatpush.bf16.msra.mxu3 %v3322_v5  ;;  %v4266_v59 = vld [vmem:[#allocation2 + $0x5d8] sm:$0xf0]  ;;  %v3754_v43 = vor.u32 %v4239_v42, %v3753_v31  ;;  %v4188_v61 = vld [vmem:[#allocation2 + $0x368] sm:$0xf0]  ;;  %v3645_v26 = vld [vmem:[#allocation2 + $0x420] sm:$0xf] }
 0x3b2   :  { %2317 = vmatpush.bf16.msrb.mxu0 %v3430_v33  ;;  %v4212_v45 = vld [vmem:[#allocation2 + $0x428] sm:$0xf0]  ;;  %v3741_v55 = vld [vmem:[#allocation2 + $0x4e0] sm:$0xf]  ;;  %v3862_v5 = vor.u32 %v4266_v59, %v3861_v23  ;;  %v3550_v60 = vor.u32 %v4188_v61, %v3549_v3  ;;  %v3537_v47 = vld [vmem:[#allocation2 + $0x348] sm:$0xf] }
 0x3b3   :  { %2280 = vmatpush.bf16.msra.mxu1 %v3118_v52  ;;  %v4236_v46 = vld [vmem:[#allocation2 + $0x4e8] sm:$0xf0]  ;;  %v3646_v62 = vor.u32 %v4212_v45, %v3645_v26  ;;  %v3849_v8 = vld [vmem:[#allocation2 + $0x5b8] sm:$0xf]  ;;  %v4263_v50 = vld [vmem:[#allocation2 + $0x5c0] sm:$0xf0] }
 0x3b4   :  { %2293 = vmatpush.bf16.msra.mxu2 %v3214_v22  ;;  %v3742_v21 = vor.u32 %v4236_v46, %v3741_v55  ;;  %v4185_v53 = vld [vmem:[#allocation2 + $0x350] sm:$0xf0]  ;;  %v3633_v57 = vld [vmem:[#allocation2 + $0x408] sm:$0xf]  ;;  %v3850_v44 = vor.u32 %v4263_v50, %v3849_v8  ;;  %v3525_v22 = vld [vmem:[#allocation2 + $0x330] sm:$0xf] }
 0x3b5   :  { %2306 = vmatpush.bf16.msra.mxu3 %v3310_v10  ;;  %v4209_v49 = vld [vmem:[#allocation2 + $0x410] sm:$0xf0]  ;;  %v3729_v11 = vld [vmem:[#allocation2 + $0x4c8] sm:$0xf]  ;;  %v3538_v51 = vor.u32 %v4185_v53, %v3537_v47  ;;  %v3837_v10 = vld [vmem:[#allocation2 + $0x5a0] sm:$0xf] }
 0x3b6   :  { %2281 = vmatmul.bf16.vlgmr.msra.gmra.mxu1 %v5235_v12  ;;  %2318 = vmatpush.bf16.msrb.mxu0 %v3418_v39  ;;  %v4233_v52 = vld [vmem:[#allocation2 + $0x4d0] sm:$0xf0]  ;;  %v3634_v33 = vor.u32 %v4209_v49, %v3633_v57  ;;  %v4260_v16 = vld [vmem:[#allocation2 + $0x5a8] sm:$0xf0]  ;;  %v4206_v2 = vld [vmem:[#allocation2 + $0x3f8] sm:$0xf0] }
 0x3b7   :  { %2325 = vmatpush.bf16.msrb.mxu1 %v3586_v48  ;;  %2294 = vmatmul.bf16.vlgmr.msra.gmra.mxu2 %v5239_v6  ;;  %v3730_v54 = vor.u32 %v4233_v52, %v3729_v11  ;;  %v4182_v48 = vld [vmem:[#allocation2 + $0x338] sm:$0xf0]  ;;  %v3838_v35 = vor.u32 %v4260_v16, %v3837_v10  ;;  %v3513_v15 = vld [vmem:[#allocation2 + $0x318] sm:$0xf]  ;;  %v3825_v39 = vld [vmem:[#allocation2 + $0x588] sm:$0xf]  ;;  %v5259_v10 = vpack.c.bf16 %v5227_v17, %v5227_v17 }
 0x3b8   :  { %2338 = vmatpush.bf16.msrb.mxu2 %v3682_v24  ;;  %2307 = vmatmul.bf16.vlgmr.msra.gmra.mxu3 %v5243_v19  ;;  %v3621_v24 = vld [vmem:[#allocation2 + $0x3f0] sm:$0xf]  ;;  %v4230_v34 = vld [vmem:[#allocation2 + $0x4b8] sm:$0xf0]  ;;  %v3526_v36 = vor.u32 %v4182_v48, %v3525_v22  ;;  %v4257_v18 = vld [vmem:[#allocation2 + $0x590] sm:$0xf0]  ;;  %v5263_v16 = vpack.c.bf16 %v5223_v14, %v5223_v14 }
 0x3b9   :  { %2351 = vmatpush.bf16.msrb.mxu3 %v3778_v4  ;;  %v3717_v4 = vld [vmem:[#allocation2 + $0x4b0] sm:$0xf]  ;;  %v3622_v37 = vor.u32 %v4206_v2, %v3621_v24  ;;  %v4203_v7 = vld [vmem:[#allocation2 + $0x3e0] sm:$0xf0]  ;;  %v3705_v25 = vld [vmem:[#allocation2 + $0x498] sm:$0xf]  ;;  %v3826_v0 = vor.u32 %v4257_v18, %v3825_v39 }
 0x3ba   :  { %2319 = vmatpush.bf16.msrb.mxu0 %v3406_v32  ;;  %v3718_v20 = vor.u32 %v4230_v34, %v3717_v4  ;;  %v4227_v27 = vld [vmem:[#allocation2 + $0x4a0] sm:$0xf0]  ;;  %v4176_v29 = vld [vmem:[#allocation2 + $0x308] sm:$0xf0]  ;;  %v3597_v42 = vld [vmem:[#allocation2 + $0x3c0] sm:$0xf] }
 0x3bb   :  { %2326 = vmatpush.bf16.msrb.mxu1 %v3574_v56  ;;  %v4179_v56 = vld [vmem:[#allocation2 + $0x320] sm:$0xf0]  ;;  %v3813_v32 = vld [vmem:[#allocation2 + $0x570] sm:$0xf]  ;;  %v3693_v3 = vld [vmem:[#allocation2 + $0x480] sm:$0xf] }
 0x3bc   :  { %2339 = vmatpush.bf16.msrb.mxu2 %v3670_v13  ;;  %v3609_v13 = vld [vmem:[#allocation2 + $0x3d8] sm:$0xf]  ;;  %v3514_v30 = vor.u32 %v4179_v56, %v3513_v15  ;;  %v4224_v23 = vld [vmem:[#allocation2 + $0x488] sm:$0xf0]  ;;  %v3969_v59 = vld [vmem:[#allocation2 + $0x6a8] sm:$0xf] }
 0x3bd   :  { %2352 = vmatpush.bf16.msrb.mxu3 %v3766_v28  ;;  %2320 = vmatmul.bf16.vlgmr.msrb.gmra.mxu0 %v5250_v58  ;;  %v3501_v28 = vld [vmem:[#allocation2 + $0x300] sm:$0xf]  ;;  %v3610_v31 = vor.u32 %v4203_v7, %v3609_v13  ;;  %v4100_v61 = vld [vmem:[#allocation2 + $0xac] sm:$0xf]  ;;  %v3203_v26 = vld [vmem:[#allocation2 + $0xb4] sm:$0xf0]  ;;  %v3694_v8 = vor.u32 %v4224_v23, %v3693_v3 }
 0x3be   :  { %2364 = vmatpush.bf16.msra.mxu0 %v3874_v9  ;;  %v4254_v9 = vld [vmem:[#allocation2 + $0x578] sm:$0xf0]  ;;  %v4124_v45 = vld [vmem:[#allocation2 + $0x16c] sm:$0xf]  ;;  %v3299_v55 = vld [vmem:[#allocation2 + $0x174] sm:$0xf0] }
 0x3bf   :  { %2327 = vmatpush.bf16.msrb.mxu1 %v3562_v63  ;;  %v3706_v63 = vor.u32 %v4227_v27, %v3705_v25  ;;  %v3814_v46 = vor.u32 %v4254_v9, %v3813_v32  ;;  %v4251_v47 = vld [vmem:[#allocation2 + $0x560] sm:$0xf0]  ;;  %v3302_v53 = vor.u32 %v4124_v45, %v3299_v55  ;;  %v3957_v57 = vld [vmem:[#allocation2 + $0x690] sm:$0xf]  ;;  %v4290_v49 = vld [vmem:[#allocation2 + $0x698] sm:$0xf0] }
 0x3c0   :  { %2340 = vmatpush.bf16.msrb.mxu2 %v3658_v1  ;;  %v4200_v1 = vld [vmem:[#allocation2 + $0x3c8] sm:$0xf0]  ;;  %v4097_v11 = vld [vmem:[#allocation2 + $0x94] sm:$0xf]  ;;  %v3191_v52 = vld [vmem:[#allocation2 + $0x9c] sm:$0xf0]  ;;  %v3958_v24 = vor.u32 %v4290_v49, %v3957_v57 }
 0x3c1   :  { %2353 = vmatpush.bf16.msrb.mxu3 %v3754_v43  ;;  %v4293_v43 = vld [vmem:[#allocation2 + $0x6b0] sm:$0xf0]  ;;  %v4248_v48 = vld [vmem:[#allocation2 + $0x548] sm:$0xf0]  ;;  %v3395_v4 = vld [vmem:[#allocation2 + $0x234] sm:$0xf0] }
 0x3c2   :  { %2365 = vmatpush.bf16.msra.mxu0 %v3862_v5  ;;  %v3502_v5 = vor.u32 %v4176_v29, %v3501_v28  ;;  %v3970_v50 = vor.u32 %v4293_v43, %v3969_v59  ;;  %v4148_v2 = vld [vmem:[#allocation2 + $0x22c] sm:$0xf]  ;;  %v3179_v17 = vld [vmem:[#allocation2 + $0x84] sm:$0xf0]  ;;  %v4118_v15 = vld [vmem:[#allocation2 + $0x13c] sm:$0xf] }
 0x3c3   :  { %2328 = vmatpush.bf16.msrb.mxu1 %v3550_v60  ;;  %v3598_v60 = vor.u32 %v4200_v1, %v3597_v42  ;;  %v3275_v14 = vld [vmem:[#allocation2 + $0x144] sm:$0xf0]  ;;  %v3398_v18 = vor.u32 %v4148_v2, %v3395_v4  ;;  %v4145_v56 = vld [vmem:[#allocation2 + $0x214] sm:$0xf]  ;;  %v3383_v13 = vld [vmem:[#allocation2 + $0x21c] sm:$0xf0]  ;;  %v5270_v42 = vpack.c.bf16 %v5229_v40, %v5229_v40 }
 0x3c4   :  { %2341 = vmatpush.bf16.msrb.mxu2 %v3646_v62  ;;  %v3801_v62 = vld [vmem:[#allocation2 + $0x558] sm:$0xf]  ;;  %v3278_v25 = vor.u32 %v4118_v15, %v3275_v14  ;;  %v3933_v27 = vld [vmem:[#allocation2 + $0x660] sm:$0xf]  ;;  %v4284_v28 = vld [vmem:[#allocation2 + $0x668] sm:$0xf0]  ;;  %v3386_v32 = vor.u32 %v4145_v56, %v3383_v13 }
 0x3c5   :  { %2354 = vmatpush.bf16.msrb.mxu3 %v3742_v21  ;;  %v3206_v21 = vor.u32 %v4100_v61, %v3203_v26  ;;  %v3802_v22 = vor.u32 %v4251_v47, %v3801_v62  ;;  %v4091_v29 = vld [vmem:[#allocation2 + $0x64] sm:$0xf]  ;;  %v3934_v9 = vor.u32 %v4284_v28, %v3933_v27  ;;  %v3371_v1 = vld [vmem:[#allocation2 + $0x204] sm:$0xf0]  ;;  %v4281_v43 = vld [vmem:[#allocation2 + $0x650] sm:$0xf0] }
 0x3c6   :  { %2366 = vmatpush.bf16.msra.mxu0 %v3850_v44  ;;  %v4121_v44 = vld [vmem:[#allocation2 + $0x154] sm:$0xf]  ;;  %v3921_v59 = vld [vmem:[#allocation2 + $0x648] sm:$0xf]  ;;  %v4088_v61 = vld [vmem:[#allocation2 + $0x4c] sm:$0xf] }
 0x3c7   :  { %2329 = vmatpush.bf16.msrb.mxu1 %v3538_v51  ;;  %v3287_v51 = vld [vmem:[#allocation2 + $0x15c] sm:$0xf0]  ;;  %v3155_v26 = vld [vmem:[#allocation2 + $0x54] sm:$0xf0]  ;;  %v4112_v45 = vld [vmem:[#allocation2 + $0x10c] sm:$0xf] }
 0x3c8   :  { %2342 = vmatpush.bf16.msrb.mxu2 %v3634_v33  ;;  %v5255_v33 = vpack.c.bf16 %v5225_v38, %v5225_v38  ;;  %v3194_v38 = vor.u32 %v4097_v11, %v3191_v52  ;;  %v3290_v34 = vor.u32 %v4121_v44, %v3287_v51  ;;  %v3251_v55 = vld [vmem:[#allocation2 + $0x114] sm:$0xf0]  ;;  %v3158_v62 = vor.u32 %v4088_v61, %v3155_v26  ;;  %v4109_v57 = vld [vmem:[#allocation2 + $0xf4] sm:$0xf]  ;;  %v3239_v49 = vld [vmem:[#allocation2 + $0xfc] sm:$0xf0] }
 0x3c9   :  { %2355 = vmatpush.bf16.msrb.mxu3 %v3730_v54  ;;  %v3789_v54 = vld [vmem:[#allocation2 + $0x540] sm:$0xf]  ;;  %v3254_v47 = vor.u32 %v4112_v45, %v3251_v55  ;;  %v4136_v44 = vld [vmem:[#allocation2 + $0x1cc] sm:$0xf]  ;;  %v3347_v51 = vld [vmem:[#allocation2 + $0x1d4] sm:$0xf0]  ;;  %v5275_v26 = vpack.c.bf16 %v5231_v41, %v5231_v41 }
 0x3ca   :  { %2367 = vmatpush.bf16.msra.mxu0 %v3838_v35  ;;  %v3945_v35 = vld [vmem:[#allocation2 + $0x678] sm:$0xf]  ;;  %v3790_v39 = vor.u32 %v4248_v48, %v3789_v54  ;;  %v3242_v54 = vor.u32 %v4109_v57, %v3239_v49  ;;  %v4082_v2 = vld [vmem:[#allocation2 + $0x1c] sm:$0xf]  ;;  %v3131_v4 = vld [vmem:[#allocation2 + $0x24] sm:$0xf0] }
 0x3cb   :  { %2330 = vmatpush.bf16.msrb.mxu1 %v3526_v36  ;;  %v4287_v36 = vld [vmem:[#allocation2 + $0x680] sm:$0xf0]  ;;  %v3897_v48 = vld [vmem:[#allocation2 + $0x618] sm:$0xf]  ;;  %v3335_v15 = vld [vmem:[#allocation2 + $0x1bc] sm:$0xf0]  ;;  %v3134_v14 = vor.u32 %v4082_v2, %v3131_v4 }
 0x3cc   :  { %2343 = vmatpush.bf16.msrb.mxu2 %v3622_v37  ;;  %v4094_v37 = vld [vmem:[#allocation2 + $0x7c] sm:$0xf]  ;;  %v3119_v56 = vld [vmem:[#allocation2 + $0xc] sm:$0xf0]  ;;  %v4103_v13 = vld [vmem:[#allocation2 + $0xc4] sm:$0xf] }
 0x3cd   :  { %2356 = vmatpush.bf16.msrb.mxu3 %v3718_v20  ;;  %v3946_v20 = vor.u32 %v4287_v36, %v3945_v35  ;;  %v3182_v7 = vor.u32 %v4094_v37, %v3179_v17  ;;  %v3350_v35 = vor.u32 %v4136_v44, %v3347_v51  ;;  %v3885_v37 = vld [vmem:[#allocation2 + $0x600] sm:$0xf]  ;;  %v4133_v17 = vld [vmem:[#allocation2 + $0x1b4] sm:$0xf]  ;;  %v3491_v27 = vld [vmem:[#allocation2 + $0x2f4] sm:$0xf0] }
 0x3ce   :  { %2368 = vmatpush.bf16.msra.mxu0 %v3826_v0  ;;  %v3167_v0 = vld [vmem:[#allocation2 + $0x6c] sm:$0xf0]  ;;  %v4196_v28 = vld [vmem:[#allocation2 + $0x3ac] sm:$0xf]  ;;  %v3479_v45 = vld [vmem:[#allocation2 + $0x2dc] sm:$0xf0] }
 0x3cf   :  { %2331 = vmatpush.bf16.msrb.mxu1 %v3514_v30  ;;  %v4115_v30 = vld [vmem:[#allocation2 + $0x124] sm:$0xf]  ;;  %v3170_v3 = vor.u32 %v4091_v29, %v3167_v0  ;;  %v3587_v29 = vld [vmem:[#allocation2 + $0x3b4] sm:$0xf0]  ;;  %v3338_v0 = vor.u32 %v4133_v17, %v3335_v15  ;;  %v4193_v55 = vld [vmem:[#allocation2 + $0x394] sm:$0xf] }
 0x3d0   :  { %2344 = vmatpush.bf16.msrb.mxu2 %v3610_v31  ;;  %v3263_v31 = vld [vmem:[#allocation2 + $0x12c] sm:$0xf0]  ;;  %v3779_v41 = vld [vmem:[#allocation2 + $0x534] sm:$0xf0]  ;;  %v3467_v49 = vld [vmem:[#allocation2 + $0x2c4] sm:$0xf0] }
 0x3d1   :  { %2357 = vmatpush.bf16.msrb.mxu3 %v3706_v63  ;;  %v4142_v63 = vld [vmem:[#allocation2 + $0x1fc] sm:$0xf]  ;;  %v3266_v23 = vor.u32 %v4115_v30, %v3263_v31  ;;  %v4220_v31 = vld [vmem:[#allocation2 + $0x46c] sm:$0xf]  ;;  %v3659_v51 = vld [vmem:[#allocation2 + $0x444] sm:$0xf0] }
 0x3d2   :  { %2369 = vmatpush.bf16.msra.mxu0 %v3814_v46  ;;  %v3374_v40 = vor.u32 %v4142_v63, %v3371_v1  ;;  %v3922_v46 = vor.u32 %v4281_v43, %v3921_v59  ;;  %v4130_v1 = vld [vmem:[#allocation2 + $0x19c] sm:$0xf]  ;;  %v3590_v59 = vor.u32 %v4196_v28, %v3587_v29  ;;  %v4169_v43 = vld [vmem:[#allocation2 + $0x2d4] sm:$0xf]  ;;  %v4163_v2 = vld [vmem:[#allocation2 + $0x2a4] sm:$0xf] }
 0x3d3   :  { %2332 = vmatpush.bf16.msrb.mxu1 %v3502_v5  ;;  %v4139_v5 = vld [vmem:[#allocation2 + $0x1e4] sm:$0xf]  ;;  %v4214_v44 = vld [vmem:[#allocation2 + $0x43c] sm:$0xf]  ;;  %v4241_v4 = vld [vmem:[#allocation2 + $0x514] sm:$0xf] }
 0x3d4   :  { %2345 = vmatpush.bf16.msrb.mxu2 %v3598_v60  ;;  %v3359_v60 = vld [vmem:[#allocation2 + $0x1ec] sm:$0xf0]  ;;  %v4211_v17 = vld [vmem:[#allocation2 + $0x424] sm:$0xf]  ;;  %v3539_v28 = vld [vmem:[#allocation2 + $0x354] sm:$0xf0] }
 0x3d5   :  { %2358 = vmatpush.bf16.msrb.mxu3 %v3694_v8  ;;  %v3909_v8 = vld [vmem:[#allocation2 + $0x630] sm:$0xf]  ;;  %v3362_v11 = vor.u32 %v4139_v5, %v3359_v60  ;;  %v3671_v5 = vld [vmem:[#allocation2 + $0x45c] sm:$0xf0]  ;;  %v4208_v29 = vld [vmem:[#allocation2 + $0x40c] sm:$0xf] }
 0x3d6   :  { %2370 = vmatpush.bf16.msra.mxu0 %v3802_v22  ;;  %2333 = vmatmul.bf16.vlgmr.msrb.gmra.mxu1 %v5263_v16  ;;  %v3647_v15 = vld [vmem:[#allocation2 + $0x42c] sm:$0xf0]  ;;  %s5375_s10 = sld [smem:[#allocation49_spill]] }
 0x3d7   :  { %2377 = vmatpush.bf16.msra.mxu1 %v3970_v50  ;;  %2346 = vmatmul.bf16.vlgmr.msrb.gmra.mxu2 %v5255_v33  ;;  %v4278_v50 = vld [vmem:[#allocation2 + $0x638] sm:$0xf0] }
 0x3d8   :  { %2390 = vmatpush.bf16.msra.mxu2 %v3206_v21  ;;  %2359 = vmatmul.bf16.vlgmr.msrb.gmra.mxu3 %v5259_v10  ;;  %v4085_v21 = vld [vmem:[#allocation2 + $0x34] sm:$0xf]  ;;  %v3910_v52 = vor.u32 %v4278_v50, %v3909_v8  ;;  %v3482_v8 = vor.u32 %v4169_v43, %v3479_v45  ;;  %v3527_v43 = vld [vmem:[#allocation2 + $0x33c] sm:$0xf0] }
 0x3d9   :  { %2403 = vmatpush.bf16.msra.mxu3 %v3302_v53  ;;  %v3143_v53 = vld [vmem:[#allocation2 + $0x3c] sm:$0xf0] }
 0x3da   :  { %2371 = vmatpush.bf16.msra.mxu0 %v3790_v39  ;;  %v3146_v22 = vor.u32 %v4085_v21, %v3143_v53  ;;  %v4166_v21 = vld [vmem:[#allocation2 + $0x2bc] sm:$0xf]  ;;  %v4244_v53 = vld [vmem:[#allocation2 + $0x52c] sm:$0xf]  ;;  %v3623_v45 = vld [vmem:[#allocation2 + $0x3fc] sm:$0xf0] }
 0x3db   :  { %2378 = vmatpush.bf16.msra.mxu1 %v3958_v24  ;;  %v4275_v24 = vld [vmem:[#allocation2 + $0x620] sm:$0xf0] }
 0x3dc   :  { %2391 = vmatpush.bf16.msra.mxu2 %v3194_v38  ;;  %v4106_v38 = vld [vmem:[#allocation2 + $0xdc] sm:$0xf]  ;;  %v3898_v36 = vor.u32 %v4275_v24, %v3897_v48  ;;  %v3470_v48 = vor.u32 %v4166_v21, %v3467_v49  ;;  %v3515_v21 = vld [vmem:[#allocation2 + $0x324] sm:$0xf0]  ;;  %v3407_v49 = vld [vmem:[#allocation2 + $0x24c] sm:$0xf0] }
 0x3dd   :  { %2404 = vmatpush.bf16.msra.mxu3 %v3290_v34  ;;  %2372 = vmatmul.bf16.vlgmr.msra.gmra.mxu0 %v5270_v42  ;;  %v3227_v34 = vld [vmem:[#allocation2 + $0xe4] sm:$0xf0] }
 0x3de   :  { %2416 = vmatpush.bf16.msrb.mxu0 %v3398_v18  ;;  %v3230_v39 = vor.u32 %v4106_v38, %v3227_v34  ;;  %v4272_v18 = vld [vmem:[#allocation2 + $0x608] sm:$0xf0]  ;;  %v3767_v38 = vld [vmem:[#allocation2 + $0x51c] sm:$0xf0]  ;;  %v3662_v34 = vor.u32 %v4214_v44, %v3659_v51  ;;  %v4175_v51 = vld [vmem:[#allocation2 + $0x304] sm:$0xf] }
 0x3df   :  { %2379 = vmatpush.bf16.msra.mxu1 %v3946_v20  ;;  %v4079_v20 = vld [vmem:[#allocation2 + $0x4] sm:$0xf]  ;;  %v3886_v30 = vor.u32 %v4272_v18, %v3885_v37  ;;  %v3551_v37 = vld [vmem:[#allocation2 + $0x36c] sm:$0xf0] }
 0x3e0   :  { %2392 = vmatpush.bf16.msra.mxu2 %v3182_v7  ;;  %v3215_v7 = vld [vmem:[#allocation2 + $0xcc] sm:$0xf0] }
 0x3e1   :  { %2405 = vmatpush.bf16.msra.mxu3 %v3278_v25  ;;  %v4172_v25 = vld [vmem:[#allocation2 + $0x2ec] sm:$0xf]  ;;  %v3218_v63 = vor.u32 %v4103_v13, %v3215_v7  ;;  %v3755_v13 = vld [vmem:[#allocation2 + $0x504] sm:$0xf0]  ;;  %v3650_v7 = vor.u32 %v4211_v17, %v3647_v15  ;;  %v4102_v17 = vld [vmem:[#allocation2 + $0xb8] sm:$0xf0] }
 0x3e2   :  { %2417 = vmatpush.bf16.msrb.mxu0 %v3386_v32  ;;  %v3683_v32 = vld [vmem:[#allocation2 + $0x474] sm:$0xf0] }
 0x3e3   :  { %2380 = vmatpush.bf16.msra.mxu1 %v3934_v9  ;;  %v3122_v9 = vor.u32 %v4079_v20, %v3119_v56  ;;  %v3686_v61 = vor.u32 %v4220_v31, %v3683_v32  ;;  %v4160_v20 = vld [vmem:[#allocation2 + $0x28c] sm:$0xf]  ;;  %v4238_v56 = vld [vmem:[#allocation2 + $0x4fc] sm:$0xf] }
 0x3e4   :  { %2393 = vmatpush.bf16.msra.mxu2 %v3170_v3  ;;  %v3323_v3 = vld [vmem:[#allocation2 + $0x1a4] sm:$0xf0] }
 0x3e5   :  { %2406 = vmatpush.bf16.msra.mxu3 %v3266_v23  ;;  %v3494_v23 = vor.u32 %v4172_v25, %v3491_v27  ;;  %v3326_v60 = vor.u32 %v4130_v1, %v3323_v3  ;;  %v3443_v25 = vld [vmem:[#allocation2 + $0x294] sm:$0xf0]  ;;  %v4184_v27 = vld [vmem:[#allocation2 + $0x34c] sm:$0xf]  ;;  %v3743_v1 = vld [vmem:[#allocation2 + $0x4ec] sm:$0xf0] }
 0x3e6   :  { %2418 = vmatpush.bf16.msrb.mxu0 %v3374_v40  ;;  %v3575_v40 = vld [vmem:[#allocation2 + $0x39c] sm:$0xf0]  ;;  %v3446_v31 = vor.u32 %v4160_v20, %v3443_v25  ;;  %v3542_v32 = vor.u32 %v4184_v27, %v3539_v28  ;;  %v3707_v20 = vld [vmem:[#allocation2 + $0x4a4] sm:$0xf0]  ;;  %v4265_v27 = vld [vmem:[#allocation2 + $0x5d4] sm:$0xf] }
 0x3e7   :  { %2381 = vmatpush.bf16.msra.mxu1 %v3922_v46  ;;  %v4217_v46 = vld [vmem:[#allocation2 + $0x454] sm:$0xf]  ;;  %v3578_v50 = vor.u32 %v4193_v55, %v3575_v40  ;;  %v3863_v28 = vld [vmem:[#allocation2 + $0x5dc] sm:$0xf0] }
 0x3e8   :  { %2394 = vmatpush.bf16.msra.mxu2 %v3158_v62  ;;  %v4127_v62 = vld [vmem:[#allocation2 + $0x184] sm:$0xf]  ;;  %v3674_v57 = vor.u32 %v4217_v46, %v3671_v5  ;;  %v4154_v5 = vld [vmem:[#allocation2 + $0x25c] sm:$0xf] }
 0x3e9   :  { %2407 = vmatpush.bf16.msra.mxu3 %v3254_v47  ;;  %v3311_v47 = vld [vmem:[#allocation2 + $0x18c] sm:$0xf0] }
 0x3ea   :  { %2419 = vmatpush.bf16.msrb.mxu0 %v3362_v11  ;;  %v4190_v11 = vld [vmem:[#allocation2 + $0x37c] sm:$0xf] }
 0x3eb   :  { %2382 = vmatpush.bf16.msra.mxu1 %v3910_v52  ;;  %v3563_v52 = vld [vmem:[#allocation2 + $0x384] sm:$0xf0] }
 0x3ec   :  { %2395 = vmatpush.bf16.msra.mxu2 %v3146_v22  ;;  %v3314_v22 = vor.u32 %v4127_v62, %v3311_v47  ;;  %v3566_v24 = vor.u32 %v4190_v11, %v3563_v52  ;;  %v3731_v62 = vld [vmem:[#allocation2 + $0x4d4] sm:$0xf0] }
 0x3ed   :  { %2408 = vmatpush.bf16.msra.mxu3 %v3242_v54  ;;  %v3782_v54 = vor.u32 %v4244_v53, %v3779_v41  ;;  %v4202_v53 = vld [vmem:[#allocation2 + $0x3dc] sm:$0xf]  ;;  %v3611_v41 = vld [vmem:[#allocation2 + $0x3e4] sm:$0xf0] }
 0x3ee   :  { %2420 = vmatpush.bf16.msrb.mxu0 %v3350_v35  ;;  %v3455_v35 = vld [vmem:[#allocation2 + $0x2ac] sm:$0xf0] }
 0x3ef   :  { %2383 = vmatpush.bf16.msra.mxu1 %v3898_v36  ;;  %v4187_v36 = vld [vmem:[#allocation2 + $0x364] sm:$0xf] }
 0x3f0   :  { %2396 = vmatpush.bf16.msra.mxu2 %v3134_v14  ;;  %v3770_v14 = vor.u32 %v4241_v4, %v3767_v38  ;;  %v3554_v18 = vor.u32 %v4187_v36, %v3551_v37  ;;  %v3599_v4 = vld [vmem:[#allocation2 + $0x3cc] sm:$0xf0]  ;;  %v4268_v38 = vld [vmem:[#allocation2 + $0x5ec] sm:$0xf]  ;;  %v3971_v36 = vld [vmem:[#allocation2 + $0x6b4] sm:$0xf0] }
 0x3f1   :  { %2409 = vmatpush.bf16.msra.mxu3 %v3230_v39  ;;  %v3458_v39 = vor.u32 %v4163_v2, %v3455_v35  ;;  %v4199_v2 = vld [vmem:[#allocation2 + $0x3c4] sm:$0xf]  ;;  %v4292_v35 = vld [vmem:[#allocation2 + $0x6ac] sm:$0xf]  ;;  %v3209_v37 = vld [vmem:[#allocation2 + $0xb0] sm:$0xf] }
 0x3f2   :  { %2421 = vmatpush.bf16.msrb.mxu0 %v3338_v0  ;;  %v3635_v0 = vld [vmem:[#allocation2 + $0x414] sm:$0xf0]  ;;  %v3210_v25 = vor.u32 %v4102_v17, %v3209_v37  ;;  %v4090_v37 = vld [vmem:[#allocation2 + $0x58] sm:$0xf0] }
 0x3f3   :  { %2384 = vmatpush.bf16.msra.mxu1 %v3886_v30  ;;  %v3758_v30 = vor.u32 %v4238_v56, %v3755_v13  ;;  %v3638_v3 = vor.u32 %v4208_v29, %v3635_v0  ;;  %v3602_v56 = vor.u32 %v4199_v2, %v3599_v4  ;;  %v4289_v29 = vld [vmem:[#allocation2 + $0x694] sm:$0xf]  ;;  %v3959_v0 = vld [vmem:[#allocation2 + $0x69c] sm:$0xf0]  ;;  %v4256_v4 = vld [vmem:[#allocation2 + $0x58c] sm:$0xf] }
 0x3f4   :  { %2397 = vmatpush.bf16.msra.mxu2 %v3122_v9  ;;  %v4157_v9 = vld [vmem:[#allocation2 + $0x274] sm:$0xf] }
 0x3f5   :  { %2410 = vmatpush.bf16.msra.mxu3 %v3218_v63  ;;  %v4235_v63 = vld [vmem:[#allocation2 + $0x4e4] sm:$0xf] }
 0x3f6   :  { %2385 = vmatmul.bf16.vlgmr.msra.gmra.mxu1 %v5275_v26  ;;  %2422 = vmatpush.bf16.msrb.mxu0 %v3326_v60  ;;  %v3746_v55 = vor.u32 %v4235_v63, %v3743_v1  ;;  %v4232_v60 = vld [vmem:[#allocation2 + $0x4cc] sm:$0xf]  ;;  %v3695_v63 = vld [vmem:[#allocation2 + $0x48c] sm:$0xf0]  ;;  %v3866_v1 = vor.u32 %v4265_v27, %v3863_v28  ;;  %v3149_v27 = vld [vmem:[#allocation2 + $0x38] sm:$0xf] }
 0x3f7   :  { %2429 = vmatpush.bf16.msrb.mxu1 %v3494_v23  ;;  %2398 = vmatmul.bf16.vlgmr.msra.gmra.mxu2 %v5235_v12  ;;  %v3431_v23 = vld [vmem:[#allocation2 + $0x27c] sm:$0xf0]  ;;  %v3734_v11 = vor.u32 %v4232_v60, %v3731_v62  ;;  %v4087_v28 = vld [vmem:[#allocation2 + $0x40] sm:$0xf0] }
 0x3f8   :  { %2442 = vmatpush.bf16.msrb.mxu2 %v3590_v59  ;;  %2411 = vmatmul.bf16.vlgmr.msra.gmra.mxu3 %v5239_v6  ;;  %v4181_v59 = vld [vmem:[#allocation2 + $0x334] sm:$0xf]  ;;  %v3434_v40 = vor.u32 %v4157_v9, %v3431_v23  ;;  %v4223_v9 = vld [vmem:[#allocation2 + $0x484] sm:$0xf]  ;;  %v4126_v23 = vld [vmem:[#allocation2 + $0x178] sm:$0xf0] }
 0x3f9   :  { %2455 = vmatpush.bf16.msrb.mxu3 %v3686_v61  ;;  %v4205_v61 = vld [vmem:[#allocation2 + $0x3f4] sm:$0xf]  ;;  %v3530_v46 = vor.u32 %v4181_v59, %v3527_v43  ;;  %v3962_v59 = vor.u32 %v4289_v29, %v3959_v0  ;;  %v3698_v60 = vor.u32 %v4223_v9, %v3695_v63  ;;  %v3150_v9 = vor.u32 %v4087_v28, %v3149_v27  ;;  %v4250_v63 = vld [vmem:[#allocation2 + $0x55c] sm:$0xf]  ;;  %v4144_v28 = vld [vmem:[#allocation2 + $0x208] sm:$0xf0] }
 0x3fa   :  { %2423 = vmatpush.bf16.msrb.mxu0 %v3314_v22  ;;  %v3626_v47 = vor.u32 %v4205_v61, %v3623_v45  ;;  %v4229_v22 = vld [vmem:[#allocation2 + $0x4b4] sm:$0xf]  ;;  %v4262_v61 = vld [vmem:[#allocation2 + $0x5bc] sm:$0xf]  ;;  %v3851_v45 = vld [vmem:[#allocation2 + $0x5c4] sm:$0xf0] }
 0x3fb   :  { %2430 = vmatpush.bf16.msrb.mxu1 %v3482_v8  ;;  %v3419_v8 = vld [vmem:[#allocation2 + $0x264] sm:$0xf0] }
 0x3fc   :  { %2443 = vmatpush.bf16.msrb.mxu2 %v3578_v50  ;;  %v4178_v50 = vld [vmem:[#allocation2 + $0x31c] sm:$0xf]  ;;  %v3422_v52 = vor.u32 %v4154_v5, %v3419_v8  ;;  %v4096_v5 = vld [vmem:[#allocation2 + $0x88] sm:$0xf0]  ;;  %v3293_v8 = vld [vmem:[#allocation2 + $0x158] sm:$0xf] }
 0x3fd   :  { %2456 = vmatpush.bf16.msrb.mxu3 %v3674_v57  ;;  %2424 = vmatmul.bf16.vlgmr.msrb.gmra.mxu0 %v5243_v19  ;;  %v4151_v57 = vld [vmem:[#allocation2 + $0x244] sm:$0xf]  ;;  %v3518_v44 = vor.u32 %v4178_v50, %v3515_v21 }
 0x3fe   :  { %2468 = vmatpush.bf16.msra.mxu0 %v3782_v54  ;;  %v3719_v54 = vld [vmem:[#allocation2 + $0x4bc] sm:$0xf0]  ;;  %v4123_v50 = vld [vmem:[#allocation2 + $0x160] sm:$0xf0] }
 0x3ff   :  { %2431 = vmatpush.bf16.msrb.mxu1 %v3470_v48  ;;  %v3614_v48 = vor.u32 %v4202_v53, %v3611_v41  ;;  %v3722_v15 = vor.u32 %v4229_v22, %v3719_v54  ;;  %v4259_v41 = vld [vmem:[#allocation2 + $0x5a4] sm:$0xf]  ;;  %v3281_v54 = vld [vmem:[#allocation2 + $0x140] sm:$0xf] }
 0x400   :  { %2444 = vmatpush.bf16.msrb.mxu2 %v3566_v24  ;;  %v3503_v24 = vld [vmem:[#allocation2 + $0x30c] sm:$0xf0] }
 0x401   :  { %2457 = vmatpush.bf16.msrb.mxu3 %v3662_v34  ;;  %v3875_v34 = vld [vmem:[#allocation2 + $0x5f4] sm:$0xf0] }
 0x402   :  { %2469 = vmatpush.bf16.msra.mxu0 %v3770_v14  ;;  %v3410_v14 = vor.u32 %v4151_v57, %v3407_v49  ;;  %v3878_v13 = vor.u32 %v4268_v38, %v3875_v34  ;;  %v3839_v57 = vld [vmem:[#allocation2 + $0x5ac] sm:$0xf0]  ;;  %v4283_v49 = vld [vmem:[#allocation2 + $0x664] sm:$0xf]  ;;  %v3827_v38 = vld [vmem:[#allocation2 + $0x594] sm:$0xf0] }
 0x403   :  { %2432 = vmatpush.bf16.msrb.mxu1 %v3458_v39  ;;  %v3506_v39 = vor.u32 %v4175_v51, %v3503_v24  ;;  %v3294_v51 = vor.u32 %v4123_v50, %v3293_v8  ;;  %v3842_v22 = vor.u32 %v4259_v41, %v3839_v57  ;;  %v4280_v34 = vld [vmem:[#allocation2 + $0x64c] sm:$0xf]  ;;  %v3887_v8 = vld [vmem:[#allocation2 + $0x60c] sm:$0xf0]  ;;  %v3125_v50 = vld [vmem:[#allocation2 + $0x8] sm:$0xf] }
 0x404   :  { %2445 = vmatpush.bf16.msrb.mxu2 %v3554_v18  ;;  %v4226_v18 = vld [vmem:[#allocation2 + $0x49c] sm:$0xf]  ;;  %v3497_v57 = vld [vmem:[#allocation2 + $0x2f0] sm:$0xf] }
 0x405   :  { %2458 = vmatpush.bf16.msrb.mxu3 %v3650_v7  ;;  %v3974_v7 = vor.u32 %v4292_v35, %v3971_v36  ;;  %v3923_v35 = vld [vmem:[#allocation2 + $0x654] sm:$0xf0]  ;;  %v3161_v36 = vld [vmem:[#allocation2 + $0x50] sm:$0xf]  ;;  %v4150_v41 = vld [vmem:[#allocation2 + $0x238] sm:$0xf0] }
 0x406   :  { %2470 = vmatpush.bf16.msra.mxu0 %v3758_v30  ;;  %v3197_v30 = vld [vmem:[#allocation2 + $0x98] sm:$0xf] }
 0x407   :  { %2433 = vmatpush.bf16.msrb.mxu1 %v3446_v31  ;;  %v4099_v31 = vld [vmem:[#allocation2 + $0xa0] sm:$0xf0] }
 0x408   :  { %2446 = vmatpush.bf16.msrb.mxu2 %v3542_v32  ;;  %v3710_v32 = vor.u32 %v4226_v18, %v3707_v20  ;;  %v3198_v43 = vor.u32 %v4099_v31, %v3197_v30  ;;  %v3926_v18 = vor.u32 %v4280_v34, %v3923_v35  ;;  %v3162_v20 = vor.u32 %v4090_v37, %v3161_v36  ;;  %v3257_v30 = vld [vmem:[#allocation2 + $0x110] sm:$0xf]  ;;  %v4114_v31 = vld [vmem:[#allocation2 + $0x118] sm:$0xf0]  ;;  %v4147_v35 = vld [vmem:[#allocation2 + $0x220] sm:$0xf0] }
 0x409   :  { %2459 = vmatpush.bf16.msrb.mxu3 %v3638_v3  ;;  %v3305_v3 = vld [vmem:[#allocation2 + $0x170] sm:$0xf]  ;;  %v3485_v36 = vld [vmem:[#allocation2 + $0x2d8] sm:$0xf]  ;;  %v4171_v37 = vld [vmem:[#allocation2 + $0x2e0] sm:$0xf0] }
 0x40a   :  { %2471 = vmatpush.bf16.msra.mxu0 %v3746_v55  ;;  %v4286_v55 = vld [vmem:[#allocation2 + $0x67c] sm:$0xf]  ;;  %v3306_v62 = vor.u32 %v4126_v23, %v3305_v3  ;;  %v3899_v23 = vld [vmem:[#allocation2 + $0x624] sm:$0xf0] }
 0x40b   :  { %2434 = vmatpush.bf16.msrb.mxu1 %v3434_v40  ;;  %v3947_v40 = vld [vmem:[#allocation2 + $0x684] sm:$0xf0]  ;;  %v4274_v3 = vld [vmem:[#allocation2 + $0x61c] sm:$0xf] }
 0x40c   :  { %2447 = vmatpush.bf16.msrb.mxu2 %v3530_v46  ;;  %v3185_v46 = vld [vmem:[#allocation2 + $0x80] sm:$0xf]  ;;  %v3950_v21 = vor.u32 %v4286_v55, %v3947_v40  ;;  %v4247_v55 = vld [vmem:[#allocation2 + $0x544] sm:$0xf]  ;;  %v3245_v40 = vld [vmem:[#allocation2 + $0xf8] sm:$0xf] }
 0x40d   :  { %2460 = vmatpush.bf16.msrb.mxu3 %v3626_v47  ;;  %v3854_v47 = vor.u32 %v4262_v61, %v3851_v45  ;;  %v3186_v53 = vor.u32 %v4096_v5, %v3185_v46  ;;  %v3258_v61 = vor.u32 %v4114_v31, %v3257_v30  ;;  %v4111_v46 = vld [vmem:[#allocation2 + $0x100] sm:$0xf0]  ;;  %v3902_v5 = vor.u32 %v4274_v3, %v3899_v23  ;;  %v3569_v30 = vld [vmem:[#allocation2 + $0x380] sm:$0xf]  ;;  %v4192_v31 = vld [vmem:[#allocation2 + $0x388] sm:$0xf0] }
 0x40e   :  { %2472 = vmatpush.bf16.msra.mxu0 %v3734_v11  ;;  %v3935_v11 = vld [vmem:[#allocation2 + $0x66c] sm:$0xf0]  ;;  %v4141_v23 = vld [vmem:[#allocation2 + $0x1f0] sm:$0xf0] }
 0x40f   :  { %2435 = vmatpush.bf16.msrb.mxu1 %v3422_v52  ;;  %v3173_v52 = vld [vmem:[#allocation2 + $0x68] sm:$0xf]  ;;  %v3938_v24 = vor.u32 %v4283_v49, %v3935_v11  ;;  %v4174_v49 = vld [vmem:[#allocation2 + $0x2f8] sm:$0xf0]  ;;  %v3246_v11 = vor.u32 %v4111_v46, %v3245_v40  ;;  %v5291_v40 = vld [vmem:[%s5375_s10] sm:$0x7] }
 0x410   :  { %2448 = vmatpush.bf16.msrb.mxu2 %v3518_v44  ;;  %v4093_v44 = vld [vmem:[#allocation2 + $0x70] sm:$0xf0]  ;;  %v3557_v46 = vld [vmem:[#allocation2 + $0x368] sm:$0xf] }
 0x411   :  { %2461 = vmatpush.bf16.msrb.mxu3 %v3614_v48  ;;  %v4120_v48 = vld [vmem:[#allocation2 + $0x148] sm:$0xf0]  ;;  %v3174_v2 = vor.u32 %v4093_v44, %v3173_v52  ;;  %v3593_v44 = vld [vmem:[#allocation2 + $0x3b0] sm:$0xf] }
 0x412   :  { %2473 = vmatpush.bf16.msra.mxu0 %v3722_v15  ;;  %v3282_v17 = vor.u32 %v4120_v48, %v3281_v54  ;;  %v3830_v15 = vor.u32 %v4256_v4, %v3827_v38  ;;  %v3233_v48 = vld [vmem:[#allocation2 + $0xe0] sm:$0xf]  ;;  %v3498_v4 = vor.u32 %v4174_v49, %v3497_v57  ;;  %v3389_v38 = vld [vmem:[#allocation2 + $0x218] sm:$0xf]  ;;  %v4138_v57 = vld [vmem:[#allocation2 + $0x1d8] sm:$0xf0] }
 0x413   :  { %2436 = vmatpush.bf16.msrb.mxu1 %v3410_v14  ;;  %v3269_v14 = vld [vmem:[#allocation2 + $0x128] sm:$0xf]  ;;  %v3449_v49 = vld [vmem:[#allocation2 + $0x290] sm:$0xf] }
 0x414   :  { %2449 = vmatpush.bf16.msrb.mxu2 %v3506_v39  ;;  %v4117_v39 = vld [vmem:[#allocation2 + $0x130] sm:$0xf0] }
 0x415   :  { %2462 = vmatpush.bf16.msrb.mxu3 %v3602_v56  ;;  %v4253_v56 = vld [vmem:[#allocation2 + $0x574] sm:$0xf]  ;;  %v3270_v29 = vor.u32 %v4117_v39, %v3269_v14  ;;  %v3221_v39 = vld [vmem:[#allocation2 + $0xc8] sm:$0xf] }
 0x416   :  { %2474 = vmatpush.bf16.msra.mxu0 %v3710_v32  ;;  %2437 = vmatmul.bf16.vlgmr.msrb.gmra.mxu1 %v5250_v58 }
 0x417   :  { %2481 = vmatpush.bf16.msra.mxu1 %v3878_v13  ;;  %2450 = vmatmul.bf16.vlgmr.msrb.gmra.mxu2 %v5263_v16  ;;  %v3815_v13 = vld [vmem:[#allocation2 + $0x57c] sm:$0xf0] }
 0x418   :  { %2494 = vmatpush.bf16.msra.mxu2 %v3974_v7  ;;  %2463 = vmatmul.bf16.vlgmr.msrb.gmra.mxu3 %v5255_v33  ;;  %v4277_v7 = vld [vmem:[#allocation2 + $0x634] sm:$0xf]  ;;  %v3818_v0 = vor.u32 %v4253_v56, %v3815_v13  ;;  %v3486_v56 = vor.u32 %v4171_v37, %v3485_v36  ;;  %v3377_v13 = vld [vmem:[#allocation2 + $0x200] sm:$0xf]  ;;  %v4159_v36 = vld [vmem:[#allocation2 + $0x280] sm:$0xf0] }
 0x419   :  { %2507 = vmatpush.bf16.msra.mxu3 %v3210_v25  ;;  %v3911_v25 = vld [vmem:[#allocation2 + $0x63c] sm:$0xf0]  ;;  %v3533_v37 = vld [vmem:[#allocation2 + $0x338] sm:$0xf] }
 0x41a   :  { %2475 = vmatpush.bf16.msra.mxu0 %v3698_v60  ;;  %v3914_v32 = vor.u32 %v4277_v7, %v3911_v25  ;;  %v3689_v7 = vld [vmem:[#allocation2 + $0x470] sm:$0xf]  ;;  %v4222_v25 = vld [vmem:[#allocation2 + $0x478] sm:$0xf0] }
 0x41b   :  { %2482 = vmatpush.bf16.msra.mxu1 %v3866_v1  ;;  %v3803_v1 = vld [vmem:[#allocation2 + $0x564] sm:$0xf0] }
 0x41c   :  { %2495 = vmatpush.bf16.msra.mxu2 %v3962_v59  ;;  %v3137_v59 = vld [vmem:[#allocation2 + $0x20] sm:$0xf]  ;;  %v3806_v45 = vor.u32 %v4250_v63, %v3803_v1  ;;  %v3690_v63 = vor.u32 %v4222_v25, %v3689_v7  ;;  %v3378_v1 = vor.u32 %v4144_v28, %v3377_v13  ;;  %v4132_v28 = vld [vmem:[#allocation2 + $0x1a8] sm:$0xf0] }
 0x41d   :  { %2508 = vmatpush.bf16.msra.mxu3 %v3198_v43  ;;  %2476 = vmatmul.bf16.vlgmr.msra.gmra.mxu0 %v5259_v10  ;;  %v4084_v43 = vld [vmem:[#allocation2 + $0x28] sm:$0xf0] }
 0x41e   :  { %2520 = vmatpush.bf16.msrb.mxu0 %v3306_v62  ;;  %v3138_v60 = vor.u32 %v4084_v43, %v3137_v59  ;;  %v3791_v62 = vld [vmem:[#allocation2 + $0x54c] sm:$0xf0]  ;;  %v3677_v59 = vld [vmem:[#allocation2 + $0x458] sm:$0xf]  ;;  %v4219_v43 = vld [vmem:[#allocation2 + $0x460] sm:$0xf0] }
 0x41f   :  { %2483 = vmatpush.bf16.msra.mxu1 %v3854_v47  ;;  %v4271_v47 = vld [vmem:[#allocation2 + $0x604] sm:$0xf]  ;;  %v3794_v52 = vor.u32 %v4247_v55, %v3791_v62  ;;  %v4165_v55 = vld [vmem:[#allocation2 + $0x2b0] sm:$0xf0] }
 0x420   :  { %2496 = vmatpush.bf16.msra.mxu2 %v3950_v21  ;;  %v4081_v21 = vld [vmem:[#allocation2 + $0x10] sm:$0xf0] }
 0x421   :  { %2509 = vmatpush.bf16.msra.mxu3 %v3186_v53  ;;  %v3401_v53 = vld [vmem:[#allocation2 + $0x230] sm:$0xf]  ;;  %v3126_v54 = vor.u32 %v4081_v21, %v3125_v50  ;;  %v4216_v50 = vld [vmem:[#allocation2 + $0x448] sm:$0xf0]  ;;  %v1115_v21 = vperm.slane %v5291_v40, 0 }
 0x422   :  { %2521 = vmatpush.bf16.msrb.mxu0 %v3294_v51  ;;  %v4198_v51 = vld [vmem:[#allocation2 + $0x3b8] sm:$0xf0] }
 0x423   :  { %2484 = vmatpush.bf16.msra.mxu1 %v3842_v22  ;;  %v3890_v22 = vor.u32 %v4271_v47, %v3887_v8  ;;  %v3594_v34 = vor.u32 %v4198_v51, %v3593_v44  ;;  %v3665_v8 = vld [vmem:[#allocation2 + $0x440] sm:$0xf]  ;;  %v4186_v44 = vld [vmem:[#allocation2 + $0x358] sm:$0xf0] }
 0x424   :  { %2497 = vmatpush.bf16.msra.mxu2 %v3938_v24  ;;  %v4108_v24 = vld [vmem:[#allocation2 + $0xe8] sm:$0xf0]  ;;  %v3666_v51 = vor.u32 %v4216_v50, %v3665_v8  ;;  %v3881_v8 = vld [vmem:[#allocation2 + $0x5f0] sm:$0xf]  ;;  %v4270_v50 = vld [vmem:[#allocation2 + $0x5f8] sm:$0xf0] }
 0x425   :  { %2510 = vmatpush.bf16.msra.mxu3 %v3174_v2  ;;  %v3402_v2 = vor.u32 %v4150_v41, %v3401_v53  ;;  %v3234_v14 = vor.u32 %v4108_v24, %v3233_v48  ;;  %v3341_v48 = vld [vmem:[#allocation2 + $0x1b8] sm:$0xf]  ;;  %v3653_v24 = vld [vmem:[#allocation2 + $0x428] sm:$0xf] }
 0x426   :  { %2522 = vmatpush.bf16.msrb.mxu0 %v3282_v17  ;;  %v3581_v17 = vld [vmem:[#allocation2 + $0x398] sm:$0xf] }
 0x427   :  { %2485 = vmatpush.bf16.msra.mxu1 %v3830_v15  ;;  %v4195_v15 = vld [vmem:[#allocation2 + $0x3a0] sm:$0xf0] }
 0x428   :  { %2498 = vmatpush.bf16.msra.mxu2 %v3926_v18  ;;  %v4105_v18 = vld [vmem:[#allocation2 + $0xd0] sm:$0xf0]  ;;  %v3582_v27 = vor.u32 %v4195_v15, %v3581_v17  ;;  %v4183_v17 = vld [vmem:[#allocation2 + $0x340] sm:$0xf0] }
 0x429   :  { %2511 = vmatpush.bf16.msra.mxu3 %v3162_v20  ;;  %v3390_v20 = vor.u32 %v4147_v35, %v3389_v38  ;;  %v3437_v35 = vld [vmem:[#allocation2 + $0x278] sm:$0xf] }
 0x42a   :  { %2523 = vmatpush.bf16.msrb.mxu0 %v3270_v29  ;;  %v3473_v29 = vld [vmem:[#allocation2 + $0x2c0] sm:$0xf] }
 0x42b   :  { %2486 = vmatpush.bf16.msra.mxu1 %v3818_v0  ;;  %v4168_v0 = vld [vmem:[#allocation2 + $0x2c8] sm:$0xf0] }
 0x42c   :  { %2499 = vmatpush.bf16.msra.mxu2 %v3914_v32  ;;  %v3222_v32 = vor.u32 %v4105_v18, %v3221_v39  ;;  %v3474_v3 = vor.u32 %v4168_v0, %v3473_v29  ;;  %v3438_v39 = vor.u32 %v4159_v36, %v3437_v35  ;;  %v3329_v18 = vld [vmem:[#allocation2 + $0x1a0] sm:$0xf]  ;;  %v4156_v0 = vld [vmem:[#allocation2 + $0x268] sm:$0xf0]  ;;  %v4267_v35 = vld [vmem:[#allocation2 + $0x5e0] sm:$0xf0] }
 0x42d   :  { %2512 = vmatpush.bf16.msra.mxu3 %v3150_v9  ;;  %v3365_v9 = vld [vmem:[#allocation2 + $0x1e8] sm:$0xf]  ;;  %v3425_v29 = vld [vmem:[#allocation2 + $0x260] sm:$0xf]  ;;  %v3965_v36 = vld [vmem:[#allocation2 + $0x698] sm:$0xf] }
 0x42e   :  { %2524 = vmatpush.bf16.msrb.mxu0 %v3258_v61  ;;  %v3570_v61 = vor.u32 %v4192_v31, %v3569_v30  ;;  %v3366_v62 = vor.u32 %v4141_v23, %v3365_v9  ;;  %v3521_v31 = vld [vmem:[#allocation2 + $0x320] sm:$0xf]  ;;  %v3330_v23 = vor.u32 %v4132_v28, %v3329_v18 }
 0x42f   :  { %2487 = vmatpush.bf16.msra.mxu1 %v3806_v45  ;;  %v3461_v45 = vld [vmem:[#allocation2 + $0x2a8] sm:$0xf] }
 0x430   :  { %2500 = vmatpush.bf16.msra.mxu2 %v3902_v5  ;;  %v4189_v5 = vld [vmem:[#allocation2 + $0x370] sm:$0xf0]  ;;  %v3462_v47 = vor.u32 %v4165_v55, %v3461_v45  ;;  %v4207_v45 = vld [vmem:[#allocation2 + $0x400] sm:$0xf0] }
 0x431   :  { %2513 = vmatpush.bf16.msra.mxu3 %v3138_v60  ;;  %v3678_v60 = vor.u32 %v4219_v43, %v3677_v59  ;;  %v3558_v41 = vor.u32 %v4189_v5, %v3557_v46  ;;  %v3426_v59 = vor.u32 %v4156_v0, %v3425_v29  ;;  %v3413_v43 = vld [vmem:[#allocation2 + $0x248] sm:$0xf]  ;;  %v4153_v5 = vld [vmem:[#allocation2 + $0x250] sm:$0xf0] }
 0x432   :  { %2525 = vmatpush.bf16.msrb.mxu0 %v3246_v11  ;;  %v4162_v11 = vld [vmem:[#allocation2 + $0x298] sm:$0xf0] }
 0x433   :  { %2488 = vmatpush.bf16.msra.mxu1 %v3794_v52  ;;  %v2282_v53 = vpop.f32.mrf.mxu1  ;;  %v3545_v52 = vld [vmem:[#allocation2 + $0x350] sm:$0xf] }
 0x434   :  { %2501 = vmatpush.bf16.msra.mxu2 %v3890_v22  ;;  %v3546_v38 = vor.u32 %v4186_v44, %v3545_v52  ;;  %v3617_v52 = vld [vmem:[#allocation2 + $0x3e0] sm:$0xf]  ;;  %v4204_v44 = vld [vmem:[#allocation2 + $0x3e8] sm:$0xf0] }
 0x435   :  { %2514 = vmatpush.bf16.msra.mxu3 %v3126_v54  ;;  %v3450_v54 = vor.u32 %v4162_v11, %v3449_v49  ;;  %v3414_v11 = vor.u32 %v4153_v5, %v3413_v43  ;;  %v3833_v43 = vld [vmem:[#allocation2 + $0x590] sm:$0xf] }
 0x436   :  { %2489 = vmatmul.bf16.vlgmr.msra.gmra.mxu1 %v5270_v42  ;;  %2526 = vmatpush.bf16.msrb.mxu0 %v3234_v14 }
 0x437   :  { %2533 = vmatpush.bf16.msrb.mxu1 %v3402_v2  ;;  %2502 = vmatmul.bf16.vlgmr.msra.gmra.mxu2 %v5275_v26  ;;  %v4213_v2 = vld [vmem:[#allocation2 + $0x430] sm:$0xf0] }
 0x438   :  { %2546 = vmatpush.bf16.msrb.mxu2 %v3498_v4  ;;  %2515 = vmatmul.bf16.vlgmr.msra.gmra.mxu3 %v5235_v12  ;;  %v3353_v12 = vld [vmem:[#allocation2 + $0x1d0] sm:$0xf]  ;;  %v2283_v4 = vadd.f32 %v2282_v53, %v1115_v21  ;;  %v4294_v53 = vld [vmem:[#allocation2 + $0x6b8] sm:$0xf0] }
 0x439   :  { %2559 = vmatpush.bf16.msrb.mxu3 %v3594_v34  ;;  %v3354_v22 = vor.u32 %v4138_v57, %v3353_v12  ;;  %v4135_v34 = vld [vmem:[#allocation2 + $0x1c0] sm:$0xf0]  ;;  %v3509_v12 = vld [vmem:[#allocation2 + $0x308] sm:$0xf]  ;;  %v3977_v21 = vld [vmem:[#allocation2 + $0x6b0] sm:$0xf] }
 0x43a   :  { %2527 = vmatpush.bf16.msrb.mxu0 %v3222_v32  ;;  %v2295_v15 = vpop.f32.mrf.mxu2  ;;  %v3342_v14 = vor.u32 %v4135_v34, %v3341_v48  ;;  %v2321_v25 = vpop.f32.mrf.mxu0  ;;  %v4180_v32 = vld [vmem:[#allocation2 + $0x328] sm:$0xf0]  ;;  %v3869_v34 = vld [vmem:[#allocation2 + $0x5d8] sm:$0xf] }
 0x43b   :  { %2534 = vmatpush.bf16.msrb.mxu1 %v3390_v20  ;;  %v3641_v20 = vld [vmem:[#allocation2 + $0x410] sm:$0xf]  ;;  %v2296_v13 = vadd.f32 %v2295_v15, %v2283_v4  ;;  %v2308_v7 = vpop.f32.mrf.mxu3  ;;  %v2284_v30 = vpop.f32.mrf.mxu1  ;;  %v3522_v46 = vor.u32 %v4180_v32, %v3521_v31  ;;  %v3773_v4 = vld [vmem:[#allocation2 + $0x518] sm:$0xf]  ;;  %v4201_v15 = vld [vmem:[#allocation2 + $0x3d0] sm:$0xf0] }
 0x43c   :  { %2547 = vmatpush.bf16.msrb.mxu2 %v3486_v56  ;;  %v4210_v56 = vld [vmem:[#allocation2 + $0x418] sm:$0xf0]  ;;  %v3749_v31 = vld [vmem:[#allocation2 + $0x4e8] sm:$0xf]  ;;  %v4237_v32 = vld [vmem:[#allocation2 + $0x4f0] sm:$0xf0] }
 0x43d   :  { %2560 = vmatpush.bf16.msrb.mxu3 %v3582_v27  ;;  %2528 = vmatmul.bf16.vlgmr.msrb.gmra.mxu0 %v5239_v6  ;;  %v3654_v6 = vor.u32 %v4213_v2, %v3653_v24  ;;  %v3534_v27 = vor.u32 %v4183_v17, %v3533_v37  ;;  %v2309_v9 = vadd.f32 %v2308_v7, %v2296_v13  ;;  %v4291_v37 = vld [vmem:[#allocation2 + $0x6a0] sm:$0xf0]  ;;  %v3857_v13 = vld [vmem:[#allocation2 + $0x5c0] sm:$0xf]  ;;  %v4264_v7 = vld [vmem:[#allocation2 + $0x5c8] sm:$0xf0] }
 0x43e   :  { %2572 = vmatpush.bf16.msra.mxu0 %v3690_v63  ;;  %v3317_v63 = vld [vmem:[#allocation2 + $0x188] sm:$0xf]  ;;  %v3882_v24 = vor.u32 %v4270_v50, %v3881_v8  ;;  %v3978_v2 = vor.u32 %v4294_v53, %v3977_v21  ;;  %v3618_v17 = vor.u32 %v4204_v44, %v3617_v52  ;;  %v3966_v18 = vor.u32 %v4291_v37, %v3965_v36  ;;  %v3725_v8 = vld [vmem:[#allocation2 + $0x4b8] sm:$0xf]  ;;  %v4231_v50 = vld [vmem:[#allocation2 + $0x4c0] sm:$0xf0] }
 0x43f   :  { %2535 = vmatpush.bf16.msrb.mxu1 %v3378_v1  ;;  %v4129_v1 = vld [vmem:[#allocation2 + $0x190] sm:$0xf0]  ;;  %v5295_v55 = vadd.f32 %v2321_v25, %v2309_v9  ;;  %v3953_v25 = vld [vmem:[#allocation2 + $0x680] sm:$0xf]  ;;  %v3858_v0 = vor.u32 %v4264_v7, %v3857_v13  ;;  %v3845_v9 = vld [vmem:[#allocation2 + $0x5a8] sm:$0xf] }
 0x440   :  { %2548 = vmatpush.bf16.msrb.mxu2 %v3474_v3  ;;  %v3642_v3 = vor.u32 %v4210_v56, %v3641_v20  ;;  %v3318_v49 = vor.u32 %v4129_v1, %v3317_v63  ;;  %v3761_v20 = vld [vmem:[#allocation2 + $0x500] sm:$0xf]  ;;  %v4240_v56 = vld [vmem:[#allocation2 + $0x508] sm:$0xf0]  ;;  %v4261_v63 = vld [vmem:[#allocation2 + $0x5b0] sm:$0xf0] }
 0x441   :  { %2561 = vmatpush.bf16.msrb.mxu3 %v3570_v61  ;;  %v3629_v61 = vld [vmem:[#allocation2 + $0x3f8] sm:$0xf]  ;;  %v3762_v29 = vor.u32 %v4240_v56, %v3761_v20  ;;  %v4285_v1 = vld [vmem:[#allocation2 + $0x670] sm:$0xf0]  ;;  %v4255_v53 = vld [vmem:[#allocation2 + $0x580] sm:$0xf0] }
 0x442   :  { %2573 = vmatpush.bf16.msra.mxu0 %v3678_v60  ;;  %v4177_v60 = vld [vmem:[#allocation2 + $0x310] sm:$0xf0]  ;;  %v2297_v57 = vpop.f32.mrf.mxu2  ;;  %v3821_v21 = vld [vmem:[#allocation2 + $0x578] sm:$0xf] }
 0x443   :  { %2536 = vmatpush.bf16.msrb.mxu1 %v3366_v62  ;;  %v3785_v62 = vld [vmem:[#allocation2 + $0x530] sm:$0xf]  ;;  %v4279_v57 = vld [vmem:[#allocation2 + $0x640] sm:$0xf0]  ;;  %v4273_v20 = vld [vmem:[#allocation2 + $0x610] sm:$0xf0] }
 0x444   :  { %2549 = vmatpush.bf16.msrb.mxu2 %v3462_v47  ;;  %v4246_v47 = vld [vmem:[#allocation2 + $0x538] sm:$0xf0] }
 0x445   :  { %2562 = vmatpush.bf16.msrb.mxu3 %v3558_v41  ;;  %v3630_v41 = vor.u32 %v4207_v45, %v3629_v61  ;;  %v3786_v48 = vor.u32 %v4246_v47, %v3785_v62  ;;  %v4258_v61 = vld [vmem:[#allocation2 + $0x598] sm:$0xf0]  ;;  %v3929_v45 = vld [vmem:[#allocation2 + $0x650] sm:$0xf] }
 0x446   :  { %2574 = vmatpush.bf16.msra.mxu0 %v3666_v51  ;;  %v2310_v51 = vpop.f32.mrf.mxu3  ;;  %v3834_v62 = vor.u32 %v4258_v61, %v3833_v43 }
 0x447   :  { %2537 = vmatpush.bf16.msrb.mxu1 %v3354_v22  ;;  %v2323_v22 = vpop.f32.mrf.mxu0  ;;  %v3713_v51 = vld [vmem:[#allocation2 + $0x4a0] sm:$0xf] }
 0x448   :  { %2550 = vmatpush.bf16.msrb.mxu2 %v3450_v54  ;;  %v3510_v54 = vor.u32 %v4177_v60, %v3509_v12  ;;  %v4228_v22 = vld [vmem:[#allocation2 + $0x4a8] sm:$0xf0] }
 0x449   :  { %2563 = vmatpush.bf16.msrb.mxu3 %v3546_v38  ;;  %v4243_v38 = vld [vmem:[#allocation2 + $0x520] sm:$0xf0] }
 0x44a   :  { %2575 = vmatpush.bf16.msra.mxu0 %v3654_v6  ;;  %v3605_v6 = vld [vmem:[#allocation2 + $0x3c8] sm:$0xf] }
 0x44b   :  { %2538 = vmatpush.bf16.msrb.mxu1 %v3342_v14  ;;  %v3774_v14 = vor.u32 %v4243_v38, %v3773_v4  ;;  %v3606_v28 = vor.u32 %v4201_v15, %v3605_v6  ;;  %v4276_v4 = vld [vmem:[#allocation2 + $0x628] sm:$0xf0]  ;;  %v3701_v6 = vld [vmem:[#allocation2 + $0x488] sm:$0xf]  ;;  %v4225_v15 = vld [vmem:[#allocation2 + $0x490] sm:$0xf0] }
 0x44c   :  { %2551 = vmatpush.bf16.msrb.mxu2 %v3438_v39  ;;  %v3870_v39 = vor.u32 %v4267_v35, %v3869_v34  ;;  %v3714_v35 = vor.u32 %v4228_v22, %v3713_v51  ;;  %v3702_v13 = vor.u32 %v4225_v15, %v3701_v6 }
 0x44d   :  { %2564 = vmatpush.bf16.msrb.mxu3 %v3534_v27  ;;  %v4288_v27 = vld [vmem:[#allocation2 + $0x688] sm:$0xf0] }
 0x44e   :  { %2576 = vmatpush.bf16.msra.mxu0 %v3642_v3  ;;  %v3954_v30 = vor.u32 %v4288_v27, %v3953_v25  ;;  %v3750_v3 = vor.u32 %v4237_v32, %v3749_v31  ;;  %v1116_v31 = vperm.slane %v5291_v40, 1 }
 0x44f   :  { %2539 = vmatpush.bf16.msrb.mxu1 %v3330_v23 }
 0x450   :  { %2552 = vmatpush.bf16.msrb.mxu2 %v3426_v59  ;;  %v4234_v59 = vld [vmem:[#allocation2 + $0x4d8] sm:$0xf0] }
 0x451   :  { %2565 = vmatpush.bf16.msrb.mxu3 %v3522_v46  ;;  %v4282_v46 = vld [vmem:[#allocation2 + $0x658] sm:$0xf0] }
 0x452   :  { %2577 = vmatpush.bf16.msra.mxu0 %v3630_v41  ;;  %v3930_v47 = vor.u32 %v4282_v46, %v3929_v45  ;;  %v3917_v41 = vld [vmem:[#allocation2 + $0x638] sm:$0xf] }
 0x453   :  { %2540 = vmatpush.bf16.msrb.mxu1 %v3318_v49  ;;  %v2334_v5 = vpop.f32.mrf.mxu1  ;;  %v3918_v44 = vor.u32 %v4279_v57, %v3917_v41 }
 0x454   :  { %2553 = vmatpush.bf16.msrb.mxu2 %v3414_v11  ;;  %v2335_v12 = vadd.f32 %v2334_v5, %v5295_v55  ;;  %v3726_v11 = vor.u32 %v4231_v50, %v3725_v8  ;;  %v3822_v55 = vor.u32 %v4255_v53, %v3821_v21 }
 0x455   :  { %2566 = vmatpush.bf16.msrb.mxu3 %v3510_v54  ;;  %v3809_v54 = vld [vmem:[#allocation2 + $0x560] sm:$0xf] }
 0x456   :  { %2578 = vmatpush.bf16.msra.mxu0 %v3618_v17  ;;  %2541 = vmatmul.bf16.vlgmr.msrb.gmra.mxu1 %v5243_v19  ;;  %v3737_v19 = vld [vmem:[#allocation2 + $0x4d0] sm:$0xf] }
 0x457   :  { %2585 = vmatpush.bf16.msra.mxu1 %v3786_v48  ;;  %2554 = vmatmul.bf16.vlgmr.msrb.gmra.mxu2 %v5250_v58  ;;  %v3941_v58 = vld [vmem:[#allocation2 + $0x668] sm:$0xf]  ;;  %v3738_v60 = vor.u32 %v4234_v59, %v3737_v19 }
 0x458   :  { %2598 = vmatpush.bf16.msra.mxu2 %v3882_v24  ;;  %2567 = vmatmul.bf16.vlgmr.msrb.gmra.mxu3 %v5263_v16  ;;  %v3846_v16 = vor.u32 %v4261_v63, %v3845_v9  ;;  %v3942_v23 = vor.u32 %v4285_v1, %v3941_v58  ;;  %v4252_v24 = vld [vmem:[#allocation2 + $0x568] sm:$0xf0] }
 0x459   :  { %2611 = vmatpush.bf16.msra.mxu3 %v3978_v2  ;;  %v3905_v2 = vld [vmem:[#allocation2 + $0x620] sm:$0xf]  ;;  %v3810_v37 = vor.u32 %v4252_v24, %v3809_v54 }
 0x45a   :  { %2579 = vmatpush.bf16.msra.mxu0 %v3606_v28  ;;  %v2347_v49 = vpop.f32.mrf.mxu2  ;;  %v2373_v48 = vpop.f32.mrf.mxu0  ;;  %v3906_v17 = vor.u32 %v4276_v4, %v3905_v2 }
 0x45b   :  { %2586 = vmatpush.bf16.msra.mxu1 %v3774_v14  ;;  %v2348_v52 = vadd.f32 %v2347_v49, %v2335_v12  ;;  %v2336_v34 = vpop.f32.mrf.mxu1  ;;  %v3797_v14 = vld [vmem:[#allocation2 + $0x548] sm:$0xf] }
 0x45c   :  { %2599 = vmatpush.bf16.msra.mxu2 %v3870_v39  ;;  %v4249_v39 = vld [vmem:[#allocation2 + $0x550] sm:$0xf0] }
 0x45d   :  { %2612 = vmatpush.bf16.msra.mxu3 %v3966_v18  ;;  %2580 = vmatmul.bf16.vlgmr.msra.gmra.mxu0 %v5255_v33  ;;  %v2360_v33 = vpop.f32.mrf.mxu3  ;;  %v3893_v18 = vld [vmem:[#allocation2 + $0x608] sm:$0xf]  ;;  %v3798_v25 = vor.u32 %v4249_v39, %v3797_v14 }
 0x45e   :  { %v2361_v38 = vadd.f32 %v2360_v33, %v2348_v52  ;;  %v3894_v27 = vor.u32 %v4273_v20, %v3893_v18 }
 0x45f   :  { %2587 = vmatpush.bf16.msra.mxu1 %v3762_v29 }
 0x460   :  { %2600 = vmatpush.bf16.msra.mxu2 %v3858_v0  ;;  %v2374_v36 = vadd.f32 %v2373_v48, %v2361_v38 }
 0x461   :  { %2613 = vmatpush.bf16.msra.mxu3 %v3954_v30 }
 0x462   :  { %v2349_v56 = vpop.f32.mrf.mxu2  ;;  %v2375_v28 = vpop.f32.mrf.mxu0 }
 0x463   :  { %2588 = vmatpush.bf16.msra.mxu1 %v3750_v3 }
 0x464   :  { %2601 = vmatpush.bf16.msra.mxu2 %v3846_v16 }
 0x465   :  { %2614 = vmatpush.bf16.msra.mxu3 %v3942_v23  ;;  %v2362_v7 = vpop.f32.mrf.mxu3 }
 0x467   :  { %2589 = vmatpush.bf16.msra.mxu1 %v3738_v60 }
 0x468   :  { %2602 = vmatpush.bf16.msra.mxu2 %v3834_v62 }
 0x469   :  { %2615 = vmatpush.bf16.msra.mxu3 %v3930_v47 }
 0x46b   :  { %2590 = vmatpush.bf16.msra.mxu1 %v3726_v11 }
 0x46c   :  { %2603 = vmatpush.bf16.msra.mxu2 %v3822_v55 }
 0x46d   :  { %2616 = vmatpush.bf16.msra.mxu3 %v3918_v44 }
 0x46f   :  { %2591 = vmatpush.bf16.msra.mxu1 %v3714_v35 }
 0x470   :  { %2604 = vmatpush.bf16.msra.mxu2 %v3810_v37 }
 0x471   :  { %2617 = vmatpush.bf16.msra.mxu3 %v3906_v17 }
 0x473   :  { %2592 = vmatpush.bf16.msra.mxu1 %v3702_v13  ;;  %v2386_v29 = vpop.f32.mrf.mxu1 }
 0x474   :  { %2605 = vmatpush.bf16.msra.mxu2 %v3798_v25  ;;  %v2387_v0 = vadd.f32 %v2386_v29, %v2374_v36 }
 0x475   :  { %2618 = vmatpush.bf16.msra.mxu3 %v3894_v27 }
 0x476   :  { %2593 = vmatmul.bf16.vlgmr.msra.gmra.mxu1 %v5259_v10  ;;  %v2624_v30 = vmul.f32 0.5, %v2387_v0 }
 0x477   :  { %2606 = vmatmul.bf16.vlgmr.msra.gmra.mxu2 %v5270_v42 }
 0x478   :  { %2619 = vmatmul.bf16.vlgmr.msra.gmra.mxu3 %v5275_v26  ;;  %4392 = vtanh.f32 %v2624_v30 }
 0x47a   :  { %v2399_v32 = vpop.f32.mrf.mxu2  ;;  %v2425_v58 = vpop.f32.mrf.mxu0 }
 0x47b   :  { %v2400_v9 = vadd.f32 %v2399_v32, %v1116_v31  ;;  %v2412_v63 = vpop.f32.mrf.mxu3  ;;  %v2388_v1 = vpop.f32.mrf.mxu1 }
 0x47d   :  { %v2413_v3 = vadd.f32 %v2412_v63, %v2400_v9 }
 0x47e   :  { %v4393_v16 = vpop.eup %4392 }
 0x47f   :  { %v2630_v23 = vmul.f32 0.5, %v4393_v16  ;;  %v2426_v19 = vadd.f32 %v2425_v58, %v2413_v3 }
 0x481   :  { %v2633_v10 = vadd.f32 0.5, %v2630_v23 }
 0x482   :  { %v2401_v59 = vpop.f32.mrf.mxu2  ;;  %v2427_v61 = vpop.f32.mrf.mxu0 }
 0x483   :  { %v2636_v42 = vrot.slane %v2633_v10, 4  ;;  %v2654_v43 = vmul.f32 %v2633_v10, %v2633_v10  ;;  %v2414_v26 = vpop.f32.mrf.mxu3 }
 0x485   :  { %v2637_v45 = vadd.f32 %v2636_v42, %v2633_v10  ;;  %v2657_v46 = vrot.slane %v2654_v43, 4 }
 0x487   :  { %v2638_v5 = vrot.slane %v2637_v45, 2  ;;  %v2658_v12 = vadd.f32 %v2657_v46, %v2654_v43 }
 0x489   :  { %v2639_v60 = vadd.f32 %v2638_v5, %v2637_v45  ;;  %v2659_v62 = vrot.slane %v2658_v12, 2 }
 0x48b   :  { %v2640_v47 = vrot.slane %v2639_v60, 1  ;;  %v2660_v8 = vadd.f32 %v2659_v62, %v2658_v12 }
 0x48d   :  { %v2641_v50 = vadd.f32 %v2640_v47, %v2639_v60  ;;  %v2661_v21 = vrot.slane %v2660_v8, 1 }
 0x48f   :  { %v2662_v53 = vadd.f32 %v2661_v21, %v2660_v8  ;;  %v2675_v41 = vmul.f32 0.125, %v2641_v50  ;;  %v1117_v21 = vperm.slane %v5291_v40, 2 }
 0x491   :  { %v2678_v57 = vmul.f32 0.125, %v2662_v53  ;;  %v2681_v49 = vmul.f32 %v2675_v41, %v2675_v41  ;;  %v2687_v14 = vsub.f32 %v2633_v10, %v2675_v41 }
 0x493   :  { %v2438_v11 = vpop.f32.mrf.mxu1  ;;  %v2684_v52 = vsub.f32 %v2678_v57, %v2681_v49 }
 0x494   :  { %v2439_v33 = vadd.f32 %v2438_v11, %v2426_v19 }
 0x495   :  { %v2690_v55 = vadd.f32 1e-05, %v2684_v52 }
 0x497   :  { %4394 = vrsqrt.f32 %v2690_v55  ;;  %vm2699_vm13 = vweird.f32 %v2690_v55 }
 0x49a   :  { %v2451_v44 = vpop.f32.mrf.mxu2  ;;  %v2477_v54 = vpop.f32.mrf.mxu0 }
 0x49b   :  { %v2452_v51 = vadd.f32 %v2451_v44, %v2439_v33  ;;  %v2464_v22 = vpop.f32.mrf.mxu3  ;;  %v2440_v24 = vpop.f32.mrf.mxu1 }
 0x49d   :  { %v2465_v48 = vadd.f32 %v2464_v22, %v2452_v51  ;;  %v4395_v4 = vpop.eup %4394 }
 0x49e   :  { %v2694_v38 = vmul.f32 %v4395_v4, %v2690_v55  ;;  %vm2700_vm12 = vweird.f32 %v4395_v4 }
 0x49f   :  { %v2478_v2 = vadd.f32 %v2477_v54, %v2465_v48  ;;  %vm2701_vm14 = vmor %vm2699_vm13, %vm2700_vm12 }
 0x4a0   :  { %v2695_v35 = vmul.f32 %v4395_v4, %v2694_v38 }
 0x4a2   :  { %v2453_v34 = vpop.f32.mrf.mxu2  ;;  %v2479_v37 = vpop.f32.mrf.mxu0  ;;  %v2696_v17 = vmul.f32 0.5, %v2695_v35 }
 0x4a3   :  { %v2466_v36 = vpop.f32.mrf.mxu3 }
 0x4a4   :  { %v2697_v6 = vsub.f32 1.5, %v2696_v17 }
 0x4a6   :  { %v2698_v15 = vmul.f32 %v4395_v4, %v2697_v6 }
 0x4a8   :  { %v2702_v39 = vsel %vm2701_vm14, %v4395_v4, %v2698_v15 }
 0x4a9   :  { %v5306_v18 = vmul.f32 %v2702_v39, %v2687_v14 }
 0x4b3   :  { %v2490_v20 = vpop.f32.mrf.mxu1 }
 0x4b4   :  { %v2491_v56 = vadd.f32 %v2490_v20, %v2478_v2 }
 0x4ba   :  { %v2503_v13 = vpop.f32.mrf.mxu2  ;;  %v2529_v27 = vpop.f32.mrf.mxu0 }
 0x4bb   :  { %v2504_v7 = vadd.f32 %v2503_v13, %v2491_v56  ;;  %v2516_v25 = vpop.f32.mrf.mxu3  ;;  %v2492_v28 = vpop.f32.mrf.mxu1 }
 0x4bc   :  { %v2517_v57 = vadd.f32 %v2516_v25, %v1117_v21 }
 0x4bd   :  { %v2625_v29 = vmul.f32 0.5, %v2504_v7 }
 0x4be   :  { %v2530_v33 = vadd.f32 %v2529_v27, %v2517_v57 }
 0x4bf   :  { %4396 = vtanh.f32 %v2625_v29 }
 0x4c2   :  { %v2505_v0 = vpop.f32.mrf.mxu2  ;;  %v2531_v31 = vpop.f32.mrf.mxu0 }
 0x4c3   :  { %v2518_v30 = vpop.f32.mrf.mxu3 }
 0x4c5   :  { %v4397_v32 = vpop.eup %4396 }
 0x4c6   :  { %v2631_v9 = vmul.f32 0.5, %v4397_v32 }
 0x4c8   :  { %v2634_v63 = vadd.f32 0.5, %v2631_v9 }
 0x4ca   :  { %v2642_v58 = vrot.slane %v2634_v63, 4  ;;  %v2655_v1 = vmul.f32 %v2634_v63, %v2634_v63 }
 0x4cc   :  { %v2643_v3 = vadd.f32 %v2642_v58, %v2634_v63  ;;  %v2663_v16 = vrot.slane %v2655_v1, 4 }
 0x4ce   :  { %v2644_v23 = vrot.slane %v2643_v3, 2  ;;  %v2664_v19 = vadd.f32 %v2663_v16, %v2655_v1 }
 0x4d0   :  { %v2645_v10 = vadd.f32 %v2644_v23, %v2643_v3  ;;  %v2665_v59 = vrot.slane %v2664_v19, 2 }
 0x4d2   :  { %v2646_v42 = vrot.slane %v2645_v10, 1  ;;  %v2666_v43 = vadd.f32 %v2665_v59, %v2664_v19 }
 0x4d3   :  { %v2542_v26 = vpop.f32.mrf.mxu1 }
 0x4d4   :  { %v2647_v61 = vadd.f32 %v2646_v42, %v2645_v10  ;;  %v2667_v45 = vrot.slane %v2666_v43, 1  ;;  %v2543_v51 = vadd.f32 %v2542_v26, %v2530_v33 }
 0x4d6   :  { %v2668_v46 = vadd.f32 %v2667_v45, %v2666_v43  ;;  %v2676_v5 = vmul.f32 0.125, %v2647_v61 }
 0x4d8   :  { %v2679_v60 = vmul.f32 0.125, %v2668_v46  ;;  %v2682_v62 = vmul.f32 %v2676_v5, %v2676_v5  ;;  %v2688_v4 = vsub.f32 %v2634_v63, %v2676_v5 }
 0x4da   :  { %v2555_v12 = vpop.f32.mrf.mxu2  ;;  %v2581_v8 = vpop.f32.mrf.mxu0  ;;  %v2685_v50 = vsub.f32 %v2679_v60, %v2682_v62 }
 0x4db   :  { %v2568_v47 = vpop.f32.mrf.mxu3  ;;  %v2544_v53 = vpop.f32.mrf.mxu1  ;;  %v2556_v48 = vadd.f32 %v2555_v12, %v2543_v51 }
 0x4dc   :  { %v2691_v41 = vadd.f32 1e-05, %v2685_v50 }
 0x4dd   :  { %v2569_v40 = vadd.f32 %v2568_v47, %v2556_v48 }
 0x4de   :  { %4398 = vrsqrt.f32 %v2691_v41  ;;  %vm2709_vm0 = vweird.f32 %v2691_v41 }
 0x4df   :  { %v2582_v36 = vadd.f32 %v2581_v8, %v2569_v40 }
 0x4e2   :  { %v2557_v49 = vpop.f32.mrf.mxu2  ;;  %v2583_v52 = vpop.f32.mrf.mxu0 }
 0x4e3   :  { %v2570_v11 = vpop.f32.mrf.mxu3 }
 0x4e4   :  { %v4399_v55 = vpop.eup %4398 }
 0x4e5   :  { %v2704_v44 = vmul.f32 %v4399_v55, %v2691_v41  ;;  %vm2710_vm15 = vweird.f32 %v4399_v55 }
 0x4e6   :  { %vm2711_vm1 = vmor %vm2709_vm0, %vm2710_vm15 }
 0x4e7   :  { %v2705_v22 = vmul.f32 %v4399_v55, %v2704_v44 }
 0x4e9   :  { %v2706_v54 = vmul.f32 0.5, %v2705_v22 }
 0x4eb   :  { %v2707_v24 = vsub.f32 1.5, %v2706_v54 }
 0x4ed   :  { %v2708_v2 = vmul.f32 %v4399_v55, %v2707_v24 }
 0x4ef   :  { %v2712_v34 = vsel %vm2711_vm1, %v4399_v55, %v2708_v2 }
 0x4f0   :  { %v5309_v35 = vmul.f32 %v2712_v34, %v2688_v4 }
 0x4f3   :  { %v2594_v38 = vpop.f32.mrf.mxu1 }
 0x4f4   :  { %v2595_v37 = vadd.f32 %v2594_v38, %v2582_v36 }
 0x4fa   :  { %v2607_v17 = vpop.f32.mrf.mxu2 }
 0x4fb   :  { %v2620_v6 = vpop.f32.mrf.mxu3  ;;  %v2608_v15 = vadd.f32 %v2607_v17, %v2595_v37  ;;  %v2596_v14 = vpop.f32.mrf.mxu1 }
 0x4fd   :  { %v2621_v39 = vadd.f32 %v2620_v6, %v2608_v15 }
 0x4ff   :  { %v2626_v20 = vmul.f32 0.5, %v2621_v39 }
 0x501   :  { %4400 = vtanh.f32 %v2626_v20 }
 0x502   :  { %v2609_v56 = vpop.f32.mrf.mxu2 }
 0x503   :  { %v2622_v13 = vpop.f32.mrf.mxu3 }
 0x507   :  { %v4401_v7 = vpop.eup %4400 }
 0x508   :  { %v2632_v25 = vmul.f32 0.5, %v4401_v7 }
 0x50a   :  { %v2635_v27 = vadd.f32 0.5, %v2632_v25 }
 0x50c   :  { %v2648_v28 = vrot.slane %v2635_v27, 4  ;;  %v2656_v29 = vmul.f32 %v2635_v27, %v2635_v27 }
 0x50e   :  { %v2649_v0 = vadd.f32 %v2648_v28, %v2635_v27  ;;  %v2669_v30 = vrot.slane %v2656_v29, 4 }
 0x510   :  { %v2650_v31 = vrot.slane %v2649_v0, 2  ;;  %v2670_v32 = vadd.f32 %v2669_v30, %v2656_v29 }
 0x512   :  { %v2651_v9 = vadd.f32 %v2650_v31, %v2649_v0  ;;  %v2671_v63 = vrot.slane %v2670_v32, 2 }
 0x514   :  { %v2652_v58 = vrot.slane %v2651_v9, 1  ;;  %v2672_v1 = vadd.f32 %v2671_v63, %v2670_v32 }
 0x516   :  { %v2653_v3 = vadd.f32 %v2652_v58, %v2651_v9  ;;  %v2673_v16 = vrot.slane %v2672_v1, 1 }
 0x518   :  { %v2674_v23 = vadd.f32 %v2673_v16, %v2672_v1  ;;  %v2677_v19 = vmul.f32 0.125, %v2653_v3 }
 0x51a   :  { %v2680_v10 = vmul.f32 0.125, %v2674_v23  ;;  %v2683_v59 = vmul.f32 %v2677_v19, %v2677_v19  ;;  %v2689_v60 = vsub.f32 %v2635_v27, %v2677_v19 }
 0x51c   :  { %v2686_v42 = vsub.f32 %v2680_v10, %v2683_v59 }
 0x51e   :  { %v2692_v43 = vadd.f32 1e-05, %v2686_v42 }
 0x520   :  { %4402 = vrsqrt.f32 %v2692_v43  ;;  %vm2719_vm3 = vweird.f32 %v2692_v43 }
 0x526   :  { %v4403_v26 = vpop.eup %4402 }
 0x527   :  { %v2714_v61 = vmul.f32 %v4403_v26, %v2692_v43  ;;  %vm2720_vm2 = vweird.f32 %v4403_v26 }
 0x528   :  { %vm2721_vm4 = vmor %vm2719_vm3, %vm2720_vm2 }
 0x529   :  { %v2715_v45 = vmul.f32 %v4403_v26, %v2714_v61 }
 0x52b   :  { %v2716_v46 = vmul.f32 0.5, %v2715_v45 }
 0x52d   :  { %v2717_v5 = vsub.f32 1.5, %v2716_v46 }
 0x52f   :  { %v2718_v12 = vmul.f32 %v4403_v26, %v2717_v5 }
 0x531   :  { %v2722_v62 = vsel %vm2721_vm4, %v4403_v26, %v2718_v12 }
 0x532   :  { %v2725_v47 = vmul.f32 %v2722_v62, %v2689_v60 }
 0x533   :  { %4616 = dma.done.wait [#allocation4 + $0x1], 3072 }
 0x534   :  { %4617 = vsyncadd [#allocation4 + $0x1], 4294964224  ;;  %v4302_v8 = vld [vmem:[#allocation3 + $0x38] sm:$0xff]  ;;  %v4301_v53 = vld [vmem:[#allocation3 + $0x30] sm:$0xff]  ;;  %v2730_v17 = vpack.c.bf16 %v5306_v18, %v5306_v18  ;;  %v2731_v6 = vpack.c.bf16 %v5309_v35, %v5309_v35  ;;  %v2732_v15 = vpack.c.bf16 %v2725_v47, %v2725_v47  ;;  %s5376_s9 = sld [smem:[#allocation51_spill]]  ;;  %vm2982_vm5 = vcmask 7168  }
 0x535   :  { %v4310_v50 = vld [vmem:[#allocation3 + $0x78] sm:$0xff]  ;;  %2929 = vmatpush.bf16.msrb.mxu0 %v4302_v8  ;;  %v4309_v41 = vld [vmem:[#allocation3 + $0x70] sm:$0xff]  ;;  %v4300_v49 = vld [vmem:[#allocation3 + $0x28] sm:$0xff]  ;;  %s5377_s6 = sld [smem:[#allocation52_spill]] }
 0x536   :  { %v4318_v21 = vld [vmem:[#allocation3 + $0xb8] sm:$0xff]  ;;  %2942 = vmatpush.bf16.msrb.mxu1 %v4310_v50  ;;  %v4317_v57 = vld [vmem:[#allocation3 + $0xb0] sm:$0xff]  ;;  %v4308_v11 = vld [vmem:[#allocation3 + $0x68] sm:$0xff]  ;;  %s5378_s0 = sld [smem:[#allocation53_spill]] }
 0x537   :  { %2955 = vmatpush.bf16.msrb.mxu2 %v4318_v21  ;;  %v4316_v52 = vld [vmem:[#allocation3 + $0xa8] sm:$0xff]  ;;  %v4299_v33 = vld [vmem:[#allocation3 + $0x20] sm:$0xff]  ;;  %v4298_v51 = vld [vmem:[#allocation3 + $0x18] sm:$0xff] }
 0x538   :  { %v4307_v55 = vld [vmem:[#allocation3 + $0x60] sm:$0xff]  ;;  %v4306_v22 = vld [vmem:[#allocation3 + $0x58] sm:$0xff]  ;;  %v4297_v48 = vld [vmem:[#allocation3 + $0x10] sm:$0xff] }
 0x539   :  { %2930 = vmatpush.bf16.msrb.mxu0 %v4301_v53  ;;  %v4315_v44 = vld [vmem:[#allocation3 + $0xa0] sm:$0xff]  ;;  %v4314_v54 = vld [vmem:[#allocation3 + $0x98] sm:$0xff]  ;;  %v4305_v24 = vld [vmem:[#allocation3 + $0x50] sm:$0xff] }
 0x53a   :  { %2943 = vmatpush.bf16.msrb.mxu1 %v4309_v41  ;;  %v4313_v2 = vld [vmem:[#allocation3 + $0x90] sm:$0xff]  ;;  %v4296_v4 = vld [vmem:[#allocation3 + $0x8] sm:$0xff]  ;;  %v4295_v34 = vld [vmem:[#allocation3] sm:$0xff] }
 0x53b   :  { %2956 = vmatpush.bf16.msrb.mxu2 %v4317_v57  ;;  %v4304_v40 = vld [vmem:[#allocation3 + $0x48] sm:$0xff]  ;;  %v4303_v36 = vld [vmem:[#allocation3 + $0x40] sm:$0xff]  ;;  %v4404_v14 = vld [vmem:[#allocation19] ss:$0 sm:$0xff]  ;;  %v2980_v9 = vstv %s5377_s6 }
 0x53c   :  { %v4312_v38 = vld [vmem:[#allocation3 + $0x88] sm:$0xff]  ;;  %v4311_v37 = vld [vmem:[#allocation3 + $0x80] sm:$0xff] }
 0x53d   :  { %2931 = vmatpush.bf16.msrb.mxu0 %v4300_v49  ;;  %v4405_v30 = vld [vmem:[%s5376_s9] ss:$0 sm:$0xff] }
 0x53e   :  { %2944 = vmatpush.bf16.msrb.mxu1 %v4308_v11 }
 0x53f   :  { %2957 = vmatpush.bf16.msrb.mxu2 %v4316_v52 }
 0x541   :  { %2932 = vmatpush.bf16.msrb.mxu0 %v4299_v33 }
 0x542   :  { %2945 = vmatpush.bf16.msrb.mxu1 %v4307_v55 }
 0x543   :  { %2958 = vmatpush.bf16.msrb.mxu2 %v4315_v44 }
 0x545   :  { %2933 = vmatpush.bf16.msrb.mxu0 %v4298_v51 }
 0x546   :  { %2946 = vmatpush.bf16.msrb.mxu1 %v4306_v22 }
 0x547   :  { %2959 = vmatpush.bf16.msrb.mxu2 %v4314_v54 }
 0x549   :  { %2934 = vmatpush.bf16.msrb.mxu0 %v4297_v48 }
 0x54a   :  { %2947 = vmatpush.bf16.msrb.mxu1 %v4305_v24 }
 0x54b   :  { %2960 = vmatpush.bf16.msrb.mxu2 %v4313_v2 }
 0x54d   :  { %2935 = vmatpush.bf16.msrb.mxu0 %v4296_v4 }
 0x54e   :  { %2948 = vmatpush.bf16.msrb.mxu1 %v4304_v40 }
 0x54f   :  { %2961 = vmatpush.bf16.msrb.mxu2 %v4312_v38 }
 0x551   :  { %2936 = vmatpush.bf16.msrb.mxu0 %v4295_v34 }
 0x552   :  { %2949 = vmatpush.bf16.msrb.mxu1 %v4303_v36 }
 0x553   :  { %2962 = vmatpush.bf16.msrb.mxu2 %v4311_v37 }
 0x554   :  { %2937 = vmatmul.bf16.vlgmr.msrb.gmra.mxu0 %v2730_v17 }
 0x555   :  { %2950 = vmatmul.bf16.vlgmr.msrb.gmra.mxu1 %v2731_v6 }
 0x556   :  { %2963 = vmatmul.bf16.vlgmr.msrb.gmra.mxu2 %v2732_v15 }
 0x5d1   :  { %v2938_v39 = vpop.f32.mrf.mxu0 }
 0x5d2   :  { %v2951_v20 = vpop.f32.mrf.mxu1  ;;  %v2939_v56 = vadd.f32 %v4404_v14, %v2938_v39 }
 0x5d4   :  { %v2952_v13 = vadd.f32 %v2951_v20, %v2939_v56 }
 0x5d9   :  { %v2964_v7 = vpop.f32.mrf.mxu2  ;;  %v2940_v27 = vpop.f32.mrf.mxu0 }
 0x5da   :  { %v2965_v25 = vadd.f32 %v2964_v7, %v2952_v13  ;;  %v2953_v28 = vpop.f32.mrf.mxu1 }
 0x5dc   :  { %v2968_v18 = vmul.f32 0.5, %v2965_v25 }
 0x5de   :  { %4406 = vtanh.f32 %v2968_v18 }
 0x5e1   :  { %v2966_v29 = vpop.f32.mrf.mxu2 }
 0x5e4   :  { %v4407_v35 = vpop.eup %4406 }
 0x5e5   :  { %v2970_v0 = vmul.f32 0.5, %v4407_v35 }
 0x5e7   :  { %v2971_v31 = vadd.f32 0.5, %v2970_v0 }
 0x5e9   :  { %v2976_v32 = vmul.f32 %v4405_v30, %v2971_v31 }
 0x5eb   :  { %2977 = vadd.xlane.f32.xlu0 %v2976_v32 }
 0x65e   :  { %v2978_v63 = vpop.xlane.xlu0 %2977 }
 0x65f   :  { %v2981_v58 = vadd.f32 %v2980_v9, %v2978_v63 }
 0x661   :  { %2983 = vst.msk [vmem:[%s5378_s0] sm:$0xff] %vm2982_vm5, %v2981_v58 }
 0x662   :  { %2988 = vsyncpa [#allocation7], 1 }
 0x663   :  { %2989 = vsyncpa [#allocation11], 1 }
 0x664   :  { %2990 = vsyncpa [#allocation20], 1 }
 0x665   :  { %2991 = vsyncpa [#allocation8], 1 }
 0x666   :  { %2992 = vsyncpa [#allocation16], 1 }
 0x667   :  { %2993 = vsyncpa [#allocation9], 1 }
 0x668   :  { %2994 = vsyncpa [#allocation18], 1 }
 0x669   :  { %2995 = vsyncmov [#allocation4] }
 0x66c   :  { %s2996_s27 = vpop.sfrf %2995 }
 0x66d   :  { %p4075_p0 = scmp.ne.s32.totalorder %s2996_s27, 0 }
 0x66f   :  { %3000 = shalt.err (%p4075_p0)  }
 0x670   :  { %3002 = vsyncmov [#allocation4 + $0x1] }
 0x673   :  { %s3003_s2 = vpop.sfrf %3002 }
 0x674   :  { %p4076_p1 = scmp.ne.s32.totalorder %s3003_s2, 0 }
 0x676   :  { %3007 = shalt.err (%p4076_p1)  }

</bundles_post_ra>
